<compile_context>
chip_gen: v5e
topology: v5e:2x2
jax: 0.10.0
libtpu: 0.0.40
codegen_flags: <defaults>
</compile_context>

<pallas_src>
import functools

import jax
import jax.numpy as jnp
import numpy as np
from jax.experimental import pallas as pl
from jax.experimental.pallas import tpu as pltpu


# ---------------------------------------------------------------------------
# Pallas kernel
# ---------------------------------------------------------------------------
def _layernorm(x, w, b, eps):
    mu = jnp.mean(x, axis=-1, keepdims=True)
    var = jnp.mean((x - mu) ** 2, axis=-1, keepdims=True)
    return (x - mu) * jax.lax.rsqrt(var + eps) * w + b


def _slot_attention_kernel(
    x_ref, slots0_ref,
    wq_ref, wk_ref, wv_ref,                              # pre-transposed (in, out)
    ln_in_w_ref, ln_in_b_ref, ln_sl_w_ref, ln_sl_b_ref, ln_mlp_w_ref, ln_mlp_b_ref,
    w_ir_ref, w_iz_ref, w_in_ref,                        # GRU input gates (D, D)
    w_hr_ref, w_hz_ref, w_hn_ref,                        # GRU hidden gates (D, D)
    b_ir_ref, b_iz_ref, b_in_ref,                        # (1, D)
    b_hr_ref, b_hz_ref, b_hn_ref,                        # (1, D)
    w1_ref, b1_ref, w2_ref, b2_ref,                      # MLP (D,H),(1,H),(H,D),(1,D)
    slots_out_ref, logits_out_ref, attn_out_ref,
    *, num_iter, epsilon, temperature, ln_eps, mm_dtype,
):
    f32 = jnp.float32
    Bblk, T, C = x_ref.shape
    S, D = slots0_ref.shape[1], slots0_ref.shape[2]
    scale = D ** (-0.5)
    inv_temp = 1.0 / temperature

    # Pre-cast matmul weights once per grid step (hoisted out of the iter loop).
    wq = wq_ref[...].astype(mm_dtype)
    wk = wk_ref[...].astype(mm_dtype)
    wv = wv_ref[...].astype(mm_dtype)
    w_ir = w_ir_ref[...].astype(mm_dtype)
    w_iz = w_iz_ref[...].astype(mm_dtype)
    w_in = w_in_ref[...].astype(mm_dtype)
    w_hr = w_hr_ref[...].astype(mm_dtype)
    w_hz = w_hz_ref[...].astype(mm_dtype)
    w_hn = w_hn_ref[...].astype(mm_dtype)
    w1 = w1_ref[...].astype(mm_dtype)
    w2 = w2_ref[...].astype(mm_dtype)

    def mm(a, w_t):
        # a: f32 activations, w_t: pre-transposed / pre-cast weight. f32 accum.
        return jnp.dot(a.astype(mm_dtype), w_t, preferred_element_type=f32)

    # ----- inputs: LayerNorm + k/v projections on fused (Bblk*T) rows -----
    # project_x is Identity (project_inputs=False in the module).
    x = x_ref[...].reshape(Bblk * T, C)
    xn = _layernorm(x, ln_in_w_ref[...], ln_in_b_ref[...], ln_eps)
    k = mm(xn, wk).reshape(Bblk, T, D).astype(mm_dtype)   # loop-invariant, cast once
    v = mm(xn, wv).reshape(Bblk, T, D).astype(mm_dtype)

    slots = slots0_ref[...].reshape(Bblk * S, D)          # f32 carry across iterations
    logits = jnp.zeros((Bblk, S, T), f32)
    attn_slot = jnp.zeros((Bblk, S, T), f32)

    for _ in range(num_iter):
        slots_prev = slots
        sn = _layernorm(slots, ln_sl_w_ref[...], ln_sl_b_ref[...], ln_eps)
        q = (mm(sn, wq) * scale).reshape(Bblk, S, D).astype(mm_dtype)

        # attn_logits[b] = q[b] @ k[b]^T — contract last dims, no transpose built.
        logits = jnp.einsum("bsd,btd->bst", q, k, preferred_element_type=f32)

        # softmax over the SLOT axis (dim=1 of (B,S,T)), then +eps L1 over tokens.
        a = logits * inv_temp
        a = a - jnp.max(a, axis=1, keepdims=True)
        e = jnp.exp(a)
        attn_pix = e * pl.reciprocal(jnp.sum(e, axis=1, keepdims=True), approx=True)
        ap = attn_pix + epsilon
        attn_slot = ap * pl.reciprocal(jnp.sum(ap, axis=-1, keepdims=True), approx=True)

        updates = jnp.einsum("bst,btd->bsd", attn_slot.astype(mm_dtype), v,
                             preferred_element_type=f32).reshape(Bblk * S, D)

        # GRUCell(updates, slots_prev) — per-gate lane-dense matmuls, no slicing.
        r = jax.nn.sigmoid(mm(updates, w_ir) + b_ir_ref[...]
                           + mm(slots_prev, w_hr) + b_hr_ref[...])
        z = jax.nn.sigmoid(mm(updates, w_iz) + b_iz_ref[...]
                           + mm(slots_prev, w_hz) + b_hz_ref[...])
        n = jnp.tanh(mm(updates, w_in) + b_in_ref[...]
                     + r * (mm(slots_prev, w_hn) + b_hn_ref[...]))
        slots = (1.0 - z) * n + z * slots_prev

        # residual MLP
        mn = _layernorm(slots, ln_mlp_w_ref[...], ln_mlp_b_ref[...], ln_eps)
        h = jnp.maximum(mm(mn, w1) + b1_ref[...], 0.0)
        slots = slots + mm(h, w2) + b2_ref[...]

    slots_out_ref[...] = slots.reshape(Bblk, S, D)
    logits_out_ref[...] = logits
    attn_out_ref[...] = attn_slot


# ---------------------------------------------------------------------------
# Wrapper
# ---------------------------------------------------------------------------
def slot_attention_forward(x, slots0, params, *, num_iter, epsilon=1e-8,
                           temperature=1.0, batch_block=None,
                           matmul_dtype=jnp.bfloat16):
    B, T, C = x.shape
    _, S, D = slots0.shape
    H = params["mlp_w1"].shape[0]

    # Choose how many batch elements to fuse per grid step: fill MXU rows
    # (~128-256) while keeping >=2 grid steps so both v7x TensorCores stay busy.
    if batch_block is None:
        batch_block = 1
        for bb in range(1, B + 1):
            if B % bb == 0 and bb * T <= 256 and (B // bb >= 2 or B == 1):
                batch_block = bb
    assert B % batch_block == 0, "batch must be divisible by batch_block"
    grid = (B // batch_block,)

    # Pre-transpose weights (drop all in-kernel .T) and split the GRU weights /
    # biases into lane-dense per-gate chunks (PyTorch order: r, z, n).
    w_ih, w_hh = params["w_ih"], params["w_hh"]
    b_ih, b_hh = params["b_ih"], params["b_hh"]
    gate_w = lambda w, i: jnp.transpose(w[i * D:(i + 1) * D])        # (D, D)
    gate_b = lambda b, i: b[i * D:(i + 1) * D].reshape(1, D)         # (1, D)

    weight_args = (
        jnp.transpose(params["wq"]),                                 # (D, D)
        jnp.transpose(params["wk"]),                                 # (C, D)
        jnp.transpose(params["wv"]),                                 # (C, D)
        params["ln_in_w"].reshape(1, C), params["ln_in_b"].reshape(1, C),
        params["ln_sl_w"].reshape(1, D), params["ln_sl_b"].reshape(1, D),
        params["ln_mlp_w"].reshape(1, D), params["ln_mlp_b"].reshape(1, D),
        gate_w(w_ih, 0), gate_w(w_ih, 1), gate_w(w_ih, 2),
        gate_w(w_hh, 0), gate_w(w_hh, 1), gate_w(w_hh, 2),
        gate_b(b_ih, 0), gate_b(b_ih, 1), gate_b(b_ih, 2),
        gate_b(b_hh, 0), gate_b(b_hh, 1), gate_b(b_hh, 2),
        jnp.transpose(params["mlp_w1"]),                             # (D, H)
        params["mlp_b1"].reshape(1, H),
        jnp.transpose(params["mlp_w2"]),                             # (H, D)
        params["mlp_b2"].reshape(1, D),
    )

    kernel = functools.partial(
        _slot_attention_kernel,
        num_iter=num_iter, epsilon=epsilon, temperature=temperature,
        ln_eps=1e-5, mm_dtype=matmul_dtype,
    )

    batched = lambda b: (b, 0, 0)

    def w_spec(arr):
        return pl.BlockSpec(arr.shape, lambda b, _nd=arr.ndim: (0,) * _nd)

    in_specs = [
        pl.BlockSpec((batch_block, T, C), batched),
        pl.BlockSpec((batch_block, S, D), batched),
    ] + [w_spec(w) for w in weight_args]

    out_specs = [
        pl.BlockSpec((batch_block, S, D), batched),
        pl.BlockSpec((batch_block, S, T), batched),
        pl.BlockSpec((batch_block, S, T), batched),
    ]

    out_shape = (
        jax.ShapeDtypeStruct((B, S, D), jnp.float32),
        jax.ShapeDtypeStruct((B, S, T), jnp.float32),
        jax.ShapeDtypeStruct((B, S, T), jnp.float32),
    )

    return pl.pallas_call(
        kernel,
        out_shape=out_shape,
        grid=grid,
        in_specs=in_specs,
        out_specs=out_specs,
        compiler_params=pltpu.CompilerParams(
            dimension_semantics=("parallel",)),
    )(x, slots0, *weight_args)


# ---------------------------------------------------------------------------
# Pure-JAX reference (mm_dtype selects matmul-operand precision)
# ---------------------------------------------------------------------------
def reference_forward(x, slots0, p, *, num_iter, epsilon=1e-8, temperature=1.0,
                      mm_dtype=jnp.float32):
    f32 = jnp.float32

    def ln(v, w, b, eps=1e-5):
        mu = v.mean(-1, keepdims=True)
        var = ((v - mu) ** 2).mean(-1, keepdims=True)
        return (v - mu) * jax.lax.rsqrt(var + eps) * w + b

    def mm(a, w):  # a @ w.T with mm_dtype operands, f32 accumulation
        return jnp.einsum("...i,oi->...o", a.astype(mm_dtype), w.astype(mm_dtype),
                          preferred_element_type=f32)

    D = slots0.shape[-1]
    xn = ln(x, p["ln_in_w"], p["ln_in_b"])
    k = mm(xn, p["wk"])
    v = mm(xn, p["wv"])
    slots = slots0
    logits = attn_slot = None
    for _ in range(num_iter):
        slots_prev = slots
        sn = ln(slots, p["ln_sl_w"], p["ln_sl_b"])
        q = mm(sn, p["wq"]) * D ** (-0.5)
        logits = jnp.einsum("bsd,btd->bst", q.astype(mm_dtype), k.astype(mm_dtype),
                            preferred_element_type=f32)
        attn_pix = jax.nn.softmax(logits / temperature, axis=1)
        ap = attn_pix + epsilon
        attn_slot = ap / ap.sum(-1, keepdims=True)
        updates = jnp.einsum("bst,btd->bsd", attn_slot.astype(mm_dtype),
                             v.astype(mm_dtype), preferred_element_type=f32)
        gi = mm(updates, p["w_ih"]) + p["b_ih"]
        gh = mm(slots_prev, p["w_hh"]) + p["b_hh"]
        r = jax.nn.sigmoid(gi[..., :D] + gh[..., :D])
        z = jax.nn.sigmoid(gi[..., D:2 * D] + gh[..., D:2 * D])
        n = jnp.tanh(gi[..., 2 * D:] + r * gh[..., 2 * D:])
        slots = (1.0 - z) * n + z * slots_prev
        mn = ln(slots, p["ln_mlp_w"], p["ln_mlp_b"])
        h = jax.nn.relu(mm(mn, p["mlp_w1"]) + p["mlp_b1"])
        slots = slots + mm(h, p["mlp_w2"]) + p["mlp_b2"]
    return slots, logits, attn_slot


# ---------------------------------------------------------------------------
# Deterministic parameter init (mirrors the PyTorch module's init)
# ---------------------------------------------------------------------------
def xavier_uniform(key, shape, gain=1.0):
    fan_in, fan_out = shape[-1], shape[-2]
    limit = gain * np.sqrt(6.0 / (fan_in + fan_out))
    return jax.random.uniform(key, shape, jnp.float32, -limit, limit)


def make_params(key, input_size, slot_size, mlp_hidden):
    ks = jax.random.split(key, 12)
    D, C, H = slot_size, input_size, mlp_hidden
    u = lambda k, s, lim: jax.random.uniform(k, s, jnp.float32, -lim, lim)
    gru_lim = 1.0 / np.sqrt(D)
    return {
        "slots_mu": xavier_uniform(ks[0], (1, 1, D)),
        "slots_log_sigma": xavier_uniform(ks[1], (1, 1, D)),
        "wq": xavier_uniform(ks[2], (D, D)),
        "wk": xavier_uniform(ks[3], (D, C)),
        "wv": xavier_uniform(ks[4], (D, C)),
        "ln_in_w": jnp.ones((C,), jnp.float32),
        "ln_in_b": jnp.zeros((C,), jnp.float32),
        "ln_sl_w": jnp.ones((D,), jnp.float32),
        "ln_sl_b": jnp.zeros((D,), jnp.float32),
        "ln_mlp_w": jnp.ones((D,), jnp.float32),
        "ln_mlp_b": jnp.zeros((D,), jnp.float32),
        "w_ih": u(ks[5], (3 * D, D), gru_lim),
        "w_hh": u(ks[6], (3 * D, D), gru_lim),
        "b_ih": u(ks[7], (3 * D,), gru_lim),
        "b_hh": u(ks[8], (3 * D,), gru_lim),
        "mlp_w1": xavier_uniform(ks[9], (H, D)),
        "mlp_b1": jnp.zeros((H,), jnp.float32),
        "mlp_w2": xavier_uniform(ks[10], (D, H)),
        "mlp_b2": jnp.zeros((D,), jnp.float32),
    }


# ---------------------------------------------------------------------------
if __name__ == "__main__":
    # Small, module-consistent shapes. B=4 with batch_block=2 gives two
    # parallel grid steps (v7x dual-TC) while fusing 128 token rows per step.
    B, T, C = 4, 64, 32          # batch, tokens (8x8 spatial), input_size
    S, D, H = 8, 32, 64          # num_slots, slot_size, mlp_hidden_size
    NUM_ITER = 3
    EPSILON = 1e-8
    TEMPERATURE = 1.0

    root = jax.random.PRNGKey(0)
    k_param, k_x, k_slots = jax.random.split(root, 3)

    params = make_params(k_param, C, D, H)
    x = jax.random.normal(k_x, (B, T, C), jnp.float32)

    # slots = mu + exp(log_sigma) * randn(B, S, D)  (wrapper glue, as in module)
    noise = jax.random.normal(k_slots, (B, S, D), jnp.float32)
    slots0 = params["slots_mu"] + jnp.exp(params["slots_log_sigma"]) * noise

    slots, attn_logits, attn_slotwise = jax.block_until_ready(
        slot_attention_forward(x, slots0, params, num_iter=NUM_ITER,
                               epsilon=EPSILON, temperature=TEMPERATURE,
                               batch_block=2, matmul_dtype=jnp.bfloat16))

    # Matched-precision reference (bf16 matmul operands, f32 everywhere else).
    m_slots, m_logits, m_attn = reference_forward(
        x, slots0, params, num_iter=NUM_ITER, epsilon=EPSILON,
        temperature=TEMPERATURE, mm_dtype=jnp.bfloat16)
    np.testing.assert_allclose(np.asarray(slots), np.asarray(m_slots),
                               rtol=2e-2, atol=2e-2)
    np.testing.assert_allclose(np.asarray(attn_logits), np.asarray(m_logits),
                               rtol=2e-2, atol=2e-2)
    np.testing.assert_allclose(np.asarray(attn_slotwise), np.asarray(m_attn),
                               rtol=2e-2, atol=2e-2)

    # Full-f32 reference: loose semantic check for the bf16-MXU fast path.
    r_slots, r_logits, r_attn = reference_forward(
        x, slots0, params, num_iter=NUM_ITER, epsilon=EPSILON,
        temperature=TEMPERATURE, mm_dtype=jnp.float32)
    np.testing.assert_allclose(np.asarray(slots), np.asarray(r_slots),
                               rtol=1e-1, atol=1e-1)
    np.testing.assert_allclose(np.asarray(attn_slotwise), np.asarray(r_attn),
                               rtol=1e-1, atol=1e-1)

    print("KERNEL_OK")
</pallas_src>

<mosaic_0001>
module attributes {stable_mosaic.version = 11 : i64} {
  func.func @_slot_attention_kernel(%arg0: i32, %arg1: memref<2x64x32xf32, #tpu.memory_space<vmem>>, %arg2: memref<2x8x32xf32, #tpu.memory_space<vmem>>, %arg3: memref<32x32xf32, #tpu.memory_space<vmem>>, %arg4: memref<32x32xf32, #tpu.memory_space<vmem>>, %arg5: memref<32x32xf32, #tpu.memory_space<vmem>>, %arg6: memref<1x32xf32, #tpu.memory_space<vmem>>, %arg7: memref<1x32xf32, #tpu.memory_space<vmem>>, %arg8: memref<1x32xf32, #tpu.memory_space<vmem>>, %arg9: memref<1x32xf32, #tpu.memory_space<vmem>>, %arg10: memref<1x32xf32, #tpu.memory_space<vmem>>, %arg11: memref<1x32xf32, #tpu.memory_space<vmem>>, %arg12: memref<32x32xf32, #tpu.memory_space<vmem>>, %arg13: memref<32x32xf32, #tpu.memory_space<vmem>>, %arg14: memref<32x32xf32, #tpu.memory_space<vmem>>, %arg15: memref<32x32xf32, #tpu.memory_space<vmem>>, %arg16: memref<32x32xf32, #tpu.memory_space<vmem>>, %arg17: memref<32x32xf32, #tpu.memory_space<vmem>>, %arg18: memref<1x32xf32, #tpu.memory_space<vmem>>, %arg19: memref<1x32xf32, #tpu.memory_space<vmem>>, %arg20: memref<1x32xf32, #tpu.memory_space<vmem>>, %arg21: memref<1x32xf32, #tpu.memory_space<vmem>>, %arg22: memref<1x32xf32, #tpu.memory_space<vmem>>, %arg23: memref<1x32xf32, #tpu.memory_space<vmem>>, %arg24: memref<32x64xf32, #tpu.memory_space<vmem>>, %arg25: memref<1x64xf32, #tpu.memory_space<vmem>>, %arg26: memref<64x32xf32, #tpu.memory_space<vmem>>, %arg27: memref<1x32xf32, #tpu.memory_space<vmem>>, %arg28: memref<2x8x32xf32, #tpu.memory_space<vmem>>, %arg29: memref<2x8x64xf32, #tpu.memory_space<vmem>>, %arg30: memref<2x8x64xf32, #tpu.memory_space<vmem>>) attributes {dimension_semantics = [#tpu.dimension_semantics<parallel>], iteration_bounds = array<i64: 2>, scalar_prefetch = 0 : i64, scratch_operands = 0 : i64, tpu.core_type = #tpu.core_type<tc>, window_params = [{transform_indices = @transform_0, window_bounds = array<i64: 2, 64, 32>}, {transform_indices = @transform_1, window_bounds = array<i64: 2, 8, 32>}, {pipeline_mode = #tpu.pipeline_mode<synchronous>, transform_indices = @transform_2, window_bounds = array<i64: 32, 32>}, {pipeline_mode = #tpu.pipeline_mode<synchronous>, transform_indices = @transform_3, window_bounds = array<i64: 32, 32>}, {pipeline_mode = #tpu.pipeline_mode<synchronous>, transform_indices = @transform_4, window_bounds = array<i64: 32, 32>}, {pipeline_mode = #tpu.pipeline_mode<synchronous>, transform_indices = @transform_5, window_bounds = array<i64: 1, 32>}, {pipeline_mode = #tpu.pipeline_mode<synchronous>, transform_indices = @transform_6, window_bounds = array<i64: 1, 32>}, {pipeline_mode = #tpu.pipeline_mode<synchronous>, transform_indices = @transform_7, window_bounds = array<i64: 1, 32>}, {pipeline_mode = #tpu.pipeline_mode<synchronous>, transform_indices = @transform_8, window_bounds = array<i64: 1, 32>}, {pipeline_mode = #tpu.pipeline_mode<synchronous>, transform_indices = @transform_9, window_bounds = array<i64: 1, 32>}, {pipeline_mode = #tpu.pipeline_mode<synchronous>, transform_indices = @transform_10, window_bounds = array<i64: 1, 32>}, {pipeline_mode = #tpu.pipeline_mode<synchronous>, transform_indices = @transform_11, window_bounds = array<i64: 32, 32>}, {pipeline_mode = #tpu.pipeline_mode<synchronous>, transform_indices = @transform_12, window_bounds = array<i64: 32, 32>}, {pipeline_mode = #tpu.pipeline_mode<synchronous>, transform_indices = @transform_13, window_bounds = array<i64: 32, 32>}, {pipeline_mode = #tpu.pipeline_mode<synchronous>, transform_indices = @transform_14, window_bounds = array<i64: 32, 32>}, {pipeline_mode = #tpu.pipeline_mode<synchronous>, transform_indices = @transform_15, window_bounds = array<i64: 32, 32>}, {pipeline_mode = #tpu.pipeline_mode<synchronous>, transform_indices = @transform_16, window_bounds = array<i64: 32, 32>}, {pipeline_mode = #tpu.pipeline_mode<synchronous>, transform_indices = @transform_17, window_bounds = array<i64: 1, 32>}, {pipeline_mode = #tpu.pipeline_mode<synchronous>, transform_indices = @transform_18, window_bounds = array<i64: 1, 32>}, {pipeline_mode = #tpu.pipeline_mode<synchronous>, transform_indices = @transform_19, window_bounds = array<i64: 1, 32>}, {pipeline_mode = #tpu.pipeline_mode<synchronous>, transform_indices = @transform_20, window_bounds = array<i64: 1, 32>}, {pipeline_mode = #tpu.pipeline_mode<synchronous>, transform_indices = @transform_21, window_bounds = array<i64: 1, 32>}, {pipeline_mode = #tpu.pipeline_mode<synchronous>, transform_indices = @transform_22, window_bounds = array<i64: 1, 32>}, {pipeline_mode = #tpu.pipeline_mode<synchronous>, transform_indices = @transform_23, window_bounds = array<i64: 32, 64>}, {pipeline_mode = #tpu.pipeline_mode<synchronous>, transform_indices = @transform_24, window_bounds = array<i64: 1, 64>}, {pipeline_mode = #tpu.pipeline_mode<synchronous>, transform_indices = @transform_25, window_bounds = array<i64: 64, 32>}, {pipeline_mode = #tpu.pipeline_mode<synchronous>, transform_indices = @transform_26, window_bounds = array<i64: 1, 32>}, {transform_indices = @transform_27, window_bounds = array<i64: 2, 8, 32>}, {transform_indices = @transform_28, window_bounds = array<i64: 2, 8, 64>}, {transform_indices = @transform_29, window_bounds = array<i64: 2, 8, 64>}]} {
    %c0 = arith.constant 0 : index
    %c0_0 = arith.constant 0 : index
    %0 = vector.load %arg3[%c0, %c0_0] : memref<32x32xf32, #tpu.memory_space<vmem>>, vector<32x32xf32>
    %1 = arith.truncf %0 : vector<32x32xf32> to vector<32x32xbf16>
    %c0_1 = arith.constant 0 : index
    %c0_2 = arith.constant 0 : index
    %2 = vector.load %arg4[%c0_1, %c0_2] : memref<32x32xf32, #tpu.memory_space<vmem>>, vector<32x32xf32>
    %3 = arith.truncf %2 : vector<32x32xf32> to vector<32x32xbf16>
    %c0_3 = arith.constant 0 : index
    %c0_4 = arith.constant 0 : index
    %4 = vector.load %arg5[%c0_3, %c0_4] : memref<32x32xf32, #tpu.memory_space<vmem>>, vector<32x32xf32>
    %5 = arith.truncf %4 : vector<32x32xf32> to vector<32x32xbf16>
    %c0_5 = arith.constant 0 : index
    %c0_6 = arith.constant 0 : index
    %6 = vector.load %arg12[%c0_5, %c0_6] : memref<32x32xf32, #tpu.memory_space<vmem>>, vector<32x32xf32>
    %7 = arith.truncf %6 : vector<32x32xf32> to vector<32x32xbf16>
    %c0_7 = arith.constant 0 : index
    %c0_8 = arith.constant 0 : index
    %8 = vector.load %arg13[%c0_7, %c0_8] : memref<32x32xf32, #tpu.memory_space<vmem>>, vector<32x32xf32>
    %9 = arith.truncf %8 : vector<32x32xf32> to vector<32x32xbf16>
    %c0_9 = arith.constant 0 : index
    %c0_10 = arith.constant 0 : index
    %10 = vector.load %arg14[%c0_9, %c0_10] : memref<32x32xf32, #tpu.memory_space<vmem>>, vector<32x32xf32>
    %11 = arith.truncf %10 : vector<32x32xf32> to vector<32x32xbf16>
    %c0_11 = arith.constant 0 : index
    %c0_12 = arith.constant 0 : index
    %12 = vector.load %arg15[%c0_11, %c0_12] : memref<32x32xf32, #tpu.memory_space<vmem>>, vector<32x32xf32>
    %13 = arith.truncf %12 : vector<32x32xf32> to vector<32x32xbf16>
    %c0_13 = arith.constant 0 : index
    %c0_14 = arith.constant 0 : index
    %14 = vector.load %arg16[%c0_13, %c0_14] : memref<32x32xf32, #tpu.memory_space<vmem>>, vector<32x32xf32>
    %15 = arith.truncf %14 : vector<32x32xf32> to vector<32x32xbf16>
    %c0_15 = arith.constant 0 : index
    %c0_16 = arith.constant 0 : index
    %16 = vector.load %arg17[%c0_15, %c0_16] : memref<32x32xf32, #tpu.memory_space<vmem>>, vector<32x32xf32>
    %17 = arith.truncf %16 : vector<32x32xf32> to vector<32x32xbf16>
    %c0_17 = arith.constant 0 : index
    %c0_18 = arith.constant 0 : index
    %18 = vector.load %arg24[%c0_17, %c0_18] : memref<32x64xf32, #tpu.memory_space<vmem>>, vector<32x64xf32>
    %19 = arith.truncf %18 : vector<32x64xf32> to vector<32x64xbf16>
    %c0_19 = arith.constant 0 : index
    %c0_20 = arith.constant 0 : index
    %20 = vector.load %arg26[%c0_19, %c0_20] : memref<64x32xf32, #tpu.memory_space<vmem>>, vector<64x32xf32>
    %21 = arith.truncf %20 : vector<64x32xf32> to vector<64x32xbf16>
    %c0_21 = arith.constant 0 : index
    %c0_22 = arith.constant 0 : index
    %c0_23 = arith.constant 0 : index
    %22 = vector.load %arg1[%c0_21, %c0_22, %c0_23] : memref<2x64x32xf32, #tpu.memory_space<vmem>>, vector<2x64x32xf32>
    %23 = vector.shape_cast %22 : vector<2x64x32xf32> to vector<128x32xf32>
    %c0_24 = arith.constant 0 : index
    %c0_25 = arith.constant 0 : index
    %24 = vector.load %arg6[%c0_24, %c0_25] : memref<1x32xf32, #tpu.memory_space<vmem>>, vector<1x32xf32>
    %c0_26 = arith.constant 0 : index
    %c0_27 = arith.constant 0 : index
    %25 = vector.load %arg7[%c0_26, %c0_27] : memref<1x32xf32, #tpu.memory_space<vmem>>, vector<1x32xf32>
    %cst = arith.constant dense<0.000000e+00> : vector<128xf32>
    %26 = vector.multi_reduction <add>, %23, %cst [1] : vector<128x32xf32> to vector<128xf32>
    %27 = vector.shape_cast %26 : vector<128xf32> to vector<128x1xf32>
    %cst_28 = arith.constant 3.200000e+01 : f32
    %28 = vector.broadcast %cst_28 : f32 to vector<128x1xf32>
    %29 = arith.divf %27, %28 : vector<128x1xf32>
    %30 = vector.broadcast %29 : vector<128x1xf32> to vector<128x32xf32>
    %31 = arith.subf %23, %30 : vector<128x32xf32>
    %32 = arith.mulf %31, %31 : vector<128x32xf32>
    %cst_29 = arith.constant dense<0.000000e+00> : vector<128xf32>
    %33 = vector.multi_reduction <add>, %32, %cst_29 [1] : vector<128x32xf32> to vector<128xf32>
    %34 = vector.shape_cast %33 : vector<128xf32> to vector<128x1xf32>
    %cst_30 = arith.constant 3.200000e+01 : f32
    %35 = vector.broadcast %cst_30 : f32 to vector<128x1xf32>
    %36 = arith.divf %34, %35 : vector<128x1xf32>
    %37 = vector.broadcast %29 : vector<128x1xf32> to vector<128x32xf32>
    %38 = arith.subf %23, %37 : vector<128x32xf32>
    %cst_31 = arith.constant 9.99999974E-6 : f32
    %39 = vector.broadcast %cst_31 : f32 to vector<128x1xf32>
    %40 = arith.addf %36, %39 : vector<128x1xf32>
    %41 = math.rsqrt %40 : vector<128x1xf32>
    %42 = vector.broadcast %41 : vector<128x1xf32> to vector<128x32xf32>
    %43 = arith.mulf %38, %42 : vector<128x32xf32>
    %44 = vector.broadcast %24 : vector<1x32xf32> to vector<128x32xf32>
    %45 = arith.mulf %43, %44 : vector<128x32xf32>
    %46 = vector.broadcast %25 : vector<1x32xf32> to vector<128x32xf32>
    %47 = arith.addf %45, %46 : vector<128x32xf32>
    %48 = arith.truncf %47 : vector<128x32xf32> to vector<128x32xbf16>
    %cst_32 = arith.constant dense<0.000000e+00> : vector<128x32xf32>
    %49 = tpu.matmul %48, %3, %cst_32 {dimension_numbers = #tpu.dot_dimension_numbers<[1], [0], [0], [1], [0, 0, 1, 1], [], []>} : vector<128x32xbf16>, vector<32x32xbf16>, vector<128x32xf32> -> vector<128x32xf32>
    %50 = vector.shape_cast %49 : vector<128x32xf32> to vector<2x64x32xf32>
    %51 = arith.truncf %50 : vector<2x64x32xf32> to vector<2x64x32xbf16>
    %52 = arith.truncf %47 : vector<128x32xf32> to vector<128x32xbf16>
    %cst_33 = arith.constant dense<0.000000e+00> : vector<128x32xf32>
    %53 = tpu.matmul %52, %5, %cst_33 {dimension_numbers = #tpu.dot_dimension_numbers<[1], [0], [0], [1], [0, 0, 1, 1], [], []>} : vector<128x32xbf16>, vector<32x32xbf16>, vector<128x32xf32> -> vector<128x32xf32>
    %54 = vector.shape_cast %53 : vector<128x32xf32> to vector<2x64x32xf32>
    %55 = arith.truncf %54 : vector<2x64x32xf32> to vector<2x64x32xbf16>
    %c0_34 = arith.constant 0 : index
    %c0_35 = arith.constant 0 : index
    %c0_36 = arith.constant 0 : index
    %56 = vector.load %arg2[%c0_34, %c0_35, %c0_36] : memref<2x8x32xf32, #tpu.memory_space<vmem>>, vector<2x8x32xf32>
    %57 = vector.shape_cast %56 : vector<2x8x32xf32> to vector<16x32xf32>
    %c0_37 = arith.constant 0 : index
    %c0_38 = arith.constant 0 : index
    %58 = vector.load %arg8[%c0_37, %c0_38] : memref<1x32xf32, #tpu.memory_space<vmem>>, vector<1x32xf32>
    %c0_39 = arith.constant 0 : index
    %c0_40 = arith.constant 0 : index
    %59 = vector.load %arg9[%c0_39, %c0_40] : memref<1x32xf32, #tpu.memory_space<vmem>>, vector<1x32xf32>
    %cst_41 = arith.constant dense<0.000000e+00> : vector<16xf32>
    %60 = vector.multi_reduction <add>, %57, %cst_41 [1] : vector<16x32xf32> to vector<16xf32>
    %61 = vector.shape_cast %60 : vector<16xf32> to vector<16x1xf32>
    %cst_42 = arith.constant 3.200000e+01 : f32
    %62 = vector.broadcast %cst_42 : f32 to vector<16x1xf32>
    %63 = arith.divf %61, %62 : vector<16x1xf32>
    %64 = vector.broadcast %63 : vector<16x1xf32> to vector<16x32xf32>
    %65 = arith.subf %57, %64 : vector<16x32xf32>
    %66 = arith.mulf %65, %65 : vector<16x32xf32>
    %cst_43 = arith.constant dense<0.000000e+00> : vector<16xf32>
    %67 = vector.multi_reduction <add>, %66, %cst_43 [1] : vector<16x32xf32> to vector<16xf32>
    %68 = vector.shape_cast %67 : vector<16xf32> to vector<16x1xf32>
    %cst_44 = arith.constant 3.200000e+01 : f32
    %69 = vector.broadcast %cst_44 : f32 to vector<16x1xf32>
    %70 = arith.divf %68, %69 : vector<16x1xf32>
    %71 = vector.broadcast %63 : vector<16x1xf32> to vector<16x32xf32>
    %72 = arith.subf %57, %71 : vector<16x32xf32>
    %cst_45 = arith.constant 9.99999974E-6 : f32
    %73 = vector.broadcast %cst_45 : f32 to vector<16x1xf32>
    %74 = arith.addf %70, %73 : vector<16x1xf32>
    %75 = math.rsqrt %74 : vector<16x1xf32>
    %76 = vector.broadcast %75 : vector<16x1xf32> to vector<16x32xf32>
    %77 = arith.mulf %72, %76 : vector<16x32xf32>
    %78 = vector.broadcast %58 : vector<1x32xf32> to vector<16x32xf32>
    %79 = arith.mulf %77, %78 : vector<16x32xf32>
    %80 = vector.broadcast %59 : vector<1x32xf32> to vector<16x32xf32>
    %81 = arith.addf %79, %80 : vector<16x32xf32>
    %82 = arith.truncf %81 : vector<16x32xf32> to vector<16x32xbf16>
    %cst_46 = arith.constant dense<0.000000e+00> : vector<16x32xf32>
    %83 = tpu.matmul %82, %1, %cst_46 {dimension_numbers = #tpu.dot_dimension_numbers<[1], [0], [0], [1], [0, 0, 1, 1], [], []>} : vector<16x32xbf16>, vector<32x32xbf16>, vector<16x32xf32> -> vector<16x32xf32>
    %cst_47 = arith.constant 0.176776692 : f32
    %84 = vector.broadcast %cst_47 : f32 to vector<16x32xf32>
    %85 = arith.mulf %83, %84 : vector<16x32xf32>
    %86 = vector.shape_cast %85 : vector<16x32xf32> to vector<2x8x32xf32>
    %87 = arith.truncf %86 : vector<2x8x32xf32> to vector<2x8x32xbf16>
    "tpu.trace_start"() <{level = 10 : i32, message = "bsd,btd->bst"}> : () -> ()
    %cst_48 = arith.constant dense<0.000000e+00> : vector<2x8x64xf32>
    %88 = tpu.matmul %87, %51, %cst_48 {dimension_numbers = #tpu.dot_dimension_numbers<[2], [2], [1], [1], [0, 0, 0, 1, 1, 1], [0], [0]>} : vector<2x8x32xbf16>, vector<2x64x32xbf16>, vector<2x8x64xf32> -> vector<2x8x64xf32>
    "tpu.trace_stop"() : () -> ()
    %cst_49 = arith.constant 1.000000e+00 : f32
    %89 = vector.broadcast %cst_49 : f32 to vector<2x8x64xf32>
    %90 = arith.mulf %88, %89 : vector<2x8x64xf32>
    %cst_50 = arith.constant dense<0xFF800000> : vector<2x64xf32>
    %91 = vector.multi_reduction <maximumf>, %90, %cst_50 [1] : vector<2x8x64xf32> to vector<2x64xf32>
    %92 = vector.shape_cast %91 : vector<2x64xf32> to vector<2x1x64xf32>
    %93 = vector.broadcast %92 : vector<2x1x64xf32> to vector<2x8x64xf32>
    %94 = arith.subf %90, %93 : vector<2x8x64xf32>
    %95 = math.exp %94 : vector<2x8x64xf32>
    %cst_51 = arith.constant dense<0.000000e+00> : vector<2x64xf32>
    %96 = vector.multi_reduction <add>, %95, %cst_51 [1] : vector<2x8x64xf32> to vector<2x64xf32>
    %97 = vector.shape_cast %96 : vector<2x64xf32> to vector<2x1x64xf32>
    %98 = tpu.reciprocal %97 {approx = true} : vector<2x1x64xf32> -> vector<2x1x64xf32>
    %99 = vector.broadcast %98 : vector<2x1x64xf32> to vector<2x8x64xf32>
    %100 = arith.mulf %95, %99 : vector<2x8x64xf32>
    %cst_52 = arith.constant 9.99999993E-9 : f32
    %101 = vector.broadcast %cst_52 : f32 to vector<2x8x64xf32>
    %102 = arith.addf %100, %101 : vector<2x8x64xf32>
    %cst_53 = arith.constant dense<0.000000e+00> : vector<2x8xf32>
    %103 = vector.multi_reduction <add>, %102, %cst_53 [2] : vector<2x8x64xf32> to vector<2x8xf32>
    %104 = vector.shape_cast %103 : vector<2x8xf32> to vector<2x8x1xf32>
    %105 = tpu.reciprocal %104 {approx = true} : vector<2x8x1xf32> -> vector<2x8x1xf32>
    %106 = vector.broadcast %105 : vector<2x8x1xf32> to vector<2x8x64xf32>
    %107 = arith.mulf %102, %106 : vector<2x8x64xf32>
    %108 = arith.truncf %107 : vector<2x8x64xf32> to vector<2x8x64xbf16>
    "tpu.trace_start"() <{level = 10 : i32, message = "bst,btd->bsd"}> : () -> ()
    %cst_54 = arith.constant dense<0.000000e+00> : vector<2x8x32xf32>
    %109 = tpu.matmul %108, %55, %cst_54 {dimension_numbers = #tpu.dot_dimension_numbers<[2], [1], [1], [2], [0, 0, 0, 1, 1, 2], [0], [0]>} : vector<2x8x64xbf16>, vector<2x64x32xbf16>, vector<2x8x32xf32> -> vector<2x8x32xf32>
    "tpu.trace_stop"() : () -> ()
    %110 = vector.shape_cast %109 : vector<2x8x32xf32> to vector<16x32xf32>
    %111 = arith.truncf %110 : vector<16x32xf32> to vector<16x32xbf16>
    %cst_55 = arith.constant dense<0.000000e+00> : vector<16x32xf32>
    %112 = tpu.matmul %111, %7, %cst_55 {dimension_numbers = #tpu.dot_dimension_numbers<[1], [0], [0], [1], [0, 0, 1, 1], [], []>} : vector<16x32xbf16>, vector<32x32xbf16>, vector<16x32xf32> -> vector<16x32xf32>
    %c0_56 = arith.constant 0 : index
    %c0_57 = arith.constant 0 : index
    %113 = vector.load %arg18[%c0_56, %c0_57] : memref<1x32xf32, #tpu.memory_space<vmem>>, vector<1x32xf32>
    %114 = vector.broadcast %113 : vector<1x32xf32> to vector<16x32xf32>
    %115 = arith.addf %112, %114 : vector<16x32xf32>
    %116 = arith.truncf %57 : vector<16x32xf32> to vector<16x32xbf16>
    %cst_58 = arith.constant dense<0.000000e+00> : vector<16x32xf32>
    %117 = tpu.matmul %116, %13, %cst_58 {dimension_numbers = #tpu.dot_dimension_numbers<[1], [0], [0], [1], [0, 0, 1, 1], [], []>} : vector<16x32xbf16>, vector<32x32xbf16>, vector<16x32xf32> -> vector<16x32xf32>
    %118 = arith.addf %115, %117 : vector<16x32xf32>
    %c0_59 = arith.constant 0 : index
    %c0_60 = arith.constant 0 : index
    %119 = vector.load %arg21[%c0_59, %c0_60] : memref<1x32xf32, #tpu.memory_space<vmem>>, vector<1x32xf32>
    %120 = vector.broadcast %119 : vector<1x32xf32> to vector<16x32xf32>
    %121 = arith.addf %118, %120 : vector<16x32xf32>
    %122 = arith.negf %121 : vector<16x32xf32>
    %123 = math.exp %122 : vector<16x32xf32>
    %cst_61 = arith.constant 1.000000e+00 : f32
    %124 = vector.broadcast %cst_61 : f32 to vector<16x32xf32>
    %125 = arith.addf %124, %123 : vector<16x32xf32>
    %126 = arith.divf %124, %125 : vector<16x32xf32>
    %127 = arith.truncf %110 : vector<16x32xf32> to vector<16x32xbf16>
    %cst_62 = arith.constant dense<0.000000e+00> : vector<16x32xf32>
    %128 = tpu.matmul %127, %9, %cst_62 {dimension_numbers = #tpu.dot_dimension_numbers<[1], [0], [0], [1], [0, 0, 1, 1], [], []>} : vector<16x32xbf16>, vector<32x32xbf16>, vector<16x32xf32> -> vector<16x32xf32>
    %c0_63 = arith.constant 0 : index
    %c0_64 = arith.constant 0 : index
    %129 = vector.load %arg19[%c0_63, %c0_64] : memref<1x32xf32, #tpu.memory_space<vmem>>, vector<1x32xf32>
    %130 = vector.broadcast %129 : vector<1x32xf32> to vector<16x32xf32>
    %131 = arith.addf %128, %130 : vector<16x32xf32>
    %132 = arith.truncf %57 : vector<16x32xf32> to vector<16x32xbf16>
    %cst_65 = arith.constant dense<0.000000e+00> : vector<16x32xf32>
    %133 = tpu.matmul %132, %15, %cst_65 {dimension_numbers = #tpu.dot_dimension_numbers<[1], [0], [0], [1], [0, 0, 1, 1], [], []>} : vector<16x32xbf16>, vector<32x32xbf16>, vector<16x32xf32> -> vector<16x32xf32>
    %134 = arith.addf %131, %133 : vector<16x32xf32>
    %c0_66 = arith.constant 0 : index
    %c0_67 = arith.constant 0 : index
    %135 = vector.load %arg22[%c0_66, %c0_67] : memref<1x32xf32, #tpu.memory_space<vmem>>, vector<1x32xf32>
    %136 = vector.broadcast %135 : vector<1x32xf32> to vector<16x32xf32>
    %137 = arith.addf %134, %136 : vector<16x32xf32>
    %138 = arith.negf %137 : vector<16x32xf32>
    %139 = math.exp %138 : vector<16x32xf32>
    %cst_68 = arith.constant 1.000000e+00 : f32
    %140 = vector.broadcast %cst_68 : f32 to vector<16x32xf32>
    %141 = arith.addf %140, %139 : vector<16x32xf32>
    %142 = arith.divf %140, %141 : vector<16x32xf32>
    %143 = arith.truncf %110 : vector<16x32xf32> to vector<16x32xbf16>
    %cst_69 = arith.constant dense<0.000000e+00> : vector<16x32xf32>
    %144 = tpu.matmul %143, %11, %cst_69 {dimension_numbers = #tpu.dot_dimension_numbers<[1], [0], [0], [1], [0, 0, 1, 1], [], []>} : vector<16x32xbf16>, vector<32x32xbf16>, vector<16x32xf32> -> vector<16x32xf32>
    %c0_70 = arith.constant 0 : index
    %c0_71 = arith.constant 0 : index
    %145 = vector.load %arg20[%c0_70, %c0_71] : memref<1x32xf32, #tpu.memory_space<vmem>>, vector<1x32xf32>
    %146 = vector.broadcast %145 : vector<1x32xf32> to vector<16x32xf32>
    %147 = arith.addf %144, %146 : vector<16x32xf32>
    %148 = arith.truncf %57 : vector<16x32xf32> to vector<16x32xbf16>
    %cst_72 = arith.constant dense<0.000000e+00> : vector<16x32xf32>
    %149 = tpu.matmul %148, %17, %cst_72 {dimension_numbers = #tpu.dot_dimension_numbers<[1], [0], [0], [1], [0, 0, 1, 1], [], []>} : vector<16x32xbf16>, vector<32x32xbf16>, vector<16x32xf32> -> vector<16x32xf32>
    %c0_73 = arith.constant 0 : index
    %c0_74 = arith.constant 0 : index
    %150 = vector.load %arg23[%c0_73, %c0_74] : memref<1x32xf32, #tpu.memory_space<vmem>>, vector<1x32xf32>
    %151 = vector.broadcast %150 : vector<1x32xf32> to vector<16x32xf32>
    %152 = arith.addf %149, %151 : vector<16x32xf32>
    %153 = arith.mulf %126, %152 : vector<16x32xf32>
    %154 = arith.addf %147, %153 : vector<16x32xf32>
    %155 = math.tanh %154 : vector<16x32xf32>
    %cst_75 = arith.constant 1.000000e+00 : f32
    %156 = vector.broadcast %cst_75 : f32 to vector<16x32xf32>
    %157 = arith.subf %156, %142 : vector<16x32xf32>
    %158 = arith.mulf %157, %155 : vector<16x32xf32>
    %159 = arith.mulf %142, %57 : vector<16x32xf32>
    %160 = arith.addf %158, %159 : vector<16x32xf32>
    %c0_76 = arith.constant 0 : index
    %c0_77 = arith.constant 0 : index
    %161 = vector.load %arg10[%c0_76, %c0_77] : memref<1x32xf32, #tpu.memory_space<vmem>>, vector<1x32xf32>
    %c0_78 = arith.constant 0 : index
    %c0_79 = arith.constant 0 : index
    %162 = vector.load %arg11[%c0_78, %c0_79] : memref<1x32xf32, #tpu.memory_space<vmem>>, vector<1x32xf32>
    %cst_80 = arith.constant dense<0.000000e+00> : vector<16xf32>
    %163 = vector.multi_reduction <add>, %160, %cst_80 [1] : vector<16x32xf32> to vector<16xf32>
    %164 = vector.shape_cast %163 : vector<16xf32> to vector<16x1xf32>
    %cst_81 = arith.constant 3.200000e+01 : f32
    %165 = vector.broadcast %cst_81 : f32 to vector<16x1xf32>
    %166 = arith.divf %164, %165 : vector<16x1xf32>
    %167 = vector.broadcast %166 : vector<16x1xf32> to vector<16x32xf32>
    %168 = arith.subf %160, %167 : vector<16x32xf32>
    %169 = arith.mulf %168, %168 : vector<16x32xf32>
    %cst_82 = arith.constant dense<0.000000e+00> : vector<16xf32>
    %170 = vector.multi_reduction <add>, %169, %cst_82 [1] : vector<16x32xf32> to vector<16xf32>
    %171 = vector.shape_cast %170 : vector<16xf32> to vector<16x1xf32>
    %cst_83 = arith.constant 3.200000e+01 : f32
    %172 = vector.broadcast %cst_83 : f32 to vector<16x1xf32>
    %173 = arith.divf %171, %172 : vector<16x1xf32>
    %174 = vector.broadcast %166 : vector<16x1xf32> to vector<16x32xf32>
    %175 = arith.subf %160, %174 : vector<16x32xf32>
    %cst_84 = arith.constant 9.99999974E-6 : f32
    %176 = vector.broadcast %cst_84 : f32 to vector<16x1xf32>
    %177 = arith.addf %173, %176 : vector<16x1xf32>
    %178 = math.rsqrt %177 : vector<16x1xf32>
    %179 = vector.broadcast %178 : vector<16x1xf32> to vector<16x32xf32>
    %180 = arith.mulf %175, %179 : vector<16x32xf32>
    %181 = vector.broadcast %161 : vector<1x32xf32> to vector<16x32xf32>
    %182 = arith.mulf %180, %181 : vector<16x32xf32>
    %183 = vector.broadcast %162 : vector<1x32xf32> to vector<16x32xf32>
    %184 = arith.addf %182, %183 : vector<16x32xf32>
    %185 = arith.truncf %184 : vector<16x32xf32> to vector<16x32xbf16>
    %cst_85 = arith.constant dense<0.000000e+00> : vector<16x64xf32>
    %186 = tpu.matmul %185, %19, %cst_85 {dimension_numbers = #tpu.dot_dimension_numbers<[1], [0], [0], [1], [0, 0, 1, 1], [], []>} : vector<16x32xbf16>, vector<32x64xbf16>, vector<16x64xf32> -> vector<16x64xf32>
    %c0_86 = arith.constant 0 : index
    %c0_87 = arith.constant 0 : index
    %187 = vector.load %arg25[%c0_86, %c0_87] : memref<1x64xf32, #tpu.memory_space<vmem>>, vector<1x64xf32>
    %188 = vector.broadcast %187 : vector<1x64xf32> to vector<16x64xf32>
    %189 = arith.addf %186, %188 : vector<16x64xf32>
    %cst_88 = arith.constant 0.000000e+00 : f32
    %190 = vector.broadcast %cst_88 : f32 to vector<16x64xf32>
    %191 = arith.maximumf %189, %190 : vector<16x64xf32>
    %192 = arith.truncf %191 : vector<16x64xf32> to vector<16x64xbf16>
    %cst_89 = arith.constant dense<0.000000e+00> : vector<16x32xf32>
    %193 = tpu.matmul %192, %21, %cst_89 {dimension_numbers = #tpu.dot_dimension_numbers<[1], [0], [0], [1], [0, 0, 1, 1], [], []>} : vector<16x64xbf16>, vector<64x32xbf16>, vector<16x32xf32> -> vector<16x32xf32>
    %194 = arith.addf %160, %193 : vector<16x32xf32>
    %c0_90 = arith.constant 0 : index
    %c0_91 = arith.constant 0 : index
    %195 = vector.load %arg27[%c0_90, %c0_91] : memref<1x32xf32, #tpu.memory_space<vmem>>, vector<1x32xf32>
    %196 = vector.broadcast %195 : vector<1x32xf32> to vector<16x32xf32>
    %197 = arith.addf %194, %196 : vector<16x32xf32>
    %c0_92 = arith.constant 0 : index
    %c0_93 = arith.constant 0 : index
    %198 = vector.load %arg8[%c0_92, %c0_93] : memref<1x32xf32, #tpu.memory_space<vmem>>, vector<1x32xf32>
    %c0_94 = arith.constant 0 : index
    %c0_95 = arith.constant 0 : index
    %199 = vector.load %arg9[%c0_94, %c0_95] : memref<1x32xf32, #tpu.memory_space<vmem>>, vector<1x32xf32>
    %cst_96 = arith.constant dense<0.000000e+00> : vector<16xf32>
    %200 = vector.multi_reduction <add>, %197, %cst_96 [1] : vector<16x32xf32> to vector<16xf32>
    %201 = vector.shape_cast %200 : vector<16xf32> to vector<16x1xf32>
    %cst_97 = arith.constant 3.200000e+01 : f32
    %202 = vector.broadcast %cst_97 : f32 to vector<16x1xf32>
    %203 = arith.divf %201, %202 : vector<16x1xf32>
    %204 = vector.broadcast %203 : vector<16x1xf32> to vector<16x32xf32>
    %205 = arith.subf %197, %204 : vector<16x32xf32>
    %206 = arith.mulf %205, %205 : vector<16x32xf32>
    %cst_98 = arith.constant dense<0.000000e+00> : vector<16xf32>
    %207 = vector.multi_reduction <add>, %206, %cst_98 [1] : vector<16x32xf32> to vector<16xf32>
    %208 = vector.shape_cast %207 : vector<16xf32> to vector<16x1xf32>
    %cst_99 = arith.constant 3.200000e+01 : f32
    %209 = vector.broadcast %cst_99 : f32 to vector<16x1xf32>
    %210 = arith.divf %208, %209 : vector<16x1xf32>
    %211 = vector.broadcast %203 : vector<16x1xf32> to vector<16x32xf32>
    %212 = arith.subf %197, %211 : vector<16x32xf32>
    %cst_100 = arith.constant 9.99999974E-6 : f32
    %213 = vector.broadcast %cst_100 : f32 to vector<16x1xf32>
    %214 = arith.addf %210, %213 : vector<16x1xf32>
    %215 = math.rsqrt %214 : vector<16x1xf32>
    %216 = vector.broadcast %215 : vector<16x1xf32> to vector<16x32xf32>
    %217 = arith.mulf %212, %216 : vector<16x32xf32>
    %218 = vector.broadcast %198 : vector<1x32xf32> to vector<16x32xf32>
    %219 = arith.mulf %217, %218 : vector<16x32xf32>
    %220 = vector.broadcast %199 : vector<1x32xf32> to vector<16x32xf32>
    %221 = arith.addf %219, %220 : vector<16x32xf32>
    %222 = arith.truncf %221 : vector<16x32xf32> to vector<16x32xbf16>
    %cst_101 = arith.constant dense<0.000000e+00> : vector<16x32xf32>
    %223 = tpu.matmul %222, %1, %cst_101 {dimension_numbers = #tpu.dot_dimension_numbers<[1], [0], [0], [1], [0, 0, 1, 1], [], []>} : vector<16x32xbf16>, vector<32x32xbf16>, vector<16x32xf32> -> vector<16x32xf32>
    %cst_102 = arith.constant 0.176776692 : f32
    %224 = vector.broadcast %cst_102 : f32 to vector<16x32xf32>
    %225 = arith.mulf %223, %224 : vector<16x32xf32>
    %226 = vector.shape_cast %225 : vector<16x32xf32> to vector<2x8x32xf32>
    %227 = arith.truncf %226 : vector<2x8x32xf32> to vector<2x8x32xbf16>
    "tpu.trace_start"() <{level = 10 : i32, message = "bsd,btd->bst"}> : () -> ()
    %cst_103 = arith.constant dense<0.000000e+00> : vector<2x8x64xf32>
    %228 = tpu.matmul %227, %51, %cst_103 {dimension_numbers = #tpu.dot_dimension_numbers<[2], [2], [1], [1], [0, 0, 0, 1, 1, 1], [0], [0]>} : vector<2x8x32xbf16>, vector<2x64x32xbf16>, vector<2x8x64xf32> -> vector<2x8x64xf32>
    "tpu.trace_stop"() : () -> ()
    %cst_104 = arith.constant 1.000000e+00 : f32
    %229 = vector.broadcast %cst_104 : f32 to vector<2x8x64xf32>
    %230 = arith.mulf %228, %229 : vector<2x8x64xf32>
    %cst_105 = arith.constant dense<0xFF800000> : vector<2x64xf32>
    %231 = vector.multi_reduction <maximumf>, %230, %cst_105 [1] : vector<2x8x64xf32> to vector<2x64xf32>
    %232 = vector.shape_cast %231 : vector<2x64xf32> to vector<2x1x64xf32>
    %233 = vector.broadcast %232 : vector<2x1x64xf32> to vector<2x8x64xf32>
    %234 = arith.subf %230, %233 : vector<2x8x64xf32>
    %235 = math.exp %234 : vector<2x8x64xf32>
    %cst_106 = arith.constant dense<0.000000e+00> : vector<2x64xf32>
    %236 = vector.multi_reduction <add>, %235, %cst_106 [1] : vector<2x8x64xf32> to vector<2x64xf32>
    %237 = vector.shape_cast %236 : vector<2x64xf32> to vector<2x1x64xf32>
    %238 = tpu.reciprocal %237 {approx = true} : vector<2x1x64xf32> -> vector<2x1x64xf32>
    %239 = vector.broadcast %238 : vector<2x1x64xf32> to vector<2x8x64xf32>
    %240 = arith.mulf %235, %239 : vector<2x8x64xf32>
    %cst_107 = arith.constant 9.99999993E-9 : f32
    %241 = vector.broadcast %cst_107 : f32 to vector<2x8x64xf32>
    %242 = arith.addf %240, %241 : vector<2x8x64xf32>
    %cst_108 = arith.constant dense<0.000000e+00> : vector<2x8xf32>
    %243 = vector.multi_reduction <add>, %242, %cst_108 [2] : vector<2x8x64xf32> to vector<2x8xf32>
    %244 = vector.shape_cast %243 : vector<2x8xf32> to vector<2x8x1xf32>
    %245 = tpu.reciprocal %244 {approx = true} : vector<2x8x1xf32> -> vector<2x8x1xf32>
    %246 = vector.broadcast %245 : vector<2x8x1xf32> to vector<2x8x64xf32>
    %247 = arith.mulf %242, %246 : vector<2x8x64xf32>
    %248 = arith.truncf %247 : vector<2x8x64xf32> to vector<2x8x64xbf16>
    "tpu.trace_start"() <{level = 10 : i32, message = "bst,btd->bsd"}> : () -> ()
    %cst_109 = arith.constant dense<0.000000e+00> : vector<2x8x32xf32>
    %249 = tpu.matmul %248, %55, %cst_109 {dimension_numbers = #tpu.dot_dimension_numbers<[2], [1], [1], [2], [0, 0, 0, 1, 1, 2], [0], [0]>} : vector<2x8x64xbf16>, vector<2x64x32xbf16>, vector<2x8x32xf32> -> vector<2x8x32xf32>
    "tpu.trace_stop"() : () -> ()
    %250 = vector.shape_cast %249 : vector<2x8x32xf32> to vector<16x32xf32>
    %251 = arith.truncf %250 : vector<16x32xf32> to vector<16x32xbf16>
    %cst_110 = arith.constant dense<0.000000e+00> : vector<16x32xf32>
    %252 = tpu.matmul %251, %7, %cst_110 {dimension_numbers = #tpu.dot_dimension_numbers<[1], [0], [0], [1], [0, 0, 1, 1], [], []>} : vector<16x32xbf16>, vector<32x32xbf16>, vector<16x32xf32> -> vector<16x32xf32>
    %c0_111 = arith.constant 0 : index
    %c0_112 = arith.constant 0 : index
    %253 = vector.load %arg18[%c0_111, %c0_112] : memref<1x32xf32, #tpu.memory_space<vmem>>, vector<1x32xf32>
    %254 = vector.broadcast %253 : vector<1x32xf32> to vector<16x32xf32>
    %255 = arith.addf %252, %254 : vector<16x32xf32>
    %256 = arith.truncf %197 : vector<16x32xf32> to vector<16x32xbf16>
    %cst_113 = arith.constant dense<0.000000e+00> : vector<16x32xf32>
    %257 = tpu.matmul %256, %13, %cst_113 {dimension_numbers = #tpu.dot_dimension_numbers<[1], [0], [0], [1], [0, 0, 1, 1], [], []>} : vector<16x32xbf16>, vector<32x32xbf16>, vector<16x32xf32> -> vector<16x32xf32>
    %258 = arith.addf %255, %257 : vector<16x32xf32>
    %c0_114 = arith.constant 0 : index
    %c0_115 = arith.constant 0 : index
    %259 = vector.load %arg21[%c0_114, %c0_115] : memref<1x32xf32, #tpu.memory_space<vmem>>, vector<1x32xf32>
    %260 = vector.broadcast %259 : vector<1x32xf32> to vector<16x32xf32>
    %261 = arith.addf %258, %260 : vector<16x32xf32>
    %262 = arith.negf %261 : vector<16x32xf32>
    %263 = math.exp %262 : vector<16x32xf32>
    %cst_116 = arith.constant 1.000000e+00 : f32
    %264 = vector.broadcast %cst_116 : f32 to vector<16x32xf32>
    %265 = arith.addf %264, %263 : vector<16x32xf32>
    %266 = arith.divf %264, %265 : vector<16x32xf32>
    %267 = arith.truncf %250 : vector<16x32xf32> to vector<16x32xbf16>
    %cst_117 = arith.constant dense<0.000000e+00> : vector<16x32xf32>
    %268 = tpu.matmul %267, %9, %cst_117 {dimension_numbers = #tpu.dot_dimension_numbers<[1], [0], [0], [1], [0, 0, 1, 1], [], []>} : vector<16x32xbf16>, vector<32x32xbf16>, vector<16x32xf32> -> vector<16x32xf32>
    %c0_118 = arith.constant 0 : index
    %c0_119 = arith.constant 0 : index
    %269 = vector.load %arg19[%c0_118, %c0_119] : memref<1x32xf32, #tpu.memory_space<vmem>>, vector<1x32xf32>
    %270 = vector.broadcast %269 : vector<1x32xf32> to vector<16x32xf32>
    %271 = arith.addf %268, %270 : vector<16x32xf32>
    %272 = arith.truncf %197 : vector<16x32xf32> to vector<16x32xbf16>
    %cst_120 = arith.constant dense<0.000000e+00> : vector<16x32xf32>
    %273 = tpu.matmul %272, %15, %cst_120 {dimension_numbers = #tpu.dot_dimension_numbers<[1], [0], [0], [1], [0, 0, 1, 1], [], []>} : vector<16x32xbf16>, vector<32x32xbf16>, vector<16x32xf32> -> vector<16x32xf32>
    %274 = arith.addf %271, %273 : vector<16x32xf32>
    %c0_121 = arith.constant 0 : index
    %c0_122 = arith.constant 0 : index
    %275 = vector.load %arg22[%c0_121, %c0_122] : memref<1x32xf32, #tpu.memory_space<vmem>>, vector<1x32xf32>
    %276 = vector.broadcast %275 : vector<1x32xf32> to vector<16x32xf32>
    %277 = arith.addf %274, %276 : vector<16x32xf32>
    %278 = arith.negf %277 : vector<16x32xf32>
    %279 = math.exp %278 : vector<16x32xf32>
    %cst_123 = arith.constant 1.000000e+00 : f32
    %280 = vector.broadcast %cst_123 : f32 to vector<16x32xf32>
    %281 = arith.addf %280, %279 : vector<16x32xf32>
    %282 = arith.divf %280, %281 : vector<16x32xf32>
    %283 = arith.truncf %250 : vector<16x32xf32> to vector<16x32xbf16>
    %cst_124 = arith.constant dense<0.000000e+00> : vector<16x32xf32>
    %284 = tpu.matmul %283, %11, %cst_124 {dimension_numbers = #tpu.dot_dimension_numbers<[1], [0], [0], [1], [0, 0, 1, 1], [], []>} : vector<16x32xbf16>, vector<32x32xbf16>, vector<16x32xf32> -> vector<16x32xf32>
    %c0_125 = arith.constant 0 : index
    %c0_126 = arith.constant 0 : index
    %285 = vector.load %arg20[%c0_125, %c0_126] : memref<1x32xf32, #tpu.memory_space<vmem>>, vector<1x32xf32>
    %286 = vector.broadcast %285 : vector<1x32xf32> to vector<16x32xf32>
    %287 = arith.addf %284, %286 : vector<16x32xf32>
    %288 = arith.truncf %197 : vector<16x32xf32> to vector<16x32xbf16>
    %cst_127 = arith.constant dense<0.000000e+00> : vector<16x32xf32>
    %289 = tpu.matmul %288, %17, %cst_127 {dimension_numbers = #tpu.dot_dimension_numbers<[1], [0], [0], [1], [0, 0, 1, 1], [], []>} : vector<16x32xbf16>, vector<32x32xbf16>, vector<16x32xf32> -> vector<16x32xf32>
    %c0_128 = arith.constant 0 : index
    %c0_129 = arith.constant 0 : index
    %290 = vector.load %arg23[%c0_128, %c0_129] : memref<1x32xf32, #tpu.memory_space<vmem>>, vector<1x32xf32>
    %291 = vector.broadcast %290 : vector<1x32xf32> to vector<16x32xf32>
    %292 = arith.addf %289, %291 : vector<16x32xf32>
    %293 = arith.mulf %266, %292 : vector<16x32xf32>
    %294 = arith.addf %287, %293 : vector<16x32xf32>
    %295 = math.tanh %294 : vector<16x32xf32>
    %cst_130 = arith.constant 1.000000e+00 : f32
    %296 = vector.broadcast %cst_130 : f32 to vector<16x32xf32>
    %297 = arith.subf %296, %282 : vector<16x32xf32>
    %298 = arith.mulf %297, %295 : vector<16x32xf32>
    %299 = arith.mulf %282, %197 : vector<16x32xf32>
    %300 = arith.addf %298, %299 : vector<16x32xf32>
    %c0_131 = arith.constant 0 : index
    %c0_132 = arith.constant 0 : index
    %301 = vector.load %arg10[%c0_131, %c0_132] : memref<1x32xf32, #tpu.memory_space<vmem>>, vector<1x32xf32>
    %c0_133 = arith.constant 0 : index
    %c0_134 = arith.constant 0 : index
    %302 = vector.load %arg11[%c0_133, %c0_134] : memref<1x32xf32, #tpu.memory_space<vmem>>, vector<1x32xf32>
    %cst_135 = arith.constant dense<0.000000e+00> : vector<16xf32>
    %303 = vector.multi_reduction <add>, %300, %cst_135 [1] : vector<16x32xf32> to vector<16xf32>
    %304 = vector.shape_cast %303 : vector<16xf32> to vector<16x1xf32>
    %cst_136 = arith.constant 3.200000e+01 : f32
    %305 = vector.broadcast %cst_136 : f32 to vector<16x1xf32>
    %306 = arith.divf %304, %305 : vector<16x1xf32>
    %307 = vector.broadcast %306 : vector<16x1xf32> to vector<16x32xf32>
    %308 = arith.subf %300, %307 : vector<16x32xf32>
    %309 = arith.mulf %308, %308 : vector<16x32xf32>
    %cst_137 = arith.constant dense<0.000000e+00> : vector<16xf32>
    %310 = vector.multi_reduction <add>, %309, %cst_137 [1] : vector<16x32xf32> to vector<16xf32>
    %311 = vector.shape_cast %310 : vector<16xf32> to vector<16x1xf32>
    %cst_138 = arith.constant 3.200000e+01 : f32
    %312 = vector.broadcast %cst_138 : f32 to vector<16x1xf32>
    %313 = arith.divf %311, %312 : vector<16x1xf32>
    %314 = vector.broadcast %306 : vector<16x1xf32> to vector<16x32xf32>
    %315 = arith.subf %300, %314 : vector<16x32xf32>
    %cst_139 = arith.constant 9.99999974E-6 : f32
    %316 = vector.broadcast %cst_139 : f32 to vector<16x1xf32>
    %317 = arith.addf %313, %316 : vector<16x1xf32>
    %318 = math.rsqrt %317 : vector<16x1xf32>
    %319 = vector.broadcast %318 : vector<16x1xf32> to vector<16x32xf32>
    %320 = arith.mulf %315, %319 : vector<16x32xf32>
    %321 = vector.broadcast %301 : vector<1x32xf32> to vector<16x32xf32>
    %322 = arith.mulf %320, %321 : vector<16x32xf32>
    %323 = vector.broadcast %302 : vector<1x32xf32> to vector<16x32xf32>
    %324 = arith.addf %322, %323 : vector<16x32xf32>
    %325 = arith.truncf %324 : vector<16x32xf32> to vector<16x32xbf16>
    %cst_140 = arith.constant dense<0.000000e+00> : vector<16x64xf32>
    %326 = tpu.matmul %325, %19, %cst_140 {dimension_numbers = #tpu.dot_dimension_numbers<[1], [0], [0], [1], [0, 0, 1, 1], [], []>} : vector<16x32xbf16>, vector<32x64xbf16>, vector<16x64xf32> -> vector<16x64xf32>
    %c0_141 = arith.constant 0 : index
    %c0_142 = arith.constant 0 : index
    %327 = vector.load %arg25[%c0_141, %c0_142] : memref<1x64xf32, #tpu.memory_space<vmem>>, vector<1x64xf32>
    %328 = vector.broadcast %327 : vector<1x64xf32> to vector<16x64xf32>
    %329 = arith.addf %326, %328 : vector<16x64xf32>
    %cst_143 = arith.constant 0.000000e+00 : f32
    %330 = vector.broadcast %cst_143 : f32 to vector<16x64xf32>
    %331 = arith.maximumf %329, %330 : vector<16x64xf32>
    %332 = arith.truncf %331 : vector<16x64xf32> to vector<16x64xbf16>
    %cst_144 = arith.constant dense<0.000000e+00> : vector<16x32xf32>
    %333 = tpu.matmul %332, %21, %cst_144 {dimension_numbers = #tpu.dot_dimension_numbers<[1], [0], [0], [1], [0, 0, 1, 1], [], []>} : vector<16x64xbf16>, vector<64x32xbf16>, vector<16x32xf32> -> vector<16x32xf32>
    %334 = arith.addf %300, %333 : vector<16x32xf32>
    %c0_145 = arith.constant 0 : index
    %c0_146 = arith.constant 0 : index
    %335 = vector.load %arg27[%c0_145, %c0_146] : memref<1x32xf32, #tpu.memory_space<vmem>>, vector<1x32xf32>
    %336 = vector.broadcast %335 : vector<1x32xf32> to vector<16x32xf32>
    %337 = arith.addf %334, %336 : vector<16x32xf32>
    %c0_147 = arith.constant 0 : index
    %c0_148 = arith.constant 0 : index
    %338 = vector.load %arg8[%c0_147, %c0_148] : memref<1x32xf32, #tpu.memory_space<vmem>>, vector<1x32xf32>
    %c0_149 = arith.constant 0 : index
    %c0_150 = arith.constant 0 : index
    %339 = vector.load %arg9[%c0_149, %c0_150] : memref<1x32xf32, #tpu.memory_space<vmem>>, vector<1x32xf32>
    %cst_151 = arith.constant dense<0.000000e+00> : vector<16xf32>
    %340 = vector.multi_reduction <add>, %337, %cst_151 [1] : vector<16x32xf32> to vector<16xf32>
    %341 = vector.shape_cast %340 : vector<16xf32> to vector<16x1xf32>
    %cst_152 = arith.constant 3.200000e+01 : f32
    %342 = vector.broadcast %cst_152 : f32 to vector<16x1xf32>
    %343 = arith.divf %341, %342 : vector<16x1xf32>
    %344 = vector.broadcast %343 : vector<16x1xf32> to vector<16x32xf32>
    %345 = arith.subf %337, %344 : vector<16x32xf32>
    %346 = arith.mulf %345, %345 : vector<16x32xf32>
    %cst_153 = arith.constant dense<0.000000e+00> : vector<16xf32>
    %347 = vector.multi_reduction <add>, %346, %cst_153 [1] : vector<16x32xf32> to vector<16xf32>
    %348 = vector.shape_cast %347 : vector<16xf32> to vector<16x1xf32>
    %cst_154 = arith.constant 3.200000e+01 : f32
    %349 = vector.broadcast %cst_154 : f32 to vector<16x1xf32>
    %350 = arith.divf %348, %349 : vector<16x1xf32>
    %351 = vector.broadcast %343 : vector<16x1xf32> to vector<16x32xf32>
    %352 = arith.subf %337, %351 : vector<16x32xf32>
    %cst_155 = arith.constant 9.99999974E-6 : f32
    %353 = vector.broadcast %cst_155 : f32 to vector<16x1xf32>
    %354 = arith.addf %350, %353 : vector<16x1xf32>
    %355 = math.rsqrt %354 : vector<16x1xf32>
    %356 = vector.broadcast %355 : vector<16x1xf32> to vector<16x32xf32>
    %357 = arith.mulf %352, %356 : vector<16x32xf32>
    %358 = vector.broadcast %338 : vector<1x32xf32> to vector<16x32xf32>
    %359 = arith.mulf %357, %358 : vector<16x32xf32>
    %360 = vector.broadcast %339 : vector<1x32xf32> to vector<16x32xf32>
    %361 = arith.addf %359, %360 : vector<16x32xf32>
    %362 = arith.truncf %361 : vector<16x32xf32> to vector<16x32xbf16>
    %cst_156 = arith.constant dense<0.000000e+00> : vector<16x32xf32>
    %363 = tpu.matmul %362, %1, %cst_156 {dimension_numbers = #tpu.dot_dimension_numbers<[1], [0], [0], [1], [0, 0, 1, 1], [], []>} : vector<16x32xbf16>, vector<32x32xbf16>, vector<16x32xf32> -> vector<16x32xf32>
    %cst_157 = arith.constant 0.176776692 : f32
    %364 = vector.broadcast %cst_157 : f32 to vector<16x32xf32>
    %365 = arith.mulf %363, %364 : vector<16x32xf32>
    %366 = vector.shape_cast %365 : vector<16x32xf32> to vector<2x8x32xf32>
    %367 = arith.truncf %366 : vector<2x8x32xf32> to vector<2x8x32xbf16>
    "tpu.trace_start"() <{level = 10 : i32, message = "bsd,btd->bst"}> : () -> ()
    %cst_158 = arith.constant dense<0.000000e+00> : vector<2x8x64xf32>
    %368 = tpu.matmul %367, %51, %cst_158 {dimension_numbers = #tpu.dot_dimension_numbers<[2], [2], [1], [1], [0, 0, 0, 1, 1, 1], [0], [0]>} : vector<2x8x32xbf16>, vector<2x64x32xbf16>, vector<2x8x64xf32> -> vector<2x8x64xf32>
    "tpu.trace_stop"() : () -> ()
    %cst_159 = arith.constant 1.000000e+00 : f32
    %369 = vector.broadcast %cst_159 : f32 to vector<2x8x64xf32>
    %370 = arith.mulf %368, %369 : vector<2x8x64xf32>
    %cst_160 = arith.constant dense<0xFF800000> : vector<2x64xf32>
    %371 = vector.multi_reduction <maximumf>, %370, %cst_160 [1] : vector<2x8x64xf32> to vector<2x64xf32>
    %372 = vector.shape_cast %371 : vector<2x64xf32> to vector<2x1x64xf32>
    %373 = vector.broadcast %372 : vector<2x1x64xf32> to vector<2x8x64xf32>
    %374 = arith.subf %370, %373 : vector<2x8x64xf32>
    %375 = math.exp %374 : vector<2x8x64xf32>
    %cst_161 = arith.constant dense<0.000000e+00> : vector<2x64xf32>
    %376 = vector.multi_reduction <add>, %375, %cst_161 [1] : vector<2x8x64xf32> to vector<2x64xf32>
    %377 = vector.shape_cast %376 : vector<2x64xf32> to vector<2x1x64xf32>
    %378 = tpu.reciprocal %377 {approx = true} : vector<2x1x64xf32> -> vector<2x1x64xf32>
    %379 = vector.broadcast %378 : vector<2x1x64xf32> to vector<2x8x64xf32>
    %380 = arith.mulf %375, %379 : vector<2x8x64xf32>
    %cst_162 = arith.constant 9.99999993E-9 : f32
    %381 = vector.broadcast %cst_162 : f32 to vector<2x8x64xf32>
    %382 = arith.addf %380, %381 : vector<2x8x64xf32>
    %cst_163 = arith.constant dense<0.000000e+00> : vector<2x8xf32>
    %383 = vector.multi_reduction <add>, %382, %cst_163 [2] : vector<2x8x64xf32> to vector<2x8xf32>
    %384 = vector.shape_cast %383 : vector<2x8xf32> to vector<2x8x1xf32>
    %385 = tpu.reciprocal %384 {approx = true} : vector<2x8x1xf32> -> vector<2x8x1xf32>
    %386 = vector.broadcast %385 : vector<2x8x1xf32> to vector<2x8x64xf32>
    %387 = arith.mulf %382, %386 : vector<2x8x64xf32>
    %388 = arith.truncf %387 : vector<2x8x64xf32> to vector<2x8x64xbf16>
    "tpu.trace_start"() <{level = 10 : i32, message = "bst,btd->bsd"}> : () -> ()
    %cst_164 = arith.constant dense<0.000000e+00> : vector<2x8x32xf32>
    %389 = tpu.matmul %388, %55, %cst_164 {dimension_numbers = #tpu.dot_dimension_numbers<[2], [1], [1], [2], [0, 0, 0, 1, 1, 2], [0], [0]>} : vector<2x8x64xbf16>, vector<2x64x32xbf16>, vector<2x8x32xf32> -> vector<2x8x32xf32>
    "tpu.trace_stop"() : () -> ()
    %390 = vector.shape_cast %389 : vector<2x8x32xf32> to vector<16x32xf32>
    %391 = arith.truncf %390 : vector<16x32xf32> to vector<16x32xbf16>
    %cst_165 = arith.constant dense<0.000000e+00> : vector<16x32xf32>
    %392 = tpu.matmul %391, %7, %cst_165 {dimension_numbers = #tpu.dot_dimension_numbers<[1], [0], [0], [1], [0, 0, 1, 1], [], []>} : vector<16x32xbf16>, vector<32x32xbf16>, vector<16x32xf32> -> vector<16x32xf32>
    %c0_166 = arith.constant 0 : index
    %c0_167 = arith.constant 0 : index
    %393 = vector.load %arg18[%c0_166, %c0_167] : memref<1x32xf32, #tpu.memory_space<vmem>>, vector<1x32xf32>
    %394 = vector.broadcast %393 : vector<1x32xf32> to vector<16x32xf32>
    %395 = arith.addf %392, %394 : vector<16x32xf32>
    %396 = arith.truncf %337 : vector<16x32xf32> to vector<16x32xbf16>
    %cst_168 = arith.constant dense<0.000000e+00> : vector<16x32xf32>
    %397 = tpu.matmul %396, %13, %cst_168 {dimension_numbers = #tpu.dot_dimension_numbers<[1], [0], [0], [1], [0, 0, 1, 1], [], []>} : vector<16x32xbf16>, vector<32x32xbf16>, vector<16x32xf32> -> vector<16x32xf32>
    %398 = arith.addf %395, %397 : vector<16x32xf32>
    %c0_169 = arith.constant 0 : index
    %c0_170 = arith.constant 0 : index
    %399 = vector.load %arg21[%c0_169, %c0_170] : memref<1x32xf32, #tpu.memory_space<vmem>>, vector<1x32xf32>
    %400 = vector.broadcast %399 : vector<1x32xf32> to vector<16x32xf32>
    %401 = arith.addf %398, %400 : vector<16x32xf32>
    %402 = arith.negf %401 : vector<16x32xf32>
    %403 = math.exp %402 : vector<16x32xf32>
    %cst_171 = arith.constant 1.000000e+00 : f32
    %404 = vector.broadcast %cst_171 : f32 to vector<16x32xf32>
    %405 = arith.addf %404, %403 : vector<16x32xf32>
    %406 = arith.divf %404, %405 : vector<16x32xf32>
    %407 = arith.truncf %390 : vector<16x32xf32> to vector<16x32xbf16>
    %cst_172 = arith.constant dense<0.000000e+00> : vector<16x32xf32>
    %408 = tpu.matmul %407, %9, %cst_172 {dimension_numbers = #tpu.dot_dimension_numbers<[1], [0], [0], [1], [0, 0, 1, 1], [], []>} : vector<16x32xbf16>, vector<32x32xbf16>, vector<16x32xf32> -> vector<16x32xf32>
    %c0_173 = arith.constant 0 : index
    %c0_174 = arith.constant 0 : index
    %409 = vector.load %arg19[%c0_173, %c0_174] : memref<1x32xf32, #tpu.memory_space<vmem>>, vector<1x32xf32>
    %410 = vector.broadcast %409 : vector<1x32xf32> to vector<16x32xf32>
    %411 = arith.addf %408, %410 : vector<16x32xf32>
    %412 = arith.truncf %337 : vector<16x32xf32> to vector<16x32xbf16>
    %cst_175 = arith.constant dense<0.000000e+00> : vector<16x32xf32>
    %413 = tpu.matmul %412, %15, %cst_175 {dimension_numbers = #tpu.dot_dimension_numbers<[1], [0], [0], [1], [0, 0, 1, 1], [], []>} : vector<16x32xbf16>, vector<32x32xbf16>, vector<16x32xf32> -> vector<16x32xf32>
    %414 = arith.addf %411, %413 : vector<16x32xf32>
    %c0_176 = arith.constant 0 : index
    %c0_177 = arith.constant 0 : index
    %415 = vector.load %arg22[%c0_176, %c0_177] : memref<1x32xf32, #tpu.memory_space<vmem>>, vector<1x32xf32>
    %416 = vector.broadcast %415 : vector<1x32xf32> to vector<16x32xf32>
    %417 = arith.addf %414, %416 : vector<16x32xf32>
    %418 = arith.negf %417 : vector<16x32xf32>
    %419 = math.exp %418 : vector<16x32xf32>
    %cst_178 = arith.constant 1.000000e+00 : f32
    %420 = vector.broadcast %cst_178 : f32 to vector<16x32xf32>
    %421 = arith.addf %420, %419 : vector<16x32xf32>
    %422 = arith.divf %420, %421 : vector<16x32xf32>
    %423 = arith.truncf %390 : vector<16x32xf32> to vector<16x32xbf16>
    %cst_179 = arith.constant dense<0.000000e+00> : vector<16x32xf32>
    %424 = tpu.matmul %423, %11, %cst_179 {dimension_numbers = #tpu.dot_dimension_numbers<[1], [0], [0], [1], [0, 0, 1, 1], [], []>} : vector<16x32xbf16>, vector<32x32xbf16>, vector<16x32xf32> -> vector<16x32xf32>
    %c0_180 = arith.constant 0 : index
    %c0_181 = arith.constant 0 : index
    %425 = vector.load %arg20[%c0_180, %c0_181] : memref<1x32xf32, #tpu.memory_space<vmem>>, vector<1x32xf32>
    %426 = vector.broadcast %425 : vector<1x32xf32> to vector<16x32xf32>
    %427 = arith.addf %424, %426 : vector<16x32xf32>
    %428 = arith.truncf %337 : vector<16x32xf32> to vector<16x32xbf16>
    %cst_182 = arith.constant dense<0.000000e+00> : vector<16x32xf32>
    %429 = tpu.matmul %428, %17, %cst_182 {dimension_numbers = #tpu.dot_dimension_numbers<[1], [0], [0], [1], [0, 0, 1, 1], [], []>} : vector<16x32xbf16>, vector<32x32xbf16>, vector<16x32xf32> -> vector<16x32xf32>
    %c0_183 = arith.constant 0 : index
    %c0_184 = arith.constant 0 : index
    %430 = vector.load %arg23[%c0_183, %c0_184] : memref<1x32xf32, #tpu.memory_space<vmem>>, vector<1x32xf32>
    %431 = vector.broadcast %430 : vector<1x32xf32> to vector<16x32xf32>
    %432 = arith.addf %429, %431 : vector<16x32xf32>
    %433 = arith.mulf %406, %432 : vector<16x32xf32>
    %434 = arith.addf %427, %433 : vector<16x32xf32>
    %435 = math.tanh %434 : vector<16x32xf32>
    %cst_185 = arith.constant 1.000000e+00 : f32
    %436 = vector.broadcast %cst_185 : f32 to vector<16x32xf32>
    %437 = arith.subf %436, %422 : vector<16x32xf32>
    %438 = arith.mulf %437, %435 : vector<16x32xf32>
    %439 = arith.mulf %422, %337 : vector<16x32xf32>
    %440 = arith.addf %438, %439 : vector<16x32xf32>
    %c0_186 = arith.constant 0 : index
    %c0_187 = arith.constant 0 : index
    %441 = vector.load %arg10[%c0_186, %c0_187] : memref<1x32xf32, #tpu.memory_space<vmem>>, vector<1x32xf32>
    %c0_188 = arith.constant 0 : index
    %c0_189 = arith.constant 0 : index
    %442 = vector.load %arg11[%c0_188, %c0_189] : memref<1x32xf32, #tpu.memory_space<vmem>>, vector<1x32xf32>
    %cst_190 = arith.constant dense<0.000000e+00> : vector<16xf32>
    %443 = vector.multi_reduction <add>, %440, %cst_190 [1] : vector<16x32xf32> to vector<16xf32>
    %444 = vector.shape_cast %443 : vector<16xf32> to vector<16x1xf32>
    %cst_191 = arith.constant 3.200000e+01 : f32
    %445 = vector.broadcast %cst_191 : f32 to vector<16x1xf32>
    %446 = arith.divf %444, %445 : vector<16x1xf32>
    %447 = vector.broadcast %446 : vector<16x1xf32> to vector<16x32xf32>
    %448 = arith.subf %440, %447 : vector<16x32xf32>
    %449 = arith.mulf %448, %448 : vector<16x32xf32>
    %cst_192 = arith.constant dense<0.000000e+00> : vector<16xf32>
    %450 = vector.multi_reduction <add>, %449, %cst_192 [1] : vector<16x32xf32> to vector<16xf32>
    %451 = vector.shape_cast %450 : vector<16xf32> to vector<16x1xf32>
    %cst_193 = arith.constant 3.200000e+01 : f32
    %452 = vector.broadcast %cst_193 : f32 to vector<16x1xf32>
    %453 = arith.divf %451, %452 : vector<16x1xf32>
    %454 = vector.broadcast %446 : vector<16x1xf32> to vector<16x32xf32>
    %455 = arith.subf %440, %454 : vector<16x32xf32>
    %cst_194 = arith.constant 9.99999974E-6 : f32
    %456 = vector.broadcast %cst_194 : f32 to vector<16x1xf32>
    %457 = arith.addf %453, %456 : vector<16x1xf32>
    %458 = math.rsqrt %457 : vector<16x1xf32>
    %459 = vector.broadcast %458 : vector<16x1xf32> to vector<16x32xf32>
    %460 = arith.mulf %455, %459 : vector<16x32xf32>
    %461 = vector.broadcast %441 : vector<1x32xf32> to vector<16x32xf32>
    %462 = arith.mulf %460, %461 : vector<16x32xf32>
    %463 = vector.broadcast %442 : vector<1x32xf32> to vector<16x32xf32>
    %464 = arith.addf %462, %463 : vector<16x32xf32>
    %465 = arith.truncf %464 : vector<16x32xf32> to vector<16x32xbf16>
    %cst_195 = arith.constant dense<0.000000e+00> : vector<16x64xf32>
    %466 = tpu.matmul %465, %19, %cst_195 {dimension_numbers = #tpu.dot_dimension_numbers<[1], [0], [0], [1], [0, 0, 1, 1], [], []>} : vector<16x32xbf16>, vector<32x64xbf16>, vector<16x64xf32> -> vector<16x64xf32>
    %c0_196 = arith.constant 0 : index
    %c0_197 = arith.constant 0 : index
    %467 = vector.load %arg25[%c0_196, %c0_197] : memref<1x64xf32, #tpu.memory_space<vmem>>, vector<1x64xf32>
    %468 = vector.broadcast %467 : vector<1x64xf32> to vector<16x64xf32>
    %469 = arith.addf %466, %468 : vector<16x64xf32>
    %cst_198 = arith.constant 0.000000e+00 : f32
    %470 = vector.broadcast %cst_198 : f32 to vector<16x64xf32>
    %471 = arith.maximumf %469, %470 : vector<16x64xf32>
    %472 = arith.truncf %471 : vector<16x64xf32> to vector<16x64xbf16>
    %cst_199 = arith.constant dense<0.000000e+00> : vector<16x32xf32>
    %473 = tpu.matmul %472, %21, %cst_199 {dimension_numbers = #tpu.dot_dimension_numbers<[1], [0], [0], [1], [0, 0, 1, 1], [], []>} : vector<16x64xbf16>, vector<64x32xbf16>, vector<16x32xf32> -> vector<16x32xf32>
    %474 = arith.addf %440, %473 : vector<16x32xf32>
    %c0_200 = arith.constant 0 : index
    %c0_201 = arith.constant 0 : index
    %475 = vector.load %arg27[%c0_200, %c0_201] : memref<1x32xf32, #tpu.memory_space<vmem>>, vector<1x32xf32>
    %476 = vector.broadcast %475 : vector<1x32xf32> to vector<16x32xf32>
    %477 = arith.addf %474, %476 : vector<16x32xf32>
    %478 = vector.shape_cast %477 : vector<16x32xf32> to vector<2x8x32xf32>
    %c0_202 = arith.constant 0 : index
    %c0_203 = arith.constant 0 : index
    %c0_204 = arith.constant 0 : index
    %479 = vector.load %arg28[%c0_202, %c0_203, %c0_204] : memref<2x8x32xf32, #tpu.memory_space<vmem>>, vector<2x8x32xf32>
    tpu.vector_store %arg28[%c0_202, %c0_203, %c0_204], %478 {strides = array<i32>} : memref<2x8x32xf32, #tpu.memory_space<vmem>>, vector<2x8x32xf32>,
    %c0_205 = arith.constant 0 : index
    %c0_206 = arith.constant 0 : index
    %c0_207 = arith.constant 0 : index
    %480 = vector.load %arg29[%c0_205, %c0_206, %c0_207] : memref<2x8x64xf32, #tpu.memory_space<vmem>>, vector<2x8x64xf32>
    tpu.vector_store %arg29[%c0_205, %c0_206, %c0_207], %368 {strides = array<i32>} : memref<2x8x64xf32, #tpu.memory_space<vmem>>, vector<2x8x64xf32>,
    %c0_208 = arith.constant 0 : index
    %c0_209 = arith.constant 0 : index
    %c0_210 = arith.constant 0 : index
    %481 = vector.load %arg30[%c0_208, %c0_209, %c0_210] : memref<2x8x64xf32, #tpu.memory_space<vmem>>, vector<2x8x64xf32>
    tpu.vector_store %arg30[%c0_208, %c0_209, %c0_210], %387 {strides = array<i32>} : memref<2x8x64xf32, #tpu.memory_space<vmem>>, vector<2x8x64xf32>,
    return
  }
  func.func @transform_0(%arg0: i32) -> (i32, i32, i32) {
    %c0_i32 = arith.constant 0 : i32
    %c0_i32_0 = arith.constant 0 : i32
    %c0_i32_1 = arith.constant 0 : i32
    return %arg0, %c0_i32, %c0_i32_0 : i32, i32, i32
  }
  func.func @transform_1(%arg0: i32) -> (i32, i32, i32) {
    %c0_i32 = arith.constant 0 : i32
    %c0_i32_0 = arith.constant 0 : i32
    %c0_i32_1 = arith.constant 0 : i32
    return %arg0, %c0_i32, %c0_i32_0 : i32, i32, i32
  }
  func.func @transform_2(%arg0: i32) -> (i32, i32) {
    %c0_i32 = arith.constant 0 : i32
    %c0_i32_0 = arith.constant 0 : i32
    %c0_i32_1 = arith.constant 0 : i32
    return %c0_i32, %c0_i32_0 : i32, i32
  }
  func.func @transform_3(%arg0: i32) -> (i32, i32) {
    %c0_i32 = arith.constant 0 : i32
    %c0_i32_0 = arith.constant 0 : i32
    %c0_i32_1 = arith.constant 0 : i32
    return %c0_i32, %c0_i32_0 : i32, i32
  }
  func.func @transform_4(%arg0: i32) -> (i32, i32) {
    %c0_i32 = arith.constant 0 : i32
    %c0_i32_0 = arith.constant 0 : i32
    %c0_i32_1 = arith.constant 0 : i32
    return %c0_i32, %c0_i32_0 : i32, i32
  }
  func.func @transform_5(%arg0: i32) -> (i32, i32) {
    %c0_i32 = arith.constant 0 : i32
    %c0_i32_0 = arith.constant 0 : i32
    %c0_i32_1 = arith.constant 0 : i32
    return %c0_i32, %c0_i32_0 : i32, i32
  }
  func.func @transform_6(%arg0: i32) -> (i32, i32) {
    %c0_i32 = arith.constant 0 : i32
    %c0_i32_0 = arith.constant 0 : i32
    %c0_i32_1 = arith.constant 0 : i32
    return %c0_i32, %c0_i32_0 : i32, i32
  }
  func.func @transform_7(%arg0: i32) -> (i32, i32) {
    %c0_i32 = arith.constant 0 : i32
    %c0_i32_0 = arith.constant 0 : i32
    %c0_i32_1 = arith.constant 0 : i32
    return %c0_i32, %c0_i32_0 : i32, i32
  }
  func.func @transform_8(%arg0: i32) -> (i32, i32) {
    %c0_i32 = arith.constant 0 : i32
    %c0_i32_0 = arith.constant 0 : i32
    %c0_i32_1 = arith.constant 0 : i32
    return %c0_i32, %c0_i32_0 : i32, i32
  }
  func.func @transform_9(%arg0: i32) -> (i32, i32) {
    %c0_i32 = arith.constant 0 : i32
    %c0_i32_0 = arith.constant 0 : i32
    %c0_i32_1 = arith.constant 0 : i32
    return %c0_i32, %c0_i32_0 : i32, i32
  }
  func.func @transform_10(%arg0: i32) -> (i32, i32) {
    %c0_i32 = arith.constant 0 : i32
    %c0_i32_0 = arith.constant 0 : i32
    %c0_i32_1 = arith.constant 0 : i32
    return %c0_i32, %c0_i32_0 : i32, i32
  }
  func.func @transform_11(%arg0: i32) -> (i32, i32) {
    %c0_i32 = arith.constant 0 : i32
    %c0_i32_0 = arith.constant 0 : i32
    %c0_i32_1 = arith.constant 0 : i32
    return %c0_i32, %c0_i32_0 : i32, i32
  }
  func.func @transform_12(%arg0: i32) -> (i32, i32) {
    %c0_i32 = arith.constant 0 : i32
    %c0_i32_0 = arith.constant 0 : i32
    %c0_i32_1 = arith.constant 0 : i32
    return %c0_i32, %c0_i32_0 : i32, i32
  }
  func.func @transform_13(%arg0: i32) -> (i32, i32) {
    %c0_i32 = arith.constant 0 : i32
    %c0_i32_0 = arith.constant 0 : i32
    %c0_i32_1 = arith.constant 0 : i32
    return %c0_i32, %c0_i32_0 : i32, i32
  }
  func.func @transform_14(%arg0: i32) -> (i32, i32) {
    %c0_i32 = arith.constant 0 : i32
    %c0_i32_0 = arith.constant 0 : i32
    %c0_i32_1 = arith.constant 0 : i32
    return %c0_i32, %c0_i32_0 : i32, i32
  }
  func.func @transform_15(%arg0: i32) -> (i32, i32) {
    %c0_i32 = arith.constant 0 : i32
    %c0_i32_0 = arith.constant 0 : i32
    %c0_i32_1 = arith.constant 0 : i32
    return %c0_i32, %c0_i32_0 : i32, i32
  }
  func.func @transform_16(%arg0: i32) -> (i32, i32) {
    %c0_i32 = arith.constant 0 : i32
    %c0_i32_0 = arith.constant 0 : i32
    %c0_i32_1 = arith.constant 0 : i32
    return %c0_i32, %c0_i32_0 : i32, i32
  }
  func.func @transform_17(%arg0: i32) -> (i32, i32) {
    %c0_i32 = arith.constant 0 : i32
    %c0_i32_0 = arith.constant 0 : i32
    %c0_i32_1 = arith.constant 0 : i32
    return %c0_i32, %c0_i32_0 : i32, i32
  }
  func.func @transform_18(%arg0: i32) -> (i32, i32) {
    %c0_i32 = arith.constant 0 : i32
    %c0_i32_0 = arith.constant 0 : i32
    %c0_i32_1 = arith.constant 0 : i32
    return %c0_i32, %c0_i32_0 : i32, i32
  }
  func.func @transform_19(%arg0: i32) -> (i32, i32) {
    %c0_i32 = arith.constant 0 : i32
    %c0_i32_0 = arith.constant 0 : i32
    %c0_i32_1 = arith.constant 0 : i32
    return %c0_i32, %c0_i32_0 : i32, i32
  }
  func.func @transform_20(%arg0: i32) -> (i32, i32) {
    %c0_i32 = arith.constant 0 : i32
    %c0_i32_0 = arith.constant 0 : i32
    %c0_i32_1 = arith.constant 0 : i32
    return %c0_i32, %c0_i32_0 : i32, i32
  }
  func.func @transform_21(%arg0: i32) -> (i32, i32) {
    %c0_i32 = arith.constant 0 : i32
    %c0_i32_0 = arith.constant 0 : i32
    %c0_i32_1 = arith.constant 0 : i32
    return %c0_i32, %c0_i32_0 : i32, i32
  }
  func.func @transform_22(%arg0: i32) -> (i32, i32) {
    %c0_i32 = arith.constant 0 : i32
    %c0_i32_0 = arith.constant 0 : i32
    %c0_i32_1 = arith.constant 0 : i32
    return %c0_i32, %c0_i32_0 : i32, i32
  }
  func.func @transform_23(%arg0: i32) -> (i32, i32) {
    %c0_i32 = arith.constant 0 : i32
    %c0_i32_0 = arith.constant 0 : i32
    %c0_i32_1 = arith.constant 0 : i32
    return %c0_i32, %c0_i32_0 : i32, i32
  }
  func.func @transform_24(%arg0: i32) -> (i32, i32) {
    %c0_i32 = arith.constant 0 : i32
    %c0_i32_0 = arith.constant 0 : i32
    %c0_i32_1 = arith.constant 0 : i32
    return %c0_i32, %c0_i32_0 : i32, i32
  }
  func.func @transform_25(%arg0: i32) -> (i32, i32) {
    %c0_i32 = arith.constant 0 : i32
    %c0_i32_0 = arith.constant 0 : i32
    %c0_i32_1 = arith.constant 0 : i32
    return %c0_i32, %c0_i32_0 : i32, i32
  }
  func.func @transform_26(%arg0: i32) -> (i32, i32) {
    %c0_i32 = arith.constant 0 : i32
    %c0_i32_0 = arith.constant 0 : i32
    %c0_i32_1 = arith.constant 0 : i32
    return %c0_i32, %c0_i32_0 : i32, i32
  }
  func.func @transform_27(%arg0: i32) -> (i32, i32, i32) {
    %c0_i32 = arith.constant 0 : i32
    %c0_i32_0 = arith.constant 0 : i32
    %c0_i32_1 = arith.constant 0 : i32
    return %arg0, %c0_i32, %c0_i32_0 : i32, i32, i32
  }
  func.func @transform_28(%arg0: i32) -> (i32, i32, i32) {
    %c0_i32 = arith.constant 0 : i32
    %c0_i32_0 = arith.constant 0 : i32
    %c0_i32_1 = arith.constant 0 : i32
    return %arg0, %c0_i32, %c0_i32_0 : i32, i32, i32
  }
  func.func @transform_29(%arg0: i32) -> (i32, i32, i32) {
    %c0_i32 = arith.constant 0 : i32
    %c0_i32_0 = arith.constant 0 : i32
    %c0_i32_1 = arith.constant 0 : i32
    return %arg0, %c0_i32, %c0_i32_0 : i32, i32, i32
  }
}

</mosaic_0001>

<bundles_post_ra>
// kernel: tpu_custom_call.1
= control target key start
LH: loop header
LB: loop body
LE: loop exit
PB: predicated region body
PF: predicated region fallthrough
CT: control target
= control target key end

     0   :  { %s3982_s6 = smov 1   ;;  %s3983_s10 = smov 2   ;;  %s5238_s0 = inlined_call_operand.smem [shape: u32[30], index: -1, kind: input, shape index: {}] }
   0x1   :  { %s4022_s5 = sld [smem:[%s5238_s0]]   ;;  %s3984_s14 = smov 3  }
   0x2   :  { %s4027_s9 = sld [smem:[%s5238_s0 + %s3982_s6]]   ;;  %s3985_s18 = smov 4  }
   0x3   :  { %s4032_s13 = sld [smem:[%s5238_s0 + %s3983_s10]]   ;;  %s3986_s22 = smov 5  }
   0x4   :  { %s4037_s17 = sld [smem:[%s5238_s0 + %s3984_s14]]   ;;  %s3987_s26 = smov 6  }
   0x5   :  { %s4042_s21 = sld [smem:[%s5238_s0 + %s3985_s18]]   ;;  %s3988_s30 = smov 7  }
   0x6   :  { %s4047_s25 = sld [smem:[%s5238_s0 + %s3986_s22]]   ;;  %s3989_s4 = smov 8  }
   0x7   :  { %5272 = sst [smem:[#allocation9_spill]] %s4022_s5  ;;  %s3990_s10 = smov 9  }
   0x8   :  { %5273 = sst [smem:[#allocation10_spill]] %s4027_s9  ;;  %s3991_s15 = smov 10  }
   0x9   :  { %5274 = sst [smem:[#allocation11_spill]] %s4032_s13  ;;  %s3992_s20 = smov 11  }
   0xa   :  { %5275 = sst [smem:[#allocation12_spill]] %s4037_s17  ;;  %s3994_s1 = smov 13  }
   0xb   :  { %5276 = sst [smem:[#allocation13_spill]] %s4042_s21  ;;  %s3995_s7 = smov 14  }
   0xc   :  { %s4052_s29 = sld [smem:[%s5238_s0 + %s3987_s26]]   ;;  %s3993_s26 = smov 12  }
   0xd   :  { %s4057_s3 = sld [smem:[%s5238_s0 + %s3988_s30]]   ;;  %s3997_s22 = smov 16  }
   0xe   :  { %s4062_s8 = sld [smem:[%s5238_s0 + %s3989_s4]]   ;;  %s3998_s28 = smov 17  }
   0xf   :  { %s4067_s14 = sld [smem:[%s5238_s0 + %s3990_s10]]  }
  0x10   :  { %s4072_s19 = sld [smem:[%s5238_s0 + %s3991_s15]]   ;;  %s3996_s15 = smov 15  }
  0x11   :  { %s4077_s24 = sld [smem:[%s5238_s0 + %s3992_s20]]  }
  0x12   :  { %s4082_s30 = sld [smem:[%s5238_s0 + %s3993_s26]]  }
  0x13   :  { %5277 = sst [smem:[#allocation14_spill]] %s4057_s3 }
  0x14   :  { %5278 = sst [smem:[#allocation15_spill]] %s4062_s8 }
  0x15   :  { %5279 = sst [smem:[#allocation16_spill]] %s4067_s14 }
  0x16   :  { %5280 = sst [smem:[#allocation17_spill]] %s4072_s19 }
  0x17   :  { %s4087_s6 = sld [smem:[%s5238_s0 + %s3994_s1]]  }
  0x18   :  { %5281 = sst [smem:[#allocation18_spill]] %s4082_s30 }
  0x19   :  { %s4092_s12 = sld [smem:[%s5238_s0 + %s3995_s7]]   ;;  %s3999_s7 = smov 18  }
  0x1a   :  { %s4097_s20 = sld [smem:[%s5238_s0 + %s3996_s15]]   ;;  %s4000_s15 = smov 19  }
  0x1b   :  { %s4102_s27 = sld [smem:[%s5238_s0 + %s3997_s22]]   ;;  %s4001_s22 = smov 20  }
  0x1c   :  { %s4107_s4 = sld [smem:[%s5238_s0 + %s3998_s28]]   ;;  %s4002_s28 = smov 21  }
  0x1d   :  { %5282 = sst [smem:[#allocation19_spill]] %s4087_s6 }
  0x1e   :  { %s4112_s19 = sld [smem:[%s5238_s0 + %s3999_s7]]   ;;  %s4003_s7 = smov 22  }
  0x1f   :  { %5283 = sst [smem:[#allocation20_spill]] %s4092_s12 }
  0x20   :  { %5284 = sst [smem:[#allocation21_spill]] %s4097_s20 }
  0x21   :  { %s4117_s14 = sld [smem:[%s5238_s0 + %s4000_s15]]   ;;  %s4004_s15 = smov 23  }
  0x22   :  { %5285 = sst [smem:[#allocation22_spill]] %s4107_s4 }
  0x23   :  { %s4122_s6 = sld [smem:[%s5238_s0 + %s4001_s22]]   ;;  %s4005_s22 = smov 24  }
  0x24   :  { %5286 = sst [smem:[#allocation23_spill]] %s4112_s19 }
  0x25   :  { %s4127_s4 = sld [smem:[%s5238_s0 + %s4002_s28]]   ;;  %s4006_s28 = smov 25  }
  0x26   :  { %s4132_s19 = sld [smem:[%s5238_s0 + %s4003_s7]]   ;;  %s4007_s7 = smov 26  }
  0x27   :  { %5287 = sst [smem:[#allocation24_spill]] %s4117_s14 }
  0x28   :  { %s4137_s14 = sld [smem:[%s5238_s0 + %s4004_s15]]   ;;  %s4008_s15 = smov 27  }
  0x29   :  { %5288 = sst [smem:[#allocation25_spill]] %s4122_s6 }
  0x2a   :  { %s4142_s6 = sld [smem:[%s5238_s0 + %s4005_s22]]   ;;  %s4009_s22 = smov 28  }
  0x2b   :  { %5289 = sst [smem:[#allocation26_spill]] %s4127_s4 }
  0x2c   :  { %5290 = sst [smem:[#allocation27_spill]] %s4132_s19 }
  0x2d   :  { %s4147_s4 = sld [smem:[%s5238_s0 + %s4006_s28]]   ;;  %s4010_s28 = smov 29  }
  0x2e   :  { %5291 = sst [smem:[#allocation28_spill]] %s4137_s14 }
  0x2f   :  { %s4152_s19 = sld [smem:[%s5238_s0 + %s4007_s7]]  }
  0x30   :  { %5292 = sst [smem:[#allocation29_spill]] %s4142_s6 }
  0x31   :  { %s4157_s14 = sld [smem:[%s5238_s0 + %s4008_s15]]  }
  0x32   :  { %s4162_s6 = sld [smem:[%s5238_s0 + %s4009_s22]]  }
  0x33   :  { %5293 = sst [smem:[#allocation30_spill]] %s4147_s4 }
  0x34   :  { %s4167_s30 = sld [smem:[%s5238_s0 + %s4010_s28]]  }
  0x35   :  { %65 = vsyncpa [#allocation3], 0 }
  0x36   :  { %67 = vsyncpa [#allocation3 + $0x1], 0 }
  0x37   :  { %68 = vsyncpa [#allocation5], 0 }
  0x38   :  { %70 = vsyncpa [#allocation5 + $0x1], 0  ;;  %s4169_s7 = smov 0   ;;  %s4171_s10 = smov 0  }
  0x39   :  { %s4173_s11 = smov 0   ;;  %s4175_s15 = smov 0  }
  0x3a LB: > { %s5294_s21 = sld [smem:[#allocation13_spill]]  ;;  %s4190_s0 = sadd.s32 4294967295, %s3980_s15   ;;  %s3980_s15 = sphi %s4175_s15, %s5335_s15   ;;  %s3976_s11 = sphi %s4173_s11, %s5334_s11   ;;  %s3972_s10 = sphi %s4171_s10, %s5333_s10   ;;  %s3968_s7 = sphi %s4169_s7, %s5332_s7  }
  0x3b   : > { %s5295_s8 = sld [smem:[#allocation15_spill]]  ;;  %s5251_s16 = sadd.s32 4294967294, %s3980_s15  }
  0x3c   : > { %s5296_s3 = sld [smem:[#allocation14_spill]]  ;;  %s4194_s18 = sadd.s32 1, %s3980_s15  }
  0x3d   : > { %s5297_s20 = sld [smem:[#allocation21_spill]]  ;;  %s660_s22 = sadd.s32 1, %s3976_s11 }
  0x3e   : > { %s5298_s17 = sld [smem:[#allocation12_spill]]  ;;  %s657_s23 = ssub.s32 %s3980_s15, %s4194_s18 }
  0x3f   : > { %s5299_s13 = sld [smem:[#allocation11_spill]]  ;;  %p670_p0 = scmp.ne.s32.totalorder %s3976_s11, %s3972_s10 }
  0x40   : > { %s5300_s12 = sld [smem:[#allocation20_spill]]  ;;  %p658_p1 = scmp.eq.s32.totalorder %s657_s23, 0 }
  0x41   : > { %s5301_s4 = sld [smem:[#allocation30_spill]]  ;;  %p671_p2 = scmp.eq.s32.totalorder %s4190_s0, 1 }
  0x42   : > { %p676_p3 = scmp.ne.s32.totalorder %s3972_s10, %s3968_s7  ;;  %p677_p4 = scmp.eq.s32.totalorder %s5251_s16, 1 }
  0x43   : > { %s4207_s26 = scalar_select %p658_p1, %s3976_s11, %s660_s22  }
  0x44   : > { %p4209_p5 = por %p671_p2, %p670_p0  ;;  %p4213_p6 = por %p677_p4, %p676_p3 }
  0x45   : > { %p3492_p7 = scmp.ge.s32.totalorder %s3980_s15, 1  ;;  %p841_p8 = scmp.lt.s32.totalorder %s3980_s15, 3 }
  0x47   : > { %p842_p9 = pnand %p3492_p7, %p841_p8 }
  0x48   : > { %s5304_s5 = sld [smem:[#allocation9_spill]] (!%p842_p9)  ;;  %s3496_s2 = sshll.u32 (!%p842_p9), %s4190_s0, 1 }
  0x49   : > { %845 = sbr.rel (%p842_p9) target bundleno = 5175 (0x1437), region = 128  ;;  %p934_p10 = scmp.lt.s32.totalorder (!%p842_p9), %s3496_s2, 3 }
  0x4a   : > { %s5307_s9 = sld [smem:[#allocation10_spill]] (!%p842_p9) }
  0x4b   : > { %s5319_s16 = sld [smem:[#allocation25_spill]] (!%p842_p9) }
  0x4e   : > { %s5337_s2 = smov (!%p934_p10, %s3496_s2), 3  ;;  %vm1040_vm0 = vcmask 261120   ;;  %v4011_v14 = vmov 32.0  }
  0x4f   : > { %s3579_s22 = sshll.u32 %s5337_s2, 6  ;;  %3702 = vrcp.f32 %v4011_v14 }
  0x50   : > { %s4224_s23 = scalar_lea.vmem %s5304_s5, %s3579_s22  ;;  %s3500_s22 = sshll.u32 %s5337_s2, 3 }
  0x51   : > { %v1024_v0 = vld [vmem:[%s4224_s23 + $0x10] sm:$0xff]  ;;  %v1022_v1 = vld [vmem:[%s4224_s23] sm:$0xff]  ;;  %v1025_v2 = vld [vmem:[%s4224_s23 + $0x18] sm:$0xff]  ;;  %s4414_s2 = scalar_lea.vmem %s5307_s9, %s3500_s22  ;;  %s5317_s22 = sld [smem:[#allocation19_spill]] }
  0x52   : > { %v1047_v3 = vsel %vm1040_vm0, %v1024_v0, 0.0  ;;  %v1041_v4 = vsel %vm1040_vm0, %v1022_v1, 0.0  ;;  %v1023_v5 = vld [vmem:[%s4224_s23 + $0x8] sm:$0xff]  ;;  %v1026_v6 = vld [vmem:[%s4224_s23 + $0x20] sm:$0xff]  ;;  %v1050_v9 = vsel %vm1040_vm0, %v1025_v2, 0.0  ;;  %v1028_v12 = vld [vmem:[%s4224_s23 + $0x30] sm:$0xff] }
  0x53   : > { %v1027_v7 = vld [vmem:[%s4224_s23 + $0x28] sm:$0xff]  ;;  %1048 = vadd.xlane.f32.xlu1 %v1047_v3  ;;  %1042 = vadd.xlane.f32.xlu0 %v1041_v4  ;;  %v1053_v8 = vsel %vm1040_vm0, %v1026_v6, 0.0  ;;  %v1044_v10 = vsel %vm1040_vm0, %v1023_v5, 0.0  ;;  %v1059_v13 = vsel %vm1040_vm0, %v1028_v12, 0.0  ;;  %v4253_v34 = vld [vmem:[%s4224_s23 + $0x38] sm:$0xff]  ;;  %v4275_v47 = vld [vmem:[%s4224_s23 + $0x40] sm:$0xff] }
  0x54   : > { %1054 = vadd.xlane.f32.xlu2 %v1053_v8  ;;  %v1056_v11 = vsel %vm1040_vm0, %v1027_v7, 0.0  ;;  %v1062_v40 = vsel %vm1040_vm0, %v4253_v34, 0.0  ;;  %v1065_v51 = vsel %vm1040_vm0, %v4275_v47, 0.0  ;;  %v4289_v56 = vld [vmem:[%s4224_s23 + $0x58] sm:$0xff]  ;;  %v4292_v57 = vld [vmem:[%s4224_s23 + $0x48] sm:$0xff]  ;;  %v4304_v63 = vld [vmem:[%s4224_s23 + $0x60] sm:$0xff] }
  0x55   : > { %v3703_v15 = vpop.eup %3702  ;;  %v1074_v59 = vsel %vm1040_vm0, %v4289_v56, 0.0  ;;  %v1068_v61 = vsel %vm1040_vm0, %v4292_v57, 0.0  ;;  %v4315_v4 = vld [vmem:[%s4224_s23 + $0x68] sm:$0xff]  ;;  %v958_v8 = vld [vmem:[%s5298_s17 + $0x10] sm:$0xff]  ;;  %s5321_s5 = sld [smem:[#allocation26_spill]] }
  0x56   : > { %v1090_v16 = vmul.f32 32.0, %v3703_v15  ;;  %vm1094_vm1 = vweird.f32 %v3703_v15  ;;  %s5322_s9 = sld [smem:[#allocation27_spill]] }
  0x58   : > { %v1091_v17 = vsub.f32 1.0, %v1090_v16 }
  0x5a   : > { %v1092_v18 = vmul.f32 %v3703_v15, %v1091_v17  ;;  %v956_v17 = vld [vmem:[%s5298_s17] sm:$0xff] }
  0x5b   : > { %1051 = vadd.xlane.f32.xlu1 %v1050_v9  ;;  %1045 = vadd.xlane.f32.xlu0 %v1044_v10  ;;  %v959_v9 = vld [vmem:[%s5298_s17 + $0x18] sm:$0xff]  ;;  %v964_v10 = vld [vmem:[%s5294_s21 + $0x10] sm:$0xff] }
  0x5c   : > { %1057 = vadd.xlane.f32.xlu2 %v1056_v11  ;;  %v1093_v19 = vadd.f32 %v3703_v15, %v1092_v18  ;;  %v957_v18 = vld [vmem:[%s5298_s17 + $0x8] sm:$0xff]  ;;  %s5325_s17 = sld [smem:[#allocation16_spill]] }
  0x5e   : > { %v4240_v20 = vsel %vm1094_vm1, %v3703_v15, %v1093_v19  ;;  %v962_v19 = vld [vmem:[%s5294_s21] sm:$0xff] }
  0x64   : > { %1060 = vadd.xlane.f32.xlu2 %v1059_v13  ;;  %v965_v13 = vld [vmem:[%s5294_s21 + $0x18] sm:$0xff] }
  0x65   : > { %v967_v15 = vpack.c.bf16 %v965_v13, %v964_v10 }
  0x67   : > { %1541 = vmatpush.bf16.msra.mxu1 %v967_v15 }
  0xc6   : > { %v1049_v21 = vpop.xlane.xlu1 %1048  ;;  %v1043_v22 = vpop.xlane.xlu0 %1042 }
  0xc7   : > { %v1096_v23 = vmul.f32 %v4240_v20, %v1043_v22  ;;  %v1055_v24 = vpop.xlane.xlu2 %1054  ;;  %v1098_v33 = vmul.f32 %v4240_v20, %v1049_v21  ;;  %v960_v21 = vpack.c.bf16 %v957_v18, %v956_v17  ;;  %v963_v22 = vld [vmem:[%s5294_s21 + $0x8] sm:$0xff] }
  0xc8   : > { %v1100_v32 = vmul.f32 %v4240_v20, %v1055_v24 }
  0xc9   : > { %v4243_v25 = vsub.f32 %v1022_v1, %v1096_v23  ;;  %v4267_v42 = vsub.f32 %v1024_v0, %v1098_v33  ;;  %v4307_v0 = vld [vmem:[%s4224_s23 + $0x50] sm:$0xff]  ;;  %v1077_v1 = vsel %vm1040_vm0, %v4304_v63, 0.0  ;;  %v966_v23 = vpack.c.bf16 %v963_v22, %v962_v19  ;;  %v4385_v22 = vld [vmem:[%s4224_s23 + $0x78] sm:$0xff] }
  0xca   : > { %v4259_v38 = vsub.f32 %v1026_v6, %v1100_v32  ;;  %v1071_v3 = vsel %vm1040_vm0, %v4307_v0, 0.0  ;;  %v4320_v6 = vld [vmem:[%s4224_s23 + $0x70] sm:$0xff]  ;;  %s5316_s23 = sld [smem:[#allocation18_spill]] }
  0xcb   : > { %v1128_v26 = vmul.f32 %v4243_v25, %v4243_v25  ;;  %v1130_v48 = vmul.f32 %v4267_v42, %v4267_v42  ;;  %1542 = vmatpush.bf16.msra.mxu1 %v966_v23 }
  0xcc   : > { %v1132_v46 = vmul.f32 %v4259_v38, %v4259_v38 }
  0xcd   : > { %v1144_v27 = vsel %vm1040_vm0, %v1128_v26, 0.0  ;;  %v1150_v52 = vsel %vm1040_vm0, %v1130_v48, 0.0 }
  0xce   : > { %v1052_v28 = vpop.xlane.xlu1 %1051  ;;  %1145 = vadd.xlane.f32.xlu0 %v1144_v27  ;;  %v1046_v29 = vpop.xlane.xlu0 %1045  ;;  %v1156_v50 = vsel %vm1040_vm0, %v1132_v46, 0.0 }
  0xcf   : > { %v1099_v30 = vmul.f32 %v4240_v20, %v1052_v28  ;;  %v1097_v31 = vmul.f32 %v4240_v20, %v1046_v29  ;;  %v1058_v37 = vpop.xlane.xlu2 %1057 }
  0xd0   : > { %v1101_v45 = vmul.f32 %v4240_v20, %v1058_v37 }
  0xd1   : > { %v4255_v35 = vsub.f32 %v1025_v2, %v1099_v30  ;;  %v4257_v36 = vsub.f32 %v1023_v5, %v1097_v31  ;;  %v1080_v5 = vsel %vm1040_vm0, %v4315_v4, 0.0 }
  0xd2   : > { %v4279_v49 = vsub.f32 %v1027_v7, %v1101_v45  ;;  %v1083_v7 = vsel %vm1040_vm0, %v4320_v6, 0.0 }
  0xd3   : > { %v1131_v39 = vmul.f32 %v4255_v35, %v4255_v35  ;;  %v1129_v41 = vmul.f32 %v4257_v36, %v4257_v36 }
  0xd4   : > { %v1133_v55 = vmul.f32 %v4279_v49, %v4279_v49 }
  0xd5   : > { %v1153_v43 = vsel %vm1040_vm0, %v1131_v39, 0.0  ;;  %v1147_v44 = vsel %vm1040_vm0, %v1129_v41, 0.0 }
  0xd6   : > { %1154 = vadd.xlane.f32.xlu2 %v1153_v43  ;;  %1063 = vadd.xlane.f32.xlu0 %v1062_v40  ;;  %v1159_v60 = vsel %vm1040_vm0, %v1133_v55, 0.0 }
  0xd7   : > { %1148 = vadd.xlane.f32.xlu1 %v1147_v44  ;;  %v1061_v53 = vpop.xlane.xlu2 %1060 }
  0xd8   : > { %v1102_v54 = vmul.f32 %v4240_v20, %v1061_v53 }
  0xda   : > { %v4294_v58 = vsub.f32 %v1028_v12, %v1102_v54  ;;  %v961_v12 = vpack.c.bf16 %v959_v9, %v958_v8 }
  0xdc   : > { %v1134_v62 = vmul.f32 %v4294_v58, %v4294_v58  ;;  %1476 = vmatpush.bf16.msra.mxu0 %v961_v12 }
  0xde   : > { %1157 = vadd.xlane.f32.xlu2 %v1156_v50  ;;  %1066 = vadd.xlane.f32.xlu0 %v1065_v51  ;;  %v1162_v2 = vsel %vm1040_vm0, %v1134_v62, 0.0 }
  0xdf   : > { %1151 = vadd.xlane.f32.xlu1 %v1150_v52 }
  0xe0   : > { %1477 = vmatpush.bf16.msra.mxu0 %v960_v21 }
  0xe6   : > { %1075 = vadd.xlane.f32.xlu2 %v1074_v59  ;;  %1160 = vadd.xlane.f32.xlu0 %v1159_v60 }
  0xe7   : > { %1069 = vadd.xlane.f32.xlu1 %v1068_v61 }
  0xee   : > { %1078 = vadd.xlane.f32.xlu2 %v1077_v1  ;;  %1163 = vadd.xlane.f32.xlu0 %v1162_v2 }
  0xef   : > { %1072 = vadd.xlane.f32.xlu1 %v1071_v3 }
  0xf6   : > { %1081 = vadd.xlane.f32.xlu0 %v1080_v5 }
  0xfe   : > { %1084 = vadd.xlane.f32.xlu0 %v1083_v7 }
 0x141   : > { %v1146_v11 = vpop.xlane.xlu0 %1145 }
 0x142   : > { %v1192_v14 = vmul.f32 %v1146_v11, %v4240_v20 }
 0x144   : > { %v1208_v16 = vadd.f32 1e-05, %v1192_v14 }
 0x146   : > { %3704 = vrsqrt.f32 %v1208_v16  ;;  %vm1230_vm3 = vweird.f32 %v1208_v16 }
 0x149   : > { %v1155_v24 = vpop.xlane.xlu2 %1154  ;;  %v1064_v26 = vpop.xlane.xlu0 %1063 }
 0x14a   : > { %v1195_v27 = vmul.f32 %v1155_v24, %v4240_v20  ;;  %v1149_v28 = vpop.xlane.xlu1 %1148  ;;  %v1103_v29 = vmul.f32 %v4240_v20, %v1064_v26 }
 0x14b   : > { %v1193_v30 = vmul.f32 %v1149_v28, %v4240_v20 }
 0x14c   : > { %v3705_v31 = vpop.eup %3704  ;;  %v4336_v32 = vadd.f32 1e-05, %v1195_v27  ;;  %v4339_v33 = vsub.f32 %v4253_v34, %v1103_v29 }
 0x14d   : > { %v1225_v37 = vmul.f32 %v3705_v31, %v1208_v16  ;;  %v1209_v39 = vadd.f32 1e-05, %v1193_v30  ;;  %vm1231_vm2 = vweird.f32 %v3705_v31  ;;  %v1086_v30 = vsel %vm1040_vm0, %v4385_v22, 0.0 }
 0x14e   : > { %3706 = vrsqrt.f32 %v4336_v32  ;;  %v1135_v40 = vmul.f32 %v4339_v33, %v4339_v33  ;;  %vm4362_vm4 = vmor %vm1230_vm3, %vm1231_vm2  ;;  %vm1260_vm8 = vweird.f32 %v4336_v32 }
 0x14f   : > { %v1226_v41 = vmul.f32 %v3705_v31, %v1225_v37  ;;  %3708 = vrsqrt.f32 %v1209_v39  ;;  %vm1240_vm5 = vweird.f32 %v1209_v39 }
 0x150   : > { %v1165_v43 = vsel %vm1040_vm0, %v1135_v40, 0.0 }
 0x151   : > { %v1227_v44 = vmul.f32 0.5, %v1226_v41  ;;  %v1158_v45 = vpop.xlane.xlu2 %1157  ;;  %1166 = vadd.xlane.f32.xlu1 %v1165_v43  ;;  %v1067_v46 = vpop.xlane.xlu0 %1066 }
 0x152   : > { %v1152_v48 = vpop.xlane.xlu1 %1151  ;;  %v1104_v50 = vmul.f32 %v4240_v20, %v1067_v46  ;;  %v1196_v55 = vmul.f32 %v1158_v45, %v4240_v20 }
 0x153   : > { %v1228_v34 = vsub.f32 1.5, %v1227_v44  ;;  %v1194_v51 = vmul.f32 %v1152_v48, %v4240_v20  ;;  %v4411_v48 = vld [vmem:[%s4052_s29] ss:$0 sm:$0xff] }
 0x154   : > { %v4347_v52 = vpop.eup %3706  ;;  %v4350_v53 = vsub.f32 %v4275_v47, %v1104_v50  ;;  %v4360_v47 = vadd.f32 1e-05, %v1196_v55 }
 0x155   : > { %v3709_v54 = vpop.eup %3708  ;;  %v4353_v59 = vadd.f32 1e-05, %v1194_v51  ;;  %v1229_v61 = vmul.f32 %v3705_v31, %v1228_v34  ;;  %v1255_v62 = vmul.f32 %v4347_v52, %v4336_v32  ;;  %vm1261_vm9 = vweird.f32 %v4347_v52 }
 0x156   : > { %v1235_v60 = vmul.f32 %v3709_v54, %v1209_v39  ;;  %v1136_v2 = vmul.f32 %v4350_v53, %v4350_v53  ;;  %vm1241_vm6 = vweird.f32 %v3709_v54  ;;  %vm4441_vm12 = vmor %vm1260_vm8, %vm1261_vm9  ;;  %vm1270_vm1 = vweird.f32 %v4360_v47 }
 0x157   : > { %3710 = vrsqrt.f32 %v4353_v59  ;;  %v1233_v13 = vsel %vm4362_vm4, %v3705_v31, %v1229_v61  ;;  %v1256_v14 = vmul.f32 %v4347_v52, %v1255_v62  ;;  %vm1242_vm7 = vmor %vm1240_vm5, %vm1241_vm6  ;;  %vm1250_vm10 = vweird.f32 %v4353_v59 }
 0x158   : > { %v1236_v1 = vmul.f32 %v3709_v54, %v1235_v60  ;;  %v1168_v11 = vsel %vm1040_vm0, %v1136_v2, 0.0  ;;  %3712 = vrsqrt.f32 %v4360_v47  ;;  %v1384_v23 = vmul.f32 %v1233_v13, %v4243_v25 }
 0x159   : > { %v1076_v3 = vpop.xlane.xlu2 %1075  ;;  %v1161_v5 = vpop.xlane.xlu0 %1160  ;;  %1169 = vadd.xlane.f32.xlu1 %v1168_v11  ;;  %v1257_v27 = vmul.f32 0.5, %v1256_v14 }
 0x15a   : > { %v1237_v8 = vmul.f32 0.5, %v1236_v1  ;;  %v1107_v9 = vmul.f32 %v4240_v20, %v1076_v3  ;;  %v1070_v10 = vpop.xlane.xlu1 %1069  ;;  %v1197_v12 = vmul.f32 %v1161_v5, %v4240_v20  ;;  %v4435_v1 = vld [vmem:[%s4414_s2] sm:$0xff] }
 0x15b   : > { %v1105_v15 = vmul.f32 %v4240_v20, %v1070_v10  ;;  %v1258_v50 = vsub.f32 1.5, %v1257_v27  ;;  %v4469_v27 = vld [vmem:[%s4414_s2 + $0x8] sm:$0xff] }
 0x15c   : > { %v1238_v16 = vsub.f32 1.5, %v1237_v8  ;;  %v4374_v17 = vsub.f32 %v4289_v56, %v1107_v9  ;;  %v4376_v18 = vadd.f32 1e-05, %v1197_v12  ;;  %v4392_v56 = vld [vmem:[%s4047_s25] ss:$0 sm:$0xff]  ;;  %v1604_v9 = vsel %vm1040_vm0, %v4435_v1, 0.0 }
 0x15d   : > { %v4378_v19 = vpop.eup %3710  ;;  %v4382_v21 = vsub.f32 %v4292_v57, %v1105_v15  ;;  %v1403_v46 = vmul.f32 %v4392_v56, %v1384_v23 }
 0x15e   : > { %v1239_v24 = vmul.f32 %v3709_v54, %v1238_v16  ;;  %v1245_v26 = vmul.f32 %v4378_v19, %v4353_v59  ;;  %3714 = vrsqrt.f32 %v4376_v18  ;;  %v1139_v28 = vmul.f32 %v4374_v17, %v4374_v17 }
 0x15f   : > { %v1137_v29 = vmul.f32 %v4382_v21, %v4382_v21  ;;  %vm1251_vm11 = vweird.f32 %v4378_v19  ;;  %v1422_v2 = vadd.f32 %v4411_v48, %v1403_v46  ;;  %vm1280_vm14 = vweird.f32 %v4376_v18 }
 0x160   : > { %v1243_v57 = vsel %vm1242_vm7, %v3709_v54, %v1239_v24  ;;  %v1246_v25 = vmul.f32 %v4378_v19, %v1245_v26  ;;  %v1177_v39 = vsel %vm1040_vm0, %v1139_v28, 0.0  ;;  %vm1252_vm13 = vmor %vm1250_vm10, %vm1251_vm11 }
 0x161   : > { %v1385_v31 = vmul.f32 %v1243_v57, %v4257_v36  ;;  %v1079_v37 = vpop.xlane.xlu2 %1078  ;;  %v4405_v40 = vpop.xlane.xlu0 %1163  ;;  %1178 = vadd.xlane.f32.xlu0 %v1177_v39  ;;  %v1171_v44 = vsel %vm1040_vm0, %v1137_v29, 0.0  ;;  %1087 = vadd.xlane.f32.xlu1 %v1086_v30 }
 0x162   : > { %v1247_v41 = vmul.f32 0.5, %v1246_v25  ;;  %v1108_v43 = vmul.f32 %v4240_v20, %v1079_v37  ;;  %v1073_v45 = vpop.xlane.xlu1 %1072  ;;  %v4416_v36 = vpop.eup %3712  ;;  %1172 = vadd.xlane.f32.xlu2 %v1171_v44 }
 0x163   : > { %v1106_v34 = vmul.f32 %v4240_v20, %v1073_v45  ;;  %v1404_v51 = vmul.f32 %v4392_v56, %v1385_v31  ;;  %v1265_v5 = vmul.f32 %v4416_v36, %v4360_v47  ;;  %vm1271_vm2 = vweird.f32 %v4416_v36 }
 0x164   : > { %v4420_v54 = vpop.eup %3714  ;;  %v1248_v55 = vsub.f32 1.5, %v1247_v41  ;;  %v4425_v60 = vsub.f32 %v4304_v63, %v1108_v43  ;;  %v1259_v63 = vmul.f32 %v4347_v52, %v1258_v50  ;;  %vm1272_vm4 = vmor %vm1270_vm1, %vm1271_vm2 }
 0x165   : > { %v1275_v61 = vmul.f32 %v4420_v54, %v4376_v18  ;;  %v4432_v62 = vsub.f32 %v4307_v0, %v1106_v34  ;;  %v1423_v3 = vadd.f32 %v4411_v48, %v1404_v51  ;;  %vm1281_vm15 = vweird.f32 %v4420_v54 }
 0x166   : > { %v1249_v32 = vmul.f32 %v4378_v19, %v1248_v55  ;;  %v1140_v0 = vmul.f32 %v4425_v60, %v4425_v60  ;;  %v1263_v16 = vsel %vm4441_vm12, %v4347_v52, %v1259_v63  ;;  %v1607_v52 = vsel %vm1040_vm0, %v4469_v27, 0.0  ;;  %vm1282_vm3 = vmor %vm1280_vm14, %vm1281_vm15 }
 0x167   : > { %v1138_v7 = vmul.f32 %v4432_v62, %v4432_v62  ;;  %v1438_v8 = vpack.c.bf16 %v1423_v3, %v1422_v2  ;;  %v1276_v11 = vmul.f32 %v4420_v54, %v1275_v61  ;;  %v1387_v28 = vmul.f32 %v1263_v16, %v4255_v35 }
 0x168   : > { %v1253_v10 = vsel %vm1252_vm13, %v4378_v19, %v1249_v32  ;;  %v1180_v12 = vsel %vm1040_vm0, %v1140_v0, 0.0  ;;  %v1266_v19 = vmul.f32 %v4416_v36, %v1265_v5 }
 0x169   : > { %v1174_v13 = vsel %vm1040_vm0, %v1138_v7, 0.0  ;;  %v1082_v14 = vpop.xlane.xlu0 %1081  ;;  %3501 = vmatmul.msk.bf16.vlgmr.msra.gmra.mxu0 %vm1040_vm0, %v1438_v8  ;;  %3509 = vmatmul.msk.bf16.vlgmr.msra.gmra.mxu1 %vm1040_vm0, %v1438_v8  ;;  %v1386_v23 = vmul.f32 %v1253_v10, %v4267_v42  ;;  %v1277_v26 = vmul.f32 0.5, %v1276_v11  ;;  %v1406_v37 = vmul.f32 %v4392_v56, %v1387_v28 }
 0x16a   : > { %v1109_v15 = vmul.f32 %v4240_v20, %v1082_v14  ;;  %1181 = vadd.xlane.f32.xlu0 %v1180_v12  ;;  %1175 = vadd.xlane.f32.xlu2 %v1174_v13  ;;  %v1267_v25 = vmul.f32 0.5, %v1266_v19 }
 0x16b   : > { %1605 = vadd.xlane.f32.xlu1 %v1604_v9  ;;  %v1405_v29 = vmul.f32 %v4392_v56, %v1386_v23  ;;  %v1278_v30 = vsub.f32 1.5, %v1277_v26  ;;  %v1425_v44 = vadd.f32 %v4411_v48, %v1406_v37 }
 0x16c   : > { %v4466_v24 = vsub.f32 %v4315_v4, %v1109_v15  ;;  %v1268_v39 = vsub.f32 1.5, %v1267_v25 }
 0x16d   : > { %v1424_v41 = vadd.f32 %v4411_v48, %v1405_v29  ;;  %v1279_v43 = vmul.f32 %v4420_v54, %v1278_v30 }
 0x16e   : > { %v1141_v57 = vmul.f32 %v4466_v24, %v4466_v24  ;;  %v1269_v45 = vmul.f32 %v4416_v36, %v1268_v39 }
 0x16f   : > { %v1439_v46 = vpack.c.bf16 %v1425_v44, %v1424_v41  ;;  %v1283_v50 = vsel %vm1282_vm3, %v4420_v54, %v1279_v43 }
 0x170   : > { %v1183_v42 = vsel %vm1040_vm0, %v1141_v57, 0.0  ;;  %v1273_v47 = vsel %vm1272_vm4, %v4416_v36, %v1269_v45  ;;  %v1389_v34 = vmul.f32 %v1283_v50, %v4279_v49  ;;  %v1198_v36 = vmul.f32 %v4405_v40, %v4240_v20 }
 0x171   : > { %v1085_v31 = vpop.xlane.xlu0 %1084  ;;  %v1388_v51 = vmul.f32 %v1273_v47, %v4259_v38 }
 0x172   : > { %v1110_v4 = vmul.f32 %v4240_v20, %v1085_v31  ;;  %1608 = vadd.xlane.f32.xlu2 %v1607_v52  ;;  %v1408_v55 = vmul.f32 %v4392_v56, %v1389_v34  ;;  %v1214_v3 = vadd.f32 1e-05, %v1198_v36 }
 0x173   : > { %1184 = vadd.xlane.f32.xlu1 %v1183_v42  ;;  %v1407_v61 = vmul.f32 %v4392_v56, %v1388_v51 }
 0x174   : > { %v4483_v35 = vsub.f32 %v4320_v6, %v1110_v4  ;;  %v1427_v32 = vadd.f32 %v4411_v48, %v1408_v55  ;;  %3716 = vrsqrt.f32 %v1214_v3  ;;  %vm1290_vm5 = vweird.f32 %v1214_v3 }
 0x175   : > { %v1426_v2 = vadd.f32 %v4411_v48, %v1407_v61 }
 0x176   : > { %v1142_v18 = vmul.f32 %v4483_v35, %v4483_v35 }
 0x177   : > { %v1440_v54 = vpack.c.bf16 %v1427_v32, %v1426_v2 }
 0x178   : > { %v1186_v6 = vsel %vm1040_vm0, %v1142_v18, 0.0 }
 0x179   : > { %3502 = vmatmul.msk.bf16.gmra.mxu0 %vm1040_vm0, %v1439_v46  ;;  %3510 = vmatmul.msk.bf16.gmra.mxu1 %vm1040_vm0, %v1439_v46 }
 0x17a   : > { %1187 = vadd.xlane.f32.xlu2 %v1186_v6  ;;  %v3717_v49 = vpop.eup %3716 }
 0x17b   : > { %v1285_v38 = vmul.f32 %v3717_v49, %v1214_v3  ;;  %vm1291_vm6 = vweird.f32 %v3717_v49 }
 0x17c   : > { %vm4510_vm7 = vmor %vm1290_vm5, %vm1291_vm6 }
 0x17d   : > { %v1286_v5 = vmul.f32 %v3717_v49, %v1285_v38 }
 0x17f   : > { %v1287_v7 = vmul.f32 0.5, %v1286_v5 }
 0x181   : > { %v1288_v8 = vsub.f32 1.5, %v1287_v7 }
 0x183   : > { %v1289_v13 = vmul.f32 %v3717_v49, %v1288_v8 }
 0x185   : > { %v1293_v23 = vsel %vm4510_vm7, %v3717_v49, %v1289_v13 }
 0x186   : > { %v1390_v4 = vmul.f32 %v1293_v23, %v4294_v58 }
 0x188   : > { %v1409_v46 = vmul.f32 %v4392_v56, %v1390_v4 }
 0x189   : > { %3503 = vmatmul.msk.bf16.gmra.mxu0 %vm1040_vm0, %v1440_v54  ;;  %3511 = vmatmul.msk.bf16.gmra.mxu1 %vm1040_vm0, %v1440_v54 }
 0x18a   : > { %v1428_v3 = vadd.f32 %v4411_v48, %v1409_v46 }
 0x1c4   : > { %v1167_v63 = vpop.xlane.xlu1 %1166 }
 0x1c5   : > { %v1199_v59 = vmul.f32 %v1167_v63, %v4240_v20 }
 0x1c7   : > { %v1215_v0 = vadd.f32 1e-05, %v1199_v59 }
 0x1c9   : > { %3718 = vrsqrt.f32 %v1215_v0  ;;  %vm1300_vm9 = vweird.f32 %v1215_v0 }
 0x1cc   : > { %v1170_v9 = vpop.xlane.xlu1 %1169 }
 0x1cd   : > { %v1200_v11 = vmul.f32 %v1170_v9, %v4240_v20 }
 0x1cf   : > { %v3719_v10 = vpop.eup %3718  ;;  %v1216_v40 = vadd.f32 1e-05, %v1200_v11 }
 0x1d0   : > { %v1295_v12 = vmul.f32 %v3719_v10, %v1215_v0  ;;  %vm1301_vm8 = vweird.f32 %v3719_v10 }
 0x1d1   : > { %3720 = vrsqrt.f32 %v1216_v40  ;;  %vm1302_vm10 = vmor %vm1300_vm9, %vm1301_vm8  ;;  %vm1310_vm12 = vweird.f32 %v1216_v40 }
 0x1d2   : > { %v1296_v14 = vmul.f32 %v3719_v10, %v1295_v12 }
 0x1d4   : > { %v1297_v16 = vmul.f32 0.5, %v1296_v14  ;;  %v1179_v19 = vpop.xlane.xlu0 %1178  ;;  %v1088_v57 = vpop.xlane.xlu1 %1087 }
 0x1d5   : > { %v1173_v28 = vpop.xlane.xlu2 %1172  ;;  %v1203_v25 = vmul.f32 %v1179_v19, %v4240_v20  ;;  %v1111_v29 = vmul.f32 %v4240_v20, %v1088_v57 }
 0x1d6   : > { %v1298_v26 = vsub.f32 1.5, %v1297_v16  ;;  %v1201_v52 = vmul.f32 %v1173_v28, %v4240_v20 }
 0x1d7   : > { %v4519_v42 = vadd.f32 1e-05, %v1203_v25  ;;  %v3721_v31 = vpop.eup %3720  ;;  %v4523_v39 = vsub.f32 %v4385_v22, %v1111_v29 }
 0x1d8   : > { %v1299_v30 = vmul.f32 %v3719_v10, %v1298_v26  ;;  %v1217_v37 = vadd.f32 1e-05, %v1201_v52  ;;  %v1305_v43 = vmul.f32 %v3721_v31, %v1216_v40  ;;  %vm1311_vm11 = vweird.f32 %v3721_v31 }
 0x1d9   : > { %3722 = vrsqrt.f32 %v4519_v42  ;;  %v1143_v45 = vmul.f32 %v4523_v39, %v4523_v39  ;;  %vm4547_vm13 = vmor %vm1310_vm12, %vm1311_vm11  ;;  %vm1340_vm2 = vweird.f32 %v4519_v42 }
 0x1da   : > { %v1303_v41 = vsel %vm1302_vm10, %v3719_v10, %v1299_v30  ;;  %3724 = vrsqrt.f32 %v1217_v37  ;;  %v1306_v18 = vmul.f32 %v3721_v31, %v1305_v43  ;;  %vm1320_vm14 = vweird.f32 %v1217_v37 }
 0x1db   : > { %v1391_v44 = vmul.f32 %v1303_v41, %v4339_v33  ;;  %v1189_v22 = vsel %vm1040_vm0, %v1143_v45, 0.0 }
 0x1dc   : > { %v1307_v6 = vmul.f32 0.5, %v1306_v18  ;;  %1190 = vadd.xlane.f32.xlu0 %v1189_v22 }
 0x1dd   : > { %v1410_v58 = vmul.f32 %v4392_v56, %v1391_v44  ;;  %v1176_v50 = vpop.xlane.xlu2 %1175  ;;  %v1182_v47 = vpop.xlane.xlu0 %1181 }
 0x1de   : > { %v1202_v34 = vmul.f32 %v1176_v50, %v4240_v20  ;;  %v1606_v51 = vpop.xlane.xlu1 %1605  ;;  %v1308_v33 = vsub.f32 1.5, %v1307_v6  ;;  %v1204_v36 = vmul.f32 %v1182_v47, %v4240_v20 }
 0x1df   : > { %v4533_v55 = vpop.eup %3722  ;;  %v1610_v61 = vmul.f32 %v1606_v51, %v4240_v20  ;;  %v1429_v32 = vadd.f32 %v4411_v48, %v1410_v58 }
 0x1e0   : > { %v3725_v2 = vpop.eup %3724  ;;  %v4537_v54 = vadd.f32 1e-05, %v1202_v34  ;;  %v1309_v49 = vmul.f32 %v3721_v31, %v1308_v33  ;;  %v1335_v59 = vmul.f32 %v4533_v55, %v4519_v42  ;;  %v4551_v8 = vadd.f32 1e-05, %v1204_v36 }
 0x1e1   : > { %v1315_v38 = vmul.f32 %v3725_v2, %v1217_v37  ;;  %v4542_v63 = vsub.f32 %v4435_v1, %v1610_v61  ;;  %v1441_v0 = vpack.c.bf16 %v1429_v32, %v1428_v3  ;;  %vm1321_vm15 = vweird.f32 %v3725_v2 }
 0x1e2   : > { %3726 = vrsqrt.f32 %v4537_v54  ;;  %v1313_v1 = vsel %vm4547_vm13, %v3721_v31, %v1309_v49  ;;  %v1336_v12 = vmul.f32 %v4533_v55, %v1335_v59  ;;  %vm1322_vm1 = vmor %vm1320_vm14, %vm1321_vm15  ;;  %vm1341_vm3 = vweird.f32 %v4533_v55 }
 0x1e3   : > { %v1316_v5 = vmul.f32 %v3725_v2, %v1315_v38  ;;  %v1614_v9 = vmul.f32 %v4542_v63, %v4542_v63  ;;  %3504 = vmatmul.msk.bf16.gmra.mxu0 %vm1040_vm0, %v1441_v0  ;;  %3512 = vmatmul.msk.bf16.gmra.mxu1 %vm1040_vm0, %v1441_v0  ;;  %v1392_v23 = vmul.f32 %v1313_v1, %v4350_v53  ;;  %3728 = vrsqrt.f32 %v4551_v8  ;;  %vm1342_vm6 = vmor %vm1340_vm2, %vm1341_vm3 }
 0x1e4   : > { %v1337_v52 = vmul.f32 0.5, %v1336_v12  ;;  %vm1330_vm4 = vweird.f32 %v4537_v54  ;;  %vm1350_vm10 = vweird.f32 %v4551_v8 }
 0x1e5   : > { %v1317_v10 = vmul.f32 0.5, %v1316_v5  ;;  %v1609_v11 = vpop.xlane.xlu2 %1608  ;;  %v1616_v13 = vsel %vm1040_vm0, %v1614_v9, 0.0  ;;  %v1411_v37 = vmul.f32 %v4392_v56, %v1392_v23 }
 0x1e6   : > { %v1611_v40 = vmul.f32 %v1609_v11, %v4240_v20  ;;  %v1185_v14 = vpop.xlane.xlu1 %1184  ;;  %1617 = vadd.xlane.f32.xlu1 %v1616_v13  ;;  %v1338_v43 = vsub.f32 1.5, %v1337_v52  ;;  %v4602_v13 = vpop.f32.mrf.mxu0 }
 0x1e7   : > { %v1318_v15 = vsub.f32 1.5, %v1317_v10  ;;  %v1205_v16 = vmul.f32 %v1185_v14, %v4240_v20  ;;  %v1430_v58 = vadd.f32 %v4411_v48, %v1411_v37 }
 0x1e8   : > { %v3727_v19 = vpop.eup %3726  ;;  %v4567_v57 = vsub.f32 %v4469_v27, %v1611_v40  ;;  %v1339_v6 = vmul.f32 %v4533_v55, %v1338_v43  ;;  %v952_v43 = vld [vmem:[%s5299_s13 + $0x10] sm:$0xff] }
 0x1e9   : > { %v1319_v26 = vmul.f32 %v3725_v2, %v1318_v15  ;;  %v1325_v28 = vmul.f32 %v3727_v19, %v4537_v54  ;;  %v1221_v25 = vadd.f32 1e-05, %v1205_v16  ;;  %v3729_v41 = vpop.eup %3728  ;;  %vm1331_vm5 = vweird.f32 %v3727_v19  ;;  %v4606_v15 = vpop.f32.mrf.mxu1 }
 0x1ea   : > { %v1615_v53 = vmul.f32 %v4567_v57, %v4567_v57  ;;  %v1345_v42 = vmul.f32 %v3729_v41, %v4551_v8  ;;  %vm1332_vm7 = vmor %vm1330_vm4, %vm1331_vm5  ;;  %v1343_v51 = vsel %vm1342_vm6, %v4533_v55, %v1339_v6  ;;  %vm1351_vm11 = vweird.f32 %v3729_v41  ;;  %v950_v6 = vld [vmem:[%s5299_s13] sm:$0xff] }
 0x1eb   : > { %v1323_v29 = vsel %vm1322_vm1, %v3725_v2, %v1319_v26  ;;  %v1326_v30 = vmul.f32 %v3727_v19, %v1325_v28  ;;  %3730 = vrsqrt.f32 %v1221_v25  ;;  %v1395_v2 = vmul.f32 %v1343_v51, %v4374_v17  ;;  %vm1352_vm13 = vmor %vm1350_vm10, %vm1351_vm11 }
 0x1ec   : > { %v1393_v31 = vmul.f32 %v1323_v29, %v4382_v21  ;;  %v1619_v18 = vsel %vm1040_vm0, %v1615_v53, 0.0  ;;  %v1346_v33 = vmul.f32 %v3729_v41, %v1345_v42  ;;  %vm1360_vm8 = vweird.f32 %v1221_v25  ;;  %v951_v42 = vld [vmem:[%s5299_s13 + $0x8] sm:$0xff] }
 0x1ed   : > { %v1327_v4 = vmul.f32 0.5, %v1326_v30  ;;  %1620 = vadd.xlane.f32.xlu2 %v1619_v18  ;;  %v1414_v49 = vmul.f32 %v4392_v56, %v1395_v2  ;;  %vm1776_vm11 = vcmask 523264  }
 0x1ee   : > { %v1412_v44 = vmul.f32 %v4392_v56, %v1393_v31  ;;  %v1347_v54 = vmul.f32 0.5, %v1346_v33  ;;  %v4604_v14 = vpop.f32.mrf.mxu0 }
 0x1ef   : > { %v1328_v27 = vsub.f32 1.5, %v1327_v4 }
 0x1f0   : > { %v1431_v21 = vadd.f32 %v4411_v48, %v1412_v44  ;;  %v1348_v38 = vsub.f32 1.5, %v1347_v54  ;;  %v953_v44 = vld [vmem:[%s5299_s13 + $0x18] sm:$0xff]  ;;  %s5324_s13 = sld [smem:[#allocation28_spill]] }
 0x1f1   : > { %v3731_v45 = vpop.eup %3730  ;;  %v1329_v46 = vmul.f32 %v3727_v19, %v1328_v27  ;;  %v4611_v23 = vpop.f32.mrf.mxu1  ;;  %v4624_v18 = vpack.c.bf16 %v953_v44, %v952_v43 }
 0x1f2   : > { %v1355_v50 = vmul.f32 %v3731_v45, %v1221_v25  ;;  %v1442_v22 = vpack.c.bf16 %v1431_v21, %v1430_v58  ;;  %vm1361_vm9 = vweird.f32 %v3731_v45  ;;  %v1349_v5 = vmul.f32 %v3729_v41, %v1348_v38 }
 0x1f3   : > { %v1333_v47 = vsel %vm1332_vm7, %v3727_v19, %v1329_v46  ;;  %vm1362_vm12 = vmor %vm1360_vm8, %vm1361_vm9  ;;  %1668 = vmatpush.bf16.msra.mxu2 %v4624_v18 }
 0x1f4   : > { %v1356_v34 = vmul.f32 %v3731_v45, %v1355_v50  ;;  %3505 = vmatmul.msk.bf16.gmra.mxu0 %vm1040_vm0, %v1442_v22  ;;  %3513 = vmatmul.msk.bf16.gmra.mxu1 %vm1040_vm0, %v1442_v22  ;;  %v1394_v61 = vmul.f32 %v1333_v47, %v4432_v62  ;;  %v1433_v62 = vadd.f32 %v4411_v48, %v1414_v49 }
 0x1f5   : > { %v1353_v7 = vsel %vm1352_vm13, %v3729_v41, %v1349_v5 }
 0x1f6   : > { %v1357_v32 = vmul.f32 0.5, %v1356_v34  ;;  %v1413_v36 = vmul.f32 %v4392_v56, %v1394_v61  ;;  %v1396_v1 = vmul.f32 %v1353_v7, %v4425_v60  ;;  %v4609_v16 = vpop.f32.mrf.mxu0  ;;  %v4630_v34 = vpack.c.bf16 %v951_v42, %v950_v6 }
 0x1f8   : > { %v1358_v3 = vsub.f32 1.5, %v1357_v32  ;;  %v1432_v59 = vadd.f32 %v4411_v48, %v1413_v36  ;;  %v1415_v10 = vmul.f32 %v4392_v56, %v1396_v1  ;;  %1669 = vmatpush.bf16.msra.mxu2 %v4630_v34 }
 0x1f9   : > { %v4615_v52 = vpop.f32.mrf.mxu1 }
 0x1fa   : > { %v1359_v55 = vmul.f32 %v3731_v45, %v1358_v3  ;;  %v1443_v17 = vpack.c.bf16 %v1433_v62, %v1432_v59  ;;  %v1434_v12 = vadd.f32 %v4411_v48, %v1415_v10 }
 0x1fc   : > { %v1363_v0 = vsel %vm1362_vm12, %v3731_v45, %v1359_v55 }
 0x1fd   : > { %v1397_v9 = vmul.f32 %v1363_v0, %v4466_v24  ;;  %v1188_v24 = vpop.xlane.xlu2 %1187 }
 0x1fe   : > { %v1206_v60 = vmul.f32 %v1188_v24, %v4240_v20  ;;  %v4613_v26 = vpop.f32.mrf.mxu0 }
 0x1ff   : > { %v1416_v8 = vmul.f32 %v4392_v56, %v1397_v9 }
 0x200   : > { %v1222_v19 = vadd.f32 1e-05, %v1206_v60 }
 0x201   : > { %v1435_v11 = vadd.f32 %v4411_v48, %v1416_v8  ;;  %v4620_v41 = vpop.f32.mrf.mxu1 }
 0x202   : > { %3732 = vrsqrt.f32 %v1222_v19  ;;  %vm1370_vm14 = vweird.f32 %v1222_v19 }
 0x203   : > { %v1444_v40 = vpack.c.bf16 %v1435_v11, %v1434_v12 }
 0x204   : > { %3506 = vmatmul.msk.bf16.gmra.mxu0 %vm1040_vm0, %v1443_v17  ;;  %3514 = vmatmul.msk.bf16.gmra.mxu1 %vm1040_vm0, %v1443_v17 }
 0x206   : > { %v4617_v29 = vpop.f32.mrf.mxu0 }
 0x208   : > { %v3733_v28 = vpop.eup %3732 }
 0x209   : > { %v1365_v25 = vmul.f32 %v3733_v28, %v1222_v19  ;;  %vm1371_vm15 = vweird.f32 %v3733_v28  ;;  %v4633_v32 = vpop.f32.mrf.mxu1 }
 0x20a   : > { %vm1372_vm1 = vmor %vm1370_vm14, %vm1371_vm15 }
 0x20b   : > { %v1366_v30 = vmul.f32 %v3733_v28, %v1365_v25 }
 0x20d   : > { %v1367_v37 = vmul.f32 0.5, %v1366_v30  ;;  %v1523_v30 = vpack.c.bf16 %v4617_v29, %v4617_v29 }
 0x20e   : > { %v1491_v21 = vpop.f32.mrf.mxu0 }
 0x20f   : > { %v1368_v27 = vsub.f32 1.5, %v1367_v37  ;;  %v1524_v11 = vpack.c.bf16 %v1491_v21, %v1491_v21  ;;  %v1692_v29 = vunpack.c.l.b16 %v1523_v30 }
 0x211   : > { %v1369_v50 = vmul.f32 %v3733_v28, %v1368_v27  ;;  %v4640_v12 = vpop.f32.mrf.mxu1 }
 0x213   : > { %v1373_v33 = vsel %vm1372_vm1, %v3733_v28, %v1369_v50  ;;  %v3666_v50 = vld [vmem:[%s5296_s3] ss:$0 sm:$0xff] }
 0x214   : > { %3507 = vmatmul.msk.bf16.gmra.mxu0 %vm1040_vm0, %v1444_v40  ;;  %3515 = vmatmul.msk.bf16.gmra.mxu1 %vm1040_vm0, %v1444_v40  ;;  %v1398_v3 = vmul.f32 %v1373_v33, %v4483_v35 }
 0x216   : > { %v1417_v7 = vmul.f32 %v4392_v56, %v1398_v3 }
 0x218   : > { %v1436_v24 = vadd.f32 %v4411_v48, %v1417_v7 }
 0x24f   : > { %v1191_v31 = vpop.xlane.xlu0 %1190 }
 0x250   : > { %v1207_v4 = vmul.f32 %v1191_v31, %v4240_v20 }
 0x252   : > { %v1223_v53 = vadd.f32 1e-05, %v1207_v4 }
 0x254   : > { %3734 = vrsqrt.f32 %v1223_v53  ;;  %vm1380_vm3 = vweird.f32 %v1223_v53 }
 0x259   : > { %v1618_v45 = vpop.xlane.xlu1 %1617 }
 0x25a   : > { %v1622_v46 = vmul.f32 %v1618_v45, %v4240_v20  ;;  %v3735_v58 = vpop.eup %3734  ;;  %v1522_v45 = vpack.c.bf16 %v4613_v26, %v4613_v26 }
 0x25b   : > { %v1375_v22 = vmul.f32 %v3735_v58, %v1223_v53  ;;  %vm1381_vm2 = vweird.f32 %v3735_v58 }
 0x25c   : > { %v1624_v47 = vadd.f32 1e-05, %v1622_v46  ;;  %vm1382_vm4 = vmor %vm1380_vm3, %vm1381_vm2 }
 0x25d   : > { %v1376_v51 = vmul.f32 %v3735_v58, %v1375_v22  ;;  %v1521_v22 = vpack.c.bf16 %v4609_v16, %v4609_v16 }
 0x25e   : > { %3736 = vrsqrt.f32 %v1624_v47  ;;  %vm1632_vm5 = vweird.f32 %v1624_v47 }
 0x25f   : > { %v1377_v61 = vmul.f32 0.5, %v1376_v51  ;;  %v1691_v51 = vunpack.c.l.b16 %v1522_v45  ;;  %v1690_v3 = vunpack.c.l.b16 %v1521_v22 }
 0x260   : > { %v1494_v2 = vpop.f32.mrf.mxu0  ;;  %v1621_v36 = vpop.xlane.xlu2 %1620 }
 0x261   : > { %v1378_v54 = vsub.f32 1.5, %v1377_v61  ;;  %v1623_v49 = vmul.f32 %v1621_v36, %v4240_v20  ;;  %v1525_v9 = vpack.c.bf16 %v1494_v2, %v1494_v2  ;;  %v1559_v46 = vpop.f32.mrf.mxu1  ;;  %v3667_v36 = vld [vmem:[%s5295_s8] ss:$0 sm:$0xff] }
 0x263   : > { %v1379_v59 = vmul.f32 %v3735_v58, %v1378_v54  ;;  %v1625_v62 = vadd.f32 1e-05, %v1623_v49 }
 0x264   : > { %v3737_v38 = vpop.eup %3736 }
 0x265   : > { %v1627_v55 = vmul.f32 %v3737_v38, %v1624_v47  ;;  %v1383_v5 = vsel %vm1382_vm4, %v3735_v58, %v1379_v59  ;;  %3738 = vrsqrt.f32 %v1625_v62  ;;  %vm1633_vm6 = vweird.f32 %v3737_v38 }
 0x266   : > { %v1399_v17 = vmul.f32 %v1383_v5, %v4523_v39  ;;  %v1694_v39 = vunpack.c.l.b16 %v1525_v9  ;;  %vm4646_vm7 = vmor %vm1632_vm5, %vm1633_vm6  ;;  %vm1642_vm8 = vweird.f32 %v1625_v62 }
 0x267   : > { %v1628_v0 = vmul.f32 %v3737_v38, %v1627_v55 }
 0x268   : > { %v1496_v8 = vpop.f32.mrf.mxu0  ;;  %v1418_v35 = vmul.f32 %v4392_v56, %v1399_v17 }
 0x269   : > { %v1629_v1 = vmul.f32 0.5, %v1628_v0  ;;  %v1526_v10 = vpack.c.bf16 %v1496_v8, %v1496_v8  ;;  %v1561_v5 = vpop.f32.mrf.mxu1  ;;  %v1519_v0 = vpack.c.bf16 %v4602_v13, %v4602_v13  ;;  %v1589_v13 = vpack.c.bf16 %v4640_v12, %v4640_v12 }
 0x26a   : > { %v1437_v60 = vadd.f32 %v4411_v48, %v1418_v35  ;;  %v1693_v48 = vunpack.c.l.b16 %v1524_v11  ;;  %v1591_v8 = vpack.c.bf16 %v1561_v5, %v1561_v5  ;;  %v1586_v12 = vpack.c.bf16 %v4615_v52, %v4615_v52 }
 0x26b   : > { %v1630_v40 = vsub.f32 1.5, %v1629_v1  ;;  %v1695_v19 = vunpack.c.l.b16 %v1526_v10  ;;  %v3739_v28 = vpop.eup %3738  ;;  %v1590_v10 = vpack.c.bf16 %v1559_v46, %v1559_v46 }
 0x26c   : > { %v1445_v25 = vpack.c.bf16 %v1437_v60, %v1436_v24  ;;  %v1637_v56 = vmul.f32 %v3739_v28, %v1625_v62  ;;  %vm1643_vm9 = vweird.f32 %v3739_v28  ;;  %v1698_v6 = vpack.c.b16 %v1693_v48, %v1692_v29 }
 0x26d   : > { %v1631_v31 = vmul.f32 %v3737_v38, %v1630_v40  ;;  %v1699_v4 = vpack.c.b16 %v1695_v19, %v1694_v39  ;;  %vm1644_vm10 = vmor %vm1642_vm8, %vm1643_vm9  ;;  %v1697_v62 = vpack.c.b16 %v1691_v51, %v1690_v3  ;;  %v1844_v11 = vunpack.c.l.b16 %v1591_v8 }
 0x26e   : > { %3508 = vmatmul.msk.bf16.gmra.mxu0 %vm1040_vm0, %v1445_v25  ;;  %3516 = vmatmul.msk.bf16.gmra.mxu1 %vm1040_vm0, %v1445_v25  ;;  %v1638_v37 = vmul.f32 %v3739_v28, %v1637_v56  ;;  %v4666_v2 = vsel %vm1040_vm0, %v1698_v6, 0  ;;  %v1588_v24 = vpack.c.bf16 %v4633_v32, %v4633_v32  ;;  %v1843_v60 = vunpack.c.l.b16 %v1590_v10 }
 0x26f   : > { %v4653_v43 = vsel %vm1040_vm0, %v1699_v4, 0  ;;  %v1635_v27 = vsel %vm4646_vm7, %v3737_v38, %v1631_v31  ;;  %v1520_v38 = vpack.c.bf16 %v4604_v14, %v4604_v14  ;;  %v4683_v35 = vsel %vm1040_vm0, %v1697_v62, 0 }
 0x270   : > { %1719 = vmatpush.bf16.xpose.msra.mxu3 %v4653_v43  ;;  %2314 = vmatpush.bf16.xpose.msrb.mxu0 %v4653_v43  ;;  %v1639_v21 = vmul.f32 0.5, %v1638_v37  ;;  %v1646_v42 = vmul.f32 %v1635_v27, %v4542_v63  ;;  %v1688_v14 = vunpack.c.l.b16 %v1519_v0  ;;  %v1587_v39 = vpack.c.bf16 %v4620_v41, %v4620_v41 }
 0x271   : > { %v1499_v44 = vpop.f32.mrf.mxu0  ;;  %v1689_v1 = vunpack.c.l.b16 %v1520_v38  ;;  %v1842_v19 = vunpack.c.l.b16 %v1589_v13  ;;  %v1841_v30 = vunpack.c.l.b16 %v1588_v24  ;;  %v1585_v32 = vpack.c.bf16 %v4611_v23, %v4611_v23  ;;  %v4717_v23 = vpop.f32.mrf.mxu1 }
 0x272   : > { %v1640_v58 = vsub.f32 1.5, %v1639_v21  ;;  %v1527_v61 = vpack.c.bf16 %v1499_v44, %v1499_v44  ;;  %v1651_v63 = vmul.f32 %v3666_v50, %v1646_v42  ;;  %v1840_v41 = vunpack.c.l.b16 %v1587_v39 }
 0x273   : > { %v1696_v40 = vpack.c.b16 %v1689_v1, %v1688_v14  ;;  %v4706_v31 = vpack.c.b16 %v1842_v19, %v1841_v30  ;;  %v1584_v56 = vpack.c.bf16 %v4606_v15, %v4606_v15  ;;  %v1839_v4 = vunpack.c.l.b16 %v1586_v12 }
 0x274   : > { %v1641_v47 = vmul.f32 %v3739_v28, %v1640_v58  ;;  %v4674_v59 = vunpack.c.l.b16 %v1527_v61  ;;  %v1838_v53 = vunpack.c.l.b16 %v1585_v32 }
 0x275   : > { %v4697_v25 = vsel %vm1040_vm0, %v1696_v40, 0  ;;  %v4711_v48 = vpack.c.b16 %v1840_v41, %v1839_v4  ;;  %v1837_v52 = vunpack.c.l.b16 %v1584_v56 }
 0x276   : > { %v1645_v33 = vsel %vm1644_vm10, %v3739_v28, %v1641_v47  ;;  %v4694_v28 = vpack.c.b16 %v1844_v11, %v1843_v60 }
 0x277   : > { %v1647_v26 = vmul.f32 %v1645_v33, %v4567_v57  ;;  %v1656_v57 = vadd.f32 %v3667_v36, %v1651_v63  ;;  %v4714_v37 = vpack.c.b16 %v1838_v53, %v1837_v52 }
 0x278   : > { %1720 = vmatpush.bf16.xpose.msra.mxu3 %v4666_v2  ;;  %2315 = vmatpush.bf16.xpose.msrb.mxu0 %v4666_v2 }
 0x279   : > { %v1501_v54 = vpop.f32.mrf.mxu0  ;;  %v1652_v16 = vmul.f32 %v3666_v50, %v1647_v26  ;;  %v4719_v29 = vpop.f32.mrf.mxu1 }
 0x27a   : > { %v1528_v49 = vpack.c.bf16 %v1501_v54, %v1501_v54  ;;  %v1593_v52 = vpack.c.bf16 %v4719_v29, %v4719_v29 }
 0x27b   : > { %v1657_v17 = vadd.f32 %v3667_v36, %v1652_v16 }
 0x27c   : > { %v4676_v55 = vunpack.c.l.b16 %v1528_v49 }
 0x27d   : > { %v1658_v9 = vpack.c.bf16 %v1657_v17, %v1656_v57 }
 0x27e   : > { %v1744_v7 = vpack.c.b16 %v4676_v55, %v4674_v59  ;;  %v1592_v59 = vpack.c.bf16 %v4717_v23, %v4717_v23 }
 0x27f   : > { %3517 = vmatmul.msk.bf16.vlgmr.msra.gmra.mxu2 %vm1040_vm0, %v1658_v9 }
 0x280   : > { %1721 = vmatpush.bf16.xpose.msra.mxu3 %v4683_v35  ;;  %2316 = vmatpush.bf16.xpose.msrb.mxu0 %v4683_v35  ;;  %v4743_v41 = vsel %vm1040_vm0, %v1744_v7, 0 }
 0x281   : > { %v1504_v44 = vpop.f32.mrf.mxu0  ;;  %v1569_v15 = vpop.f32.mrf.mxu1 }
 0x282   : > { %v1529_v62 = vpack.c.bf16 %v1504_v44, %v1504_v44  ;;  %v1594_v56 = vpack.c.bf16 %v1569_v15, %v1569_v15  ;;  %v1877_v15 = vunpack.c.l.b16 %v1592_v59 }
 0x284   : > { %v1738_v0 = vunpack.c.l.b16 %v1529_v62  ;;  %v1879_v55 = vunpack.c.l.b16 %v1594_v56 }
 0x288   : > { %1722 = vmatpush.bf16.xpose.msra.mxu3 %v4697_v25  ;;  %2317 = vmatpush.bf16.xpose.msrb.mxu0 %v4697_v25 }
 0x289   : > { %v1506_v27 = vpop.f32.mrf.mxu0  ;;  %v1571_v45 = vpop.f32.mrf.mxu1 }
 0x28a   : > { %v1530_v16 = vpack.c.bf16 %v1506_v27, %v1506_v27  ;;  %v1595_v12 = vpack.c.bf16 %v1571_v45, %v1571_v45 }
 0x28c   : > { %v1739_v5 = vunpack.c.l.b16 %v1530_v16  ;;  %v1880_v44 = vunpack.c.l.b16 %v1595_v12 }
 0x28e   : > { %v1745_v1 = vpack.c.b16 %v1739_v5, %v1738_v0  ;;  %v4755_v45 = vpack.c.b16 %v1880_v44, %v1879_v55 }
 0x290   : > { %1860 = vmatpush.bf16.msrb.mxu3 %v4694_v28  ;;  %v4733_v13 = vsel %vm1040_vm0, %v1745_v1, 0 }
 0x291   : > { %v1509_v21 = vpop.f32.mrf.mxu0  ;;  %v1574_v58 = vpop.f32.mrf.mxu1 }
 0x292   : > { %v1531_v26 = vpack.c.bf16 %v1509_v21, %v1509_v21  ;;  %v1596_v60 = vpack.c.bf16 %v1574_v58, %v1574_v58  ;;  %v1878_v21 = vunpack.c.l.b16 %v1593_v52 }
 0x294   : > { %1861 = vmatpush.bf16.msrb.mxu3 %v4706_v31  ;;  %v1740_v3 = vunpack.c.l.b16 %v1531_v26  ;;  %v1881_v4 = vunpack.c.l.b16 %v1596_v60 }
 0x298   : > { %1862 = vmatpush.bf16.msrb.mxu3 %v4711_v48 }
 0x299   : > { %v1511_v46 = vpop.f32.mrf.mxu0  ;;  %v1576_v47 = vpop.f32.mrf.mxu1 }
 0x29a   : > { %v1532_v51 = vpack.c.bf16 %v1511_v46, %v1511_v46  ;;  %v1597_v40 = vpack.c.bf16 %v1576_v47, %v1576_v47  ;;  %v4759_v46 = vpack.c.b16 %v1878_v21, %v1877_v15 }
 0x29c   : > { %1863 = vmatpush.bf16.msrb.mxu3 %v4714_v37  ;;  %v1741_v63 = vunpack.c.l.b16 %v1532_v51  ;;  %v1882_v30 = vunpack.c.l.b16 %v1597_v40 }
 0x29e   : > { %v1746_v38 = vpack.c.b16 %v1741_v63, %v1740_v3  ;;  %v4750_v27 = vpack.c.b16 %v1882_v30, %v1881_v4 }
 0x2a0   : > { %v4727_v57 = vsel %vm1040_vm0, %v1746_v38, 0 }
 0x2eb   : > { %v1514_v6 = vpop.f32.mrf.mxu0  ;;  %v1579_v49 = vpop.f32.mrf.mxu1 }
 0x2ec   : > { %v1533_v42 = vpack.c.bf16 %v1514_v6, %v1514_v6  ;;  %v1598_v11 = vpack.c.bf16 %v1579_v49, %v1579_v49 }
 0x2ee   : > { %v1742_v33 = vunpack.c.l.b16 %v1533_v42  ;;  %v1883_v39 = vunpack.c.l.b16 %v1598_v11 }
 0x2f3   : > { %v1516_v50 = vpop.f32.mrf.mxu0  ;;  %v1581_v14 = vpop.f32.mrf.mxu1 }
 0x2f4   : > { %v1534_v22 = vpack.c.bf16 %v1516_v50, %v1516_v50  ;;  %v1599_v10 = vpack.c.bf16 %v1581_v14, %v1581_v14 }
 0x2f6   : > { %v1743_v61 = vunpack.c.l.b16 %v1534_v22  ;;  %v1884_v24 = vunpack.c.l.b16 %v1599_v10 }
 0x2f8   : > { %v1747_v54 = vpack.c.b16 %v1743_v61, %v1742_v33  ;;  %v4737_v32 = vpack.c.b16 %v1884_v24, %v1883_v39 }
 0x2fa   : > { %v4722_v36 = vsel %vm1040_vm0, %v1747_v54, 0 }
 0x2fb   : > { %1767 = vmatpush.bf16.xpose.msrb.mxu2 %v4722_v36  ;;  %2330 = vmatpush.bf16.xpose.msrb.mxu1 %v4722_v36 }
 0x302   : > { %v1671_v17 = vpop.f32.mrf.mxu2 }
 0x303   : > { %1768 = vmatpush.bf16.xpose.msrb.mxu2 %v4727_v57  ;;  %2331 = vmatpush.bf16.xpose.msrb.mxu1 %v4727_v57  ;;  %v1676_v9 = vmul.f32 0.17677669, %v1671_v17 }
 0x305   : > { %v1678_v8 = vpack.c.bf16 %v1676_v9, %v1676_v9 }
 0x307   : > { %3518 = vmatmul.msk.bf16.vlgmr.msra.gmra.mxu3 %vm1040_vm0, %v1678_v8 }
 0x30a   : > { %v1673_v19 = vpop.f32.mrf.mxu2 }
 0x30b   : > { %1769 = vmatpush.bf16.xpose.msrb.mxu2 %v4733_v13  ;;  %2332 = vmatpush.bf16.xpose.msrb.mxu1 %v4733_v13  ;;  %v1677_v53 = vmul.f32 0.17677669, %v1673_v19 }
 0x30d   : > { %v1679_v7 = vpack.c.bf16 %v1677_v53, %v1677_v53 }
 0x313   : > { %1770 = vmatpush.bf16.xpose.msrb.mxu2 %v4743_v41  ;;  %2333 = vmatpush.bf16.xpose.msrb.mxu1 %v4743_v41 }
 0x31a   : > { %3519 = vmatmul.msk.bf16.vlgmr.msrb.gmra.mxu2 %vm1040_vm0, %v1679_v7 }
 0x31b   : > { %1900 = vmatpush.bf16.msra.mxu2 %v4737_v32 }
 0x31f   : > { %1901 = vmatpush.bf16.msra.mxu2 %v4750_v27 }
 0x323   : > { %1902 = vmatpush.bf16.msra.mxu2 %v4755_v45 }
 0x327   : > { %1903 = vmatpush.bf16.msra.mxu2 %v4759_v46 }
 0x38a   : > { %v1724_v29 = vpop.f32.mrf.mxu3 }
 0x38b   : > { %v1777_v23 = vsel %vm1776_vm11, %v1724_v29, -inf }
 0x38c   : > { %v1778_v58 = vrot.slane %v1777_v23, 4 }
 0x38e   : > { %v1779_v6 = vmax.f32 %v1777_v23, %v1778_v58  ;;  %v988_v23 = vld [vmem:[%s5300_s12 + $0x10] sm:$0xff]  ;;  %v989_v58 = vld [vmem:[%s5300_s12 + $0x18] sm:$0xff] }
 0x390   : > { %v1780_v42 = vrot.slane %v1779_v6, 2 }
 0x392   : > { %v1781_v50 = vmax.f32 %v1779_v6, %v1780_v42  ;;  %v1726_v22 = vpop.f32.mrf.mxu3  ;;  %v986_v6 = vld [vmem:[%s5300_s12] sm:$0xff]  ;;  %v4771_v42 = vpack.c.bf16 %v989_v58, %v988_v23  ;;  %v969_v23 = vld [vmem:[%s4077_s24 + $0x8] sm:$0xff] }
 0x394   : > { %v1782_v47 = vrot.slane %v1781_v50, 1  ;;  %1941 = vmatpush.bf16.msrb.mxu2 %v4771_v42  ;;  %2455 = vmatpush.bf16.msra.mxu1 %v4771_v42 }
 0x396   : > { %v1783_v51 = vmax.f32 %v1781_v50, %v1782_v47  ;;  %v987_v50 = vld [vmem:[%s5300_s12 + $0x8] sm:$0xff]  ;;  %s5323_s12 = sld [smem:[#allocation24_spill]] }
 0x397   : > { %v4775_v47 = vpack.c.bf16 %v987_v50, %v986_v6  ;;  %v976_v6 = vld [vmem:[%s5316_s23 + $0x10] sm:$0xff]  ;;  %v977_v50 = vld [vmem:[%s5316_s23 + $0x18] sm:$0xff] }
 0x398   : > { %v1791_v33 = vsub.f32 %v1724_v29, %v1783_v51 }
 0x399   : > { %1942 = vmatpush.bf16.msrb.mxu2 %v4775_v47  ;;  %2456 = vmatpush.bf16.msra.mxu1 %v4775_v47 }
 0x39a   : > { %v1793_v61 = vmul.f32 1.442695, %v1791_v33 }
 0x39c   : > { %3740 = vpow2.f32 %v1793_v61 }
 0x39d   : > { %v1772_v26 = vpop.f32.mrf.mxu2 }
 0x39e   : > { %v1784_v54 = vsel %vm1776_vm11, %v1772_v26, -inf }
 0x39f   : > { %v1785_v63 = vrot.slane %v1784_v54, 4 }
 0x3a1   : > { %v1786_v3 = vmax.f32 %v1784_v54, %v1785_v63  ;;  %v994_v54 = vld [vmem:[%s5297_s20 + $0x10] sm:$0xff]  ;;  %v995_v63 = vld [vmem:[%s5297_s20 + $0x18] sm:$0xff] }
 0x3a2   : > { %v3741_v49 = vpop.eup %3740 }
 0x3a3   : > { %v1787_v16 = vrot.slane %v1786_v3, 2  ;;  %v1797_v38 = vsel %vm1776_vm11, %v3741_v49, 0.0 }
 0x3a4   : > { %v1798_v62 = vrot.slane %v1797_v38, 4 }
 0x3a5   : > { %v1788_v5 = vmax.f32 %v1786_v3, %v1787_v16  ;;  %v1774_v17 = vpop.f32.mrf.mxu2  ;;  %v4783_v16 = vpack.c.bf16 %v995_v63, %v994_v54  ;;  %v982_v63 = vld [vmem:[%s5317_s22 + $0x10] sm:$0xff] }
 0x3a6   : > { %v1799_v0 = vadd.f32 %v1798_v62, %v1797_v38  ;;  %v992_v62 = vld [vmem:[%s5297_s20] sm:$0xff] }
 0x3a7   : > { %v1789_v9 = vrot.slane %v1788_v5, 1 }
 0x3a8   : > { %v1800_v1 = vrot.slane %v1799_v0, 2 }
 0x3a9   : > { %v1790_v8 = vmax.f32 %v1788_v5, %v1789_v9  ;;  %v993_v5 = vld [vmem:[%s5297_s20 + $0x8] sm:$0xff]  ;;  %v1001_v9 = vld [vmem:[%s4102_s27 + $0x18] sm:$0xff]  ;;  %s5327_s20 = sld [smem:[#allocation29_spill]] }
 0x3aa   : > { %v1801_v10 = vadd.f32 %v1800_v1, %v1799_v0  ;;  %v4789_v17 = vpack.c.bf16 %v993_v5, %v992_v62  ;;  %v1000_v0 = vld [vmem:[%s4102_s27 + $0x10] sm:$0xff]  ;;  %v4795_v1 = vld [vmem:[%s4414_s2] sm:$0xff] }
 0x3ab   : > { %v1792_v14 = vsub.f32 %v1772_v26, %v1790_v8  ;;  %v4798_v8 = vld [vmem:[%s4414_s2 + $0x8] sm:$0xff]  ;;  %s5318_s2 = sld [smem:[#allocation22_spill]]  ;;  %v980_v5 = vld [vmem:[%s5317_s22] sm:$0xff] }
 0x3ac   : > { %v1802_v40 = vrot.slane %v1801_v10, 1 }
 0x3ad   : > { %v1795_v11 = vmul.f32 1.442695, %v1792_v14  ;;  %v1931_v14 = vpack.c.bf16 %v4798_v8, %v4795_v1 }
 0x3ae   : > { %v1803_v24 = vadd.f32 %v1802_v40, %v1801_v10  ;;  %v4802_v10 = vpack.c.bf16 %v1001_v9, %v1000_v0  ;;  %v999_v40 = vld [vmem:[%s4102_s27 + $0x8] sm:$0xff] }
 0x3af   : > { %3742 = vpow2.f32 %v1795_v11  ;;  %v998_v11 = vld [vmem:[%s4102_s27] sm:$0xff]  ;;  %v981_v0 = vld [vmem:[%s5317_s22 + $0x8] sm:$0xff] }
 0x3b0   : > { %3744 = vrcp.f32 %v1803_v24  ;;  %v4808_v24 = vpack.c.bf16 %v999_v40, %v998_v11  ;;  %v4867_v9 = vpack.c.bf16 %v981_v0, %v980_v5 }
 0x3b1   : > { %v3668_v40 = vld [vmem:[%s5318_s2] ss:$0 sm:$0xff] }
 0x3b5   : > { %v3743_v60 = vpop.eup %3742 }
 0x3b6   : > { %v1804_v39 = vsel %vm1776_vm11, %v3743_v60, 0.0  ;;  %v3745_v19 = vpop.eup %3744 }
 0x3b7   : > { %v1805_v12 = vrot.slane %v1804_v39, 4  ;;  %v1813_v30 = vmul.f32 %v3745_v19, %v3741_v49 }
 0x3b9   : > { %v1806_v56 = vadd.f32 %v1805_v12, %v1804_v39  ;;  %v1815_v4 = vadd.f32 1e-08, %v1813_v30  ;;  %v1017_v39 = vld [vmem:[%s5301_s4 + $0x38] sm:$0xff]  ;;  %v1014_v12 = vld [vmem:[%s5301_s4 + $0x20] sm:$0xff]  ;;  %v1015_v30 = vld [vmem:[%s5301_s4 + $0x28] sm:$0xff] }
 0x3bb   : > { %v1807_v53 = vrot.slane %v1806_v56, 2  ;;  %v1817_v52 = vsel %vm1776_vm11, %v1815_v4, 0.0 }
 0x3bc   : > { %1818 = vadd.xlane.f32.xlu0 %v1817_v52 }
 0x3bd   : > { %v1808_v44 = vadd.f32 %v1807_v53, %v1806_v56  ;;  %v4819_v56 = vpack.c.bf16 %v1015_v30, %v1014_v12  ;;  %v1013_v53 = vld [vmem:[%s5301_s4 + $0x18] sm:$0xff]  ;;  %v3669_v12 = vld [vmem:[%s5319_s16] ss:$0 sm:$0xff] }
 0x3bf   : > { %v1809_v59 = vrot.slane %v1808_v44, 1 }
 0x3c1   : > { %v1810_v55 = vadd.f32 %v1809_v59, %v1808_v44  ;;  %v1010_v44 = vld [vmem:[%s5301_s4] sm:$0xff]  ;;  %v1011_v59 = vld [vmem:[%s5301_s4 + $0x8] sm:$0xff] }
 0x3c3   : > { %3746 = vrcp.f32 %v1810_v55  ;;  %v4829_v55 = vpack.c.bf16 %v1011_v59, %v1010_v44 }
 0x3c9   : > { %v3747_v7 = vpop.eup %3746 }
 0x3ca   : > { %v1814_v21 = vmul.f32 %v3747_v7, %v3743_v60  ;;  %v1016_v60 = vld [vmem:[%s5301_s4 + $0x30] sm:$0xff] }
 0x3cb   : > { %v4813_v19 = vpack.c.bf16 %v1017_v39, %v1016_v60  ;;  %v970_v7 = vld [vmem:[%s4077_s24 + $0x10] sm:$0xff] }
 0x3cc   : > { %v1816_v15 = vadd.f32 1e-08, %v1814_v21  ;;  %v971_v21 = vld [vmem:[%s4077_s24 + $0x18] sm:$0xff] }
 0x3ce   : > { %v1820_v29 = vsel %vm1776_vm11, %v1816_v15, 0.0 }
 0x3cf   : > { %1821 = vadd.xlane.f32.xlu1 %v1820_v29  ;;  %v968_v29 = vld [vmem:[%s4077_s24] sm:$0xff] }
 0x3d0   : > { %v4845_v58 = vpack.c.bf16 %v969_v23, %v968_v29 }
 0x42f   : > { %v1819_v22 = vpop.xlane.xlu0 %1818 }
 0x430   : > { %3748 = vrcp.f32 %v1819_v22  ;;  %v4851_v22 = vpack.c.bf16 %v977_v50, %v976_v6 }
 0x436   : > { %v3749_v51 = vpop.eup %3748 }
 0x437   : > { %v1825_v33 = vmul.f32 %v3749_v51, %v1815_v4  ;;  %v1012_v4 = vld [vmem:[%s5301_s4 + $0x10] sm:$0xff]  ;;  %v974_v51 = vld [vmem:[%s5316_s23] sm:$0xff]  ;;  %s5320_s4 = sld [smem:[#allocation23_spill]] }
 0x438   : > { %v4824_v52 = vpack.c.bf16 %v1013_v53, %v1012_v4 }
 0x439   : > { %v1827_v61 = vpack.c.bf16 %v1825_v33, %v1825_v33  ;;  %v975_v33 = vld [vmem:[%s5316_s23 + $0x8] sm:$0xff] }
 0x43b   : > { %3520 = vmatmul.msk.bf16.vlgmr.msrb.gmra.mxu3 %vm1776_vm11, %v1827_v61  ;;  %v4856_v61 = vpack.c.bf16 %v975_v33, %v974_v51 }
 0x43d   : > { %v3670_v6 = vld [vmem:[%s5320_s4] ss:$0 sm:$0xff] }
 0x442   : > { %v1822_v26 = vpop.xlane.xlu1 %1821 }
 0x443   : > { %3750 = vrcp.f32 %v1822_v26 }
 0x449   : > { %v3751_v3 = vpop.eup %3750 }
 0x44a   : > { %v1826_v49 = vmul.f32 %v3751_v3, %v1816_v15  ;;  %v4839_v15 = vpack.c.bf16 %v971_v21, %v970_v7  ;;  %v983_v3 = vld [vmem:[%s5317_s22 + $0x18] sm:$0xff] }
 0x44c   : > { %v1828_v38 = vpack.c.bf16 %v1826_v49, %v1826_v49  ;;  %1923 = vmatpush.bf16.msra.mxu3 %v4839_v15  ;;  %2437 = vmatpush.bf16.msra.mxu0 %v4839_v15 }
 0x44e   : > { %3521 = vmatmul.msk.bf16.vlgmr.msra.gmra.mxu2 %vm1776_vm11, %v1828_v38  ;;  %v4861_v38 = vpack.c.bf16 %v983_v3, %v982_v63  ;;  %v3671_v63 = vld [vmem:[%s5321_s5] ss:$0 sm:$0xff] }
 0x44f   : > { %2019 = vmatpush.bf16.msra.mxu2 %v4783_v16 }
 0x450   : > { %1924 = vmatpush.bf16.msra.mxu3 %v4845_v58  ;;  %2438 = vmatpush.bf16.msra.mxu0 %v4845_v58 }
 0x453   : > { %2020 = vmatpush.bf16.msra.mxu2 %v4789_v17 }
 0x454   : > { %2005 = vmatpush.bf16.msrb.mxu3 %v4851_v22 }
 0x458   : > { %2006 = vmatpush.bf16.msrb.mxu3 %v4856_v61 }
 0x45e   : > { %3523 = vmatmul.msk.bf16.vlgmr.msrb.gmra.mxu2 %vm1040_vm0, %v1931_v14 }
 0x45f   : > { %2101 = vmatpush.bf16.msrb.mxu2 %v4802_v10 }
 0x463   : > { %2102 = vmatpush.bf16.msrb.mxu2 %v4808_v24 }
 0x46e   : > { %3527 = vmatmul.msk.bf16.vlgmr.msra.gmra.mxu2 %vm1040_vm0, %v1931_v14 }
 0x46f   : > { %2211 = vmatpush.bf16.msra.mxu2 %v4813_v19 }
 0x473   : > { %2212 = vmatpush.bf16.msra.mxu2 %v4819_v56 }
 0x477   : > { %2213 = vmatpush.bf16.msra.mxu2 %v4824_v52 }
 0x47b   : > { %2214 = vmatpush.bf16.msra.mxu2 %v4829_v55 }
 0x47e   : > { %3531 = vmatmul.msk.bf16.vlgmr.msrb.gmra.mxu2 %vm1040_vm0, %v1931_v14 }
 0x47f   : > { %2398 = vmatpush.bf16.msrb.mxu2 %v4694_v28 }
 0x483   : > { %2399 = vmatpush.bf16.msrb.mxu2 %v4706_v31 }
 0x487   : > { %2400 = vmatpush.bf16.msrb.mxu2 %v4711_v48 }
 0x48b   : > { %2401 = vmatpush.bf16.msrb.mxu2 %v4714_v37 }
 0x4be   : > { %v1865_v26 = vpop.f32.mrf.mxu3 }
 0x4c6   : > { %v1867_v54 = vpop.f32.mrf.mxu3 }
 0x4d1   : > { %v1905_v49 = vpop.f32.mrf.mxu2 }
 0x4d2   : > { %v1909_v62 = vpack.c.bf16 %v1905_v49, %v1865_v26 }
 0x4d4   : > { %3522 = vmatmul.msk.bf16.vlgmr.msra.gmra.mxu3 %vm1040_vm0, %v1909_v62 }
 0x4d5   : > { %2083 = vmatpush.bf16.msra.mxu3 %v4861_v38 }
 0x4d9   : > { %v1907_v14 = vpop.f32.mrf.mxu2  ;;  %2084 = vmatpush.bf16.msra.mxu3 %v4867_v9 }
 0x4e1   : > { %v1944_v11 = vpop.f32.mrf.mxu2 }
 0x4e4   : > { %3526 = vmatmul.msk.bf16.vlgmr.msrb.gmra.mxu3 %vm1040_vm0, %v1909_v62 }
 0x4e9   : > { %v1946_v30 = vpop.f32.mrf.mxu2 }
 0x4f1   : > { %v2022_v29 = vpop.f32.mrf.mxu2 }
 0x4f4   : > { %3530 = vmatmul.msk.bf16.vlgmr.msra.gmra.mxu3 %vm1040_vm0, %v1909_v62 }
 0x4f9   : > { %v2024_v62 = vpop.f32.mrf.mxu2 }
 0x557   : > { %v1926_v60 = vpop.f32.mrf.mxu3 }
 0x558   : > { %v1927_v39 = vadd.f32 %v3668_v40, %v1926_v60 }
 0x55a   : > { %v1949_v4 = vadd.f32 %v1944_v11, %v1927_v39 }
 0x55c   : > { %v1955_v53 = vadd.f32 %v3669_v12, %v1949_v4 }
 0x55e   : > { %v3524_v44 = vmul.f32 -1.442695, %v1955_v53 }
 0x55f   : > { %v1928_v59 = vpop.f32.mrf.mxu3 }
 0x560   : > { %3752 = vpow2.f32 %v3524_v44  ;;  %v1929_v7 = vadd.f32 %v3668_v40, %v1928_v59  ;;  %v2104_v59 = vpop.f32.mrf.mxu2 }
 0x562   : > { %v1950_v21 = vadd.f32 %v1946_v30, %v1929_v7 }
 0x564   : > { %v1956_v23 = vadd.f32 %v3669_v12, %v1950_v21  ;;  %v3672_v21 = vld [vmem:[%s5322_s9] ss:$0 sm:$0xff] }
 0x566   : > { %v3753_v50 = vpop.eup %3752  ;;  %v3525_v51 = vmul.f32 -1.442695, %v1956_v23 }
 0x567   : > { %v1963_v33 = vadd.f32 1.0, %v3753_v50  ;;  %v2008_v26 = vpop.f32.mrf.mxu3 }
 0x568   : > { %3754 = vpow2.f32 %v3525_v51  ;;  %v2009_v54 = vadd.f32 %v3670_v6, %v2008_v26 }
 0x569   : > { %3756 = vrcp.f32 %v1963_v33  ;;  %v1976_v44 = vand.u32 2147483648, %v1963_v33  ;;  %v1974_v7 = vand.u32 2147483647, %v1963_v33  ;;  %vm1970_vm13 = vweird.f32 %v1963_v33 }
 0x56a   : > { %v2027_v3 = vadd.f32 %v2022_v29, %v2009_v54 }
 0x56b   : > { %v1977_v54 = vor.u32 1.1754944e-38, %v1976_v44  ;;  %vm1975_vm15 = vcmp.eq.f32.partialorder %v1974_v7, 8.507059e+37 }
 0x56c   : > { %v2033_v49 = vadd.f32 %v3671_v63, %v2027_v3 }
 0x56e   : > { %v3755_v5 = vpop.eup %3754  ;;  %v3528_v0 = vmul.f32 -1.442695, %v2033_v49 }
 0x56f   : > { %v3757_v14 = vpop.eup %3756  ;;  %v1964_v11 = vadd.f32 1.0, %v3755_v5  ;;  %v2010_v40 = vpop.f32.mrf.mxu3 }
 0x570   : > { %3758 = vpow2.f32 %v3528_v0  ;;  %v2011_v60 = vadd.f32 %v3670_v6, %v2010_v40  ;;  %v1966_v39 = vmul.f32 %v3757_v14, %v1963_v33  ;;  %vm1971_vm12 = vweird.f32 %v3757_v14  ;;  %v3673_v0 = vld [vmem:[%s5323_s12] ss:$0 sm:$0xff] }
 0x571   : > { %3760 = vrcp.f32 %v1964_v11  ;;  %vm1972_vm14 = vmor %vm1970_vm13, %vm1971_vm12  ;;  %vm1985_vm2 = vweird.f32 %v1964_v11 }
 0x572   : > { %v2028_v12 = vadd.f32 %v2024_v62, %v2011_v60  ;;  %v1967_v30 = vsub.f32 1.0, %v1966_v39  ;;  %v1991_v60 = vand.u32 2147483648, %v1964_v11 }
 0x574   : > { %v2034_v4 = vadd.f32 %v3671_v63, %v2028_v12  ;;  %v1968_v53 = vmul.f32 %v3757_v14, %v1967_v30  ;;  %v2105_v63 = vadd.f32 %v3672_v21, %v2104_v59  ;;  %v1989_v12 = vand.u32 2147483647, %v1964_v11 }
 0x575   : > { %v1992_v7 = vor.u32 1.1754944e-38, %v1991_v60 }
 0x576   : > { %v3759_v29 = vpop.eup %3758  ;;  %v3529_v23 = vmul.f32 -1.442695, %v2034_v4  ;;  %v1969_v50 = vadd.f32 %v3757_v14, %v1968_v53  ;;  %v2106_v4 = vpop.f32.mrf.mxu2  ;;  %vm1990_vm4 = vcmp.eq.f32.partialorder %v1989_v12, 8.507059e+37 }
 0x577   : > { %v3761_v51 = vpop.eup %3760  ;;  %v2041_v26 = vadd.f32 1.0, %v3759_v29  ;;  %v2086_v62 = vpop.f32.mrf.mxu3 }
 0x578   : > { %3762 = vpow2.f32 %v3529_v23  ;;  %v1973_v6 = vsel %vm1972_vm14, %v3757_v14, %v1969_v50  ;;  %v1981_v3 = vmul.f32 %v3761_v51, %v1964_v11  ;;  %vm1986_vm1 = vweird.f32 %v3761_v51 }
 0x579   : > { %3764 = vrcp.f32 %v2041_v26  ;;  %v1978_v49 = vsel %vm1975_vm15, %v1977_v54, %v1973_v6  ;;  %v2087_v44 = vadd.f32 %v3673_v0, %v2086_v62  ;;  %vm1987_vm3 = vmor %vm1985_vm2, %vm1986_vm1  ;;  %v2107_v50 = vadd.f32 %v3672_v21, %v2106_v4 }
 0x57a   : > { %v1982_v5 = vsub.f32 1.0, %v1981_v3  ;;  %v2109_v39 = vmul.f32 %v2105_v63, %v1978_v49  ;;  %v2054_v3 = vand.u32 2147483648, %v2041_v26  ;;  %vm2048_vm6 = vweird.f32 %v2041_v26 }
 0x57c   : > { %v1983_v40 = vmul.f32 %v3761_v51, %v1982_v5  ;;  %v2111_v23 = vadd.f32 %v2109_v39, %v2087_v44  ;;  %v2052_v5 = vand.u32 2147483647, %v2041_v26 }
 0x57e   : > { %v3763_v33 = vpop.eup %3762  ;;  %v1984_v30 = vadd.f32 %v3761_v51, %v1983_v40  ;;  %vm2053_vm8 = vcmp.eq.f32.partialorder %v2052_v5, 8.507059e+37 }
 0x57f   : > { %v3765_v53 = vpop.eup %3764  ;;  %v2042_v14 = vadd.f32 1.0, %v3763_v33  ;;  %v2088_v63 = vpop.f32.mrf.mxu3 }
 0x580   : > { %v1988_v29 = vsel %vm1987_vm3, %v3761_v51, %v1984_v30  ;;  %v2044_v59 = vmul.f32 %v3765_v53, %v2041_v26  ;;  %vm2049_vm5 = vweird.f32 %v3765_v53  ;;  %v2089_v33 = vadd.f32 %v3673_v0, %v2088_v63 }
 0x581   : > { %3766 = vrcp.f32 %v2042_v14  ;;  %v1993_v6 = vsel %vm1990_vm4, %v1992_v7, %v1988_v29  ;;  %vm2050_vm7 = vmor %vm2048_vm6, %vm2049_vm5  ;;  %v2055_v51 = vor.u32 1.1754944e-38, %v2054_v3  ;;  %v2067_v29 = vand.u32 2147483647, %v2042_v14 }
 0x582   : > { %v2045_v54 = vsub.f32 1.0, %v2044_v59  ;;  %3768 = vtanh.f32 %v2111_v23  ;;  %v2110_v11 = vmul.f32 %v2107_v50, %v1993_v6  ;;  %v2069_v7 = vand.u32 2147483648, %v2042_v14 }
 0x583   : > { %vm2063_vm10 = vweird.f32 %v2042_v14  ;;  %vm2068_vm13 = vcmp.eq.f32.partialorder %v2067_v29, 8.507059e+37 }
 0x584   : > { %v2046_v49 = vmul.f32 %v3765_v53, %v2045_v54  ;;  %v2112_v12 = vadd.f32 %v2110_v11, %v2089_v33 }
 0x586   : > { %v2047_v40 = vadd.f32 %v3765_v53, %v2046_v49  ;;  %3770 = vtanh.f32 %v2112_v12 }
 0x587   : > { %v3767_v62 = vpop.eup %3766 }
 0x588   : > { %v2051_v60 = vsel %vm2050_vm7, %v3765_v53, %v2047_v40  ;;  %v2059_v39 = vmul.f32 %v3767_v62, %v2042_v14  ;;  %v3769_v44 = vpop.eup %3768  ;;  %vm2064_vm9 = vweird.f32 %v3767_v62  ;;  %v2070_v53 = vor.u32 1.1754944e-38, %v2069_v7 }
 0x589   : > { %v2056_v21 = vsel %vm2053_vm8, %v2055_v51, %v2051_v60  ;;  %vm2065_vm12 = vmor %vm2063_vm10, %vm2064_vm9 }
 0x58a   : > { %v2115_v30 = vsub.f32 1.0, %v2056_v21  ;;  %v2060_v4 = vsub.f32 1.0, %v2059_v39  ;;  %v2119_v23 = vmul.f32 %v4795_v1, %v2056_v21 }
 0x58c   : > { %v2117_v59 = vmul.f32 %v3769_v44, %v2115_v30  ;;  %v2061_v50 = vmul.f32 %v3767_v62, %v2060_v4  ;;  %v3771_v49 = vpop.eup %3770  ;;  %v1006_v4 = vld [vmem:[%s5324_s13 + $0x10] sm:$0xff]  ;;  %v1007_v44 = vld [vmem:[%s5324_s13 + $0x18] sm:$0xff] }
 0x58d   : > { %v4896_v29 = vpack.c.bf16 %v1007_v44, %v1006_v4 }
 0x58e   : > { %v4879_v26 = vadd.f32 %v2119_v23, %v2117_v59  ;;  %v2062_v0 = vadd.f32 %v3767_v62, %v2061_v50  ;;  %v1004_v59 = vld [vmem:[%s5324_s13] sm:$0xff]  ;;  %v1005_v23 = vld [vmem:[%s5324_s13 + $0x8] sm:$0xff]  ;;  %s5326_s13 = sld [smem:[#allocation17_spill]] }
 0x58f   : > { %2193 = vmatpush.bf16.msrb.mxu3 %v4896_v29 }
 0x590   : > { %v2125_v6 = vsel %vm1040_vm0, %v4879_v26, 0.0  ;;  %v2066_v54 = vsel %vm2065_vm12, %v3767_v62, %v2062_v0  ;;  %v4902_v0 = vpack.c.bf16 %v1005_v23, %v1004_v59 }
 0x591   : > { %2126 = vadd.xlane.f32.xlu2 %v2125_v6  ;;  %v2071_v3 = vsel %vm2068_vm13, %v2070_v53, %v2066_v54 }
 0x592   : > { %v2116_v63 = vsub.f32 1.0, %v2071_v3  ;;  %v2120_v1 = vmul.f32 %v4798_v8, %v2071_v3 }
 0x593   : > { %2194 = vmatpush.bf16.msrb.mxu3 %v4902_v0 }
 0x594   : > { %v2118_v5 = vmul.f32 %v3771_v49, %v2116_v63  ;;  %v3675_v59 = vld [vmem:[%s5326_s13] ss:$0 sm:$0xff] }
 0x596   : > { %v4884_v11 = vadd.f32 %v2120_v1, %v2118_v5 }
 0x597   : > { %2295 = vmatpush.bf16.msra.mxu3 %v4624_v18 }
 0x598   : > { %v2128_v14 = vsel %vm1040_vm0, %v4884_v11, 0.0 }
 0x599   : > { %2129 = vadd.xlane.f32.xlu0 %v2128_v14 }
 0x59b   : > { %2296 = vmatpush.bf16.msra.mxu3 %v4630_v34 }
 0x604   : > { %v2127_v40 = vpop.xlane.xlu2 %2126 }
 0x605   : > { %v2131_v33 = vmul.f32 %v2127_v40, %v4240_v20 }
 0x607   : > { %v2133_v62 = vsub.f32 %v4879_v26, %v2131_v33 }
 0x609   : > { %v2135_v51 = vmul.f32 %v2133_v62, %v2133_v62 }
 0x60b   : > { %v2137_v60 = vsel %vm1040_vm0, %v2135_v51, 0.0 }
 0x60c   : > { %v2130_v39 = vpop.xlane.xlu0 %2129  ;;  %2138 = vadd.xlane.f32.xlu1 %v2137_v60 }
 0x60d   : > { %v2132_v8 = vmul.f32 %v2130_v39, %v4240_v20 }
 0x60f   : > { %v2134_v12 = vsub.f32 %v4884_v11, %v2132_v8 }
 0x611   : > { %v2136_v21 = vmul.f32 %v2134_v12, %v2134_v12 }
 0x613   : > { %v2140_v30 = vsel %vm1040_vm0, %v2136_v21, 0.0 }
 0x614   : > { %2141 = vadd.xlane.f32.xlu2 %v2140_v30  ;;  %v3674_v30 = vld [vmem:[%s5325_s17] ss:$0 sm:$0xff] }
 0x67f   : > { %v2139_v7 = vpop.xlane.xlu1 %2138 }
 0x680   : > { %v2143_v50 = vmul.f32 %v2139_v7, %v4240_v20 }
 0x682   : > { %v2145_v53 = vadd.f32 1e-05, %v2143_v50 }
 0x684   : > { %3772 = vrsqrt.f32 %v2145_v53  ;;  %vm2153_vm15 = vweird.f32 %v2145_v53 }
 0x687   : > { %v2142_v6 = vpop.xlane.xlu2 %2141 }
 0x688   : > { %v2144_v54 = vmul.f32 %v2142_v6, %v4240_v20 }
 0x68a   : > { %v3773_v3 = vpop.eup %3772  ;;  %v2146_v63 = vadd.f32 1e-05, %v2144_v54 }
 0x68b   : > { %v2148_v49 = vmul.f32 %v3773_v3, %v2145_v53  ;;  %vm2154_vm14 = vweird.f32 %v3773_v3 }
 0x68c   : > { %3774 = vrsqrt.f32 %v2146_v63  ;;  %vm2155_vm1 = vmor %vm2153_vm15, %vm2154_vm14  ;;  %vm2163_vm3 = vweird.f32 %v2146_v63 }
 0x68d   : > { %v2149_v5 = vmul.f32 %v3773_v3, %v2148_v49 }
 0x68f   : > { %v2150_v1 = vmul.f32 0.5, %v2149_v5 }
 0x691   : > { %v2151_v14 = vsub.f32 1.5, %v2150_v1 }
 0x692   : > { %v3775_v40 = vpop.eup %3774 }
 0x693   : > { %v2152_v33 = vmul.f32 %v3773_v3, %v2151_v14  ;;  %v2158_v51 = vmul.f32 %v3775_v40, %v2146_v63  ;;  %vm2164_vm2 = vweird.f32 %v3775_v40 }
 0x694   : > { %vm2165_vm4 = vmor %vm2163_vm3, %vm2164_vm2 }
 0x695   : > { %v2159_v60 = vmul.f32 %v3775_v40, %v2158_v51  ;;  %v2156_v39 = vsel %vm2155_vm1, %v3773_v3, %v2152_v33  ;;  %v3676_v3 = vld [vmem:[%s5327_s20] ss:$0 sm:$0xff] }
 0x696   : > { %v2167_v4 = vmul.f32 %v2156_v39, %v2133_v62  ;;  %v3677_v33 = vld [vmem:[%s4152_s19] ss:$0 sm:$0xff] }
 0x697   : > { %v2160_v8 = vmul.f32 0.5, %v2159_v60 }
 0x698   : > { %v2172_v23 = vmul.f32 %v3674_v30, %v2167_v4 }
 0x699   : > { %v2161_v21 = vsub.f32 1.5, %v2160_v8 }
 0x69a   : > { %v2177_v54 = vadd.f32 %v3675_v59, %v2172_v23 }
 0x69b   : > { %v2162_v44 = vmul.f32 %v3775_v40, %v2161_v21 }
 0x69d   : > { %v2166_v7 = vsel %vm2165_vm4, %v3775_v40, %v2162_v44 }
 0x69e   : > { %v2168_v50 = vmul.f32 %v2166_v7, %v2134_v12 }
 0x6a0   : > { %v2173_v6 = vmul.f32 %v3674_v30, %v2168_v50 }
 0x6a2   : > { %v2178_v49 = vadd.f32 %v3675_v59, %v2173_v6 }
 0x6a4   : > { %v2179_v53 = vpack.c.bf16 %v2178_v49, %v2177_v54 }
 0x6a6   : > { %3532 = vmatmul.msk.bf16.vlgmr.msrb.gmra.mxu3 %vm1040_vm0, %v2179_v53 }
 0x6a7   : > { %2414 = vmatpush.bf16.msrb.mxu3 %v4737_v32 }
 0x6ab   : > { %2415 = vmatpush.bf16.msrb.mxu3 %v4750_v27 }
 0x6af   : > { %2416 = vmatpush.bf16.msrb.mxu3 %v4755_v45 }
 0x6b3   : > { %2417 = vmatpush.bf16.msrb.mxu3 %v4759_v46 }
 0x729   : > { %v2196_v62 = vpop.f32.mrf.mxu3 }
 0x72a   : > { %v2197_v63 = vadd.f32 %v3676_v3, %v2196_v62 }
 0x72c   : > { %v2201_v1 = vmax.f32 %v2197_v63, 0.0 }
 0x731   : > { %v2198_v5 = vpop.f32.mrf.mxu3 }
 0x732   : > { %v2199_v12 = vadd.f32 %v3676_v3, %v2198_v5 }
 0x734   : > { %v2202_v14 = vmax.f32 %v2199_v12, 0.0 }
 0x736   : > { %v2203_v40 = vpack.c.bf16 %v2202_v14, %v2201_v1 }
 0x738   : > { %3533 = vmatmul.msk.bf16.vlgmr.msra.gmra.mxu2 %vm1776_vm11, %v2203_v40 }
 0x739   : > { %2519 = vmatpush.bf16.msra.mxu2 %v4851_v22 }
 0x73d   : > { %2520 = vmatpush.bf16.msra.mxu2 %v4856_v61 }
 0x7bb   : > { %v2216_v51 = vpop.f32.mrf.mxu2 }
 0x7bc   : > { %v2221_v60 = vadd.f32 %v2216_v51, %v4879_v26 }
 0x7be   : > { %v4921_v39 = vadd.f32 %v3677_v33, %v2221_v60 }
 0x7c0   : > { %v2231_v8 = vsel %vm1040_vm0, %v4921_v39, 0.0 }
 0x7c1   : > { %2232 = vadd.xlane.f32.xlu0 %v2231_v8 }
 0x7c3   : > { %v2218_v21 = vpop.f32.mrf.mxu2 }
 0x7c4   : > { %v2222_v30 = vadd.f32 %v2218_v21, %v4884_v11 }
 0x7c6   : > { %v4926_v4 = vadd.f32 %v3677_v33, %v2222_v30 }
 0x7c8   : > { %v2234_v44 = vsel %vm1040_vm0, %v4926_v4, 0.0 }
 0x7c9   : > { %2235 = vadd.xlane.f32.xlu1 %v2234_v44 }
 0x834   : > { %v2233_v7 = vpop.xlane.xlu0 %2232 }
 0x835   : > { %v2237_v59 = vmul.f32 %v2233_v7, %v4240_v20 }
 0x837   : > { %v2239_v26 = vsub.f32 %v4921_v39, %v2237_v59 }
 0x839   : > { %v2241_v23 = vmul.f32 %v2239_v26, %v2239_v26 }
 0x83b   : > { %v2243_v50 = vsel %vm1040_vm0, %v2241_v23, 0.0 }
 0x83c   : > { %2244 = vadd.xlane.f32.xlu2 %v2243_v50  ;;  %v2236_v6 = vpop.xlane.xlu1 %2235  ;;  %v3678_v50 = vld [vmem:[%s5296_s3] ss:$0 sm:$0xff] }
 0x83d   : > { %v2238_v54 = vmul.f32 %v2236_v6, %v4240_v20 }
 0x83f   : > { %v2240_v11 = vsub.f32 %v4926_v4, %v2238_v54 }
 0x841   : > { %v2242_v49 = vmul.f32 %v2240_v11, %v2240_v11 }
 0x843   : > { %v2246_v53 = vsel %vm1040_vm0, %v2242_v49, 0.0 }
 0x844   : > { %2247 = vadd.xlane.f32.xlu0 %v2246_v53  ;;  %v3679_v53 = vld [vmem:[%s5295_s8] ss:$0 sm:$0xff] }
 0x8af   : > { %v2245_v62 = vpop.xlane.xlu2 %2244 }
 0x8b0   : > { %v2249_v3 = vmul.f32 %v2245_v62, %v4240_v20 }
 0x8b2   : > { %v2251_v63 = vadd.f32 1e-05, %v2249_v3 }
 0x8b4   : > { %3776 = vrsqrt.f32 %v2251_v63  ;;  %vm2259_vm6 = vweird.f32 %v2251_v63 }
 0x8b7   : > { %v2248_v5 = vpop.xlane.xlu0 %2247 }
 0x8b8   : > { %v2250_v12 = vmul.f32 %v2248_v5, %v4240_v20 }
 0x8ba   : > { %v3777_v1 = vpop.eup %3776  ;;  %v2252_v14 = vadd.f32 1e-05, %v2250_v12 }
 0x8bb   : > { %v2254_v40 = vmul.f32 %v3777_v1, %v2251_v63  ;;  %vm2260_vm5 = vweird.f32 %v3777_v1 }
 0x8bc   : > { %3778 = vrsqrt.f32 %v2252_v14  ;;  %vm2261_vm7 = vmor %vm2259_vm6, %vm2260_vm5  ;;  %vm2269_vm9 = vweird.f32 %v2252_v14 }
 0x8bd   : > { %v2255_v33 = vmul.f32 %v3777_v1, %v2254_v40 }
 0x8bf   : > { %v2256_v51 = vmul.f32 0.5, %v2255_v33 }
 0x8c1   : > { %v2257_v60 = vsub.f32 1.5, %v2256_v51 }
 0x8c2   : > { %v3779_v8 = vpop.eup %3778 }
 0x8c3   : > { %v2258_v21 = vmul.f32 %v3777_v1, %v2257_v60  ;;  %v2264_v30 = vmul.f32 %v3779_v8, %v2252_v14  ;;  %vm2270_vm8 = vweird.f32 %v3779_v8  ;;  %v4951_v60 = vpack.c.bf16 %v4926_v4, %v4921_v39 }
 0x8c4   : > { %vm2271_vm10 = vmor %vm2269_vm9, %vm2270_vm8 }
 0x8c5   : > { %v2265_v44 = vmul.f32 %v3779_v8, %v2264_v30  ;;  %v2262_v7 = vsel %vm2261_vm7, %v3777_v1, %v2258_v21 }
 0x8c6   : > { %v2273_v6 = vmul.f32 %v2262_v7, %v2239_v26 }
 0x8c7   : > { %v2266_v59 = vmul.f32 0.5, %v2265_v44 }
 0x8c8   : > { %v2278_v62 = vmul.f32 %v3678_v50, %v2273_v6 }
 0x8c9   : > { %v2267_v23 = vsub.f32 1.5, %v2266_v59 }
 0x8ca   : > { %v2283_v12 = vadd.f32 %v3679_v53, %v2278_v62 }
 0x8cb   : > { %v2268_v54 = vmul.f32 %v3779_v8, %v2267_v23 }
 0x8cd   : > { %v2272_v49 = vsel %vm2271_vm10, %v3779_v8, %v2268_v54 }
 0x8ce   : > { %v2274_v3 = vmul.f32 %v2272_v49, %v2240_v11 }
 0x8d0   : > { %v2279_v5 = vmul.f32 %v3678_v50, %v2274_v3 }
 0x8d2   : > { %v2284_v40 = vadd.f32 %v3679_v53, %v2279_v5 }
 0x8d4   : > { %v2285_v33 = vpack.c.bf16 %v2284_v40, %v2283_v12 }
 0x8d6   : > { %3534 = vmatmul.msk.bf16.vlgmr.msra.gmra.mxu3 %vm1040_vm0, %v2285_v33 }
 0x8d7   : > { %2533 = vmatpush.bf16.msra.mxu3 %v4783_v16 }
 0x8db   : > { %2534 = vmatpush.bf16.msra.mxu3 %v4789_v17 }
 0x959   : > { %v2298_v63 = vpop.f32.mrf.mxu3 }
 0x95a   : > { %v2303_v1 = vmul.f32 0.17677669, %v2298_v63 }
 0x95c   : > { %v2305_v26 = vpack.c.bf16 %v2303_v1, %v2303_v1 }
 0x95e   : > { %3535 = vmatmul.msk.bf16.vlgmr.msrb.gmra.mxu0 %vm1040_vm0, %v2305_v26 }
 0x95f   : > { %2597 = vmatpush.bf16.msrb.mxu0 %v4861_v38 }
 0x961   : > { %v2300_v14 = vpop.f32.mrf.mxu3 }
 0x962   : > { %v2304_v51 = vmul.f32 0.17677669, %v2300_v14 }
 0x963   : > { %2598 = vmatpush.bf16.msrb.mxu0 %v4867_v9 }
 0x964   : > { %v2306_v11 = vpack.c.bf16 %v2304_v51, %v2304_v51 }
 0x966   : > { %3536 = vmatmul.msk.bf16.vlgmr.msrb.gmra.mxu1 %vm1040_vm0, %v2306_v11 }
 0x967   : > { %2615 = vmatpush.bf16.msrb.mxu1 %v4802_v10 }
 0x96b   : > { %2616 = vmatpush.bf16.msrb.mxu1 %v4808_v24 }
 0x976   : > { %3540 = vmatmul.msk.bf16.vlgmr.msra.gmra.mxu1 %vm1040_vm0, %v4951_v60 }
 0x977   : > { %2828 = vmatpush.bf16.xpose.msra.mxu1 %v4653_v43 }
 0x97f   : > { %2829 = vmatpush.bf16.xpose.msra.mxu1 %v4666_v2 }
 0x986   : > { %3548 = vmatmul.msk.bf16.vlgmr.msrb.gmra.mxu1 %vm1040_vm0, %v4951_v60 }
 0x987   : > { %2830 = vmatpush.bf16.xpose.msra.mxu1 %v4683_v35 }
 0x98f   : > { %2831 = vmatpush.bf16.xpose.msra.mxu1 %v4697_v25 }
 0x997   : > { %3033 = vmatpush.bf16.msrb.mxu1 %v4851_v22 }
 0x99b   : > { %3034 = vmatpush.bf16.msrb.mxu1 %v4856_v61 }
 0x9db   : > { %v2319_v8 = vpop.f32.mrf.mxu0 }
 0x9dc   : > { %v2339_v21 = vsel %vm1776_vm11, %v2319_v8, -inf }
 0x9dd   : > { %v2340_v30 = vrot.slane %v2339_v21, 4 }
 0x9df   : > { %v2341_v44 = vmax.f32 %v2339_v21, %v2340_v30 }
 0x9e1   : > { %v2342_v7 = vrot.slane %v2341_v44, 2 }
 0x9e3   : > { %v2343_v43 = vmax.f32 %v2341_v44, %v2342_v7  ;;  %v2321_v59 = vpop.f32.mrf.mxu0  ;;  %v2335_v2 = vpop.f32.mrf.mxu1 }
 0x9e4   : > { %v2346_v23 = vsel %vm1776_vm11, %v2335_v2, -inf }
 0x9e5   : > { %v2344_v50 = vrot.slane %v2343_v43, 1  ;;  %v2347_v6 = vrot.slane %v2346_v23, 4 }
 0x9e7   : > { %v2345_v35 = vmax.f32 %v2343_v43, %v2344_v50  ;;  %v2348_v54 = vmax.f32 %v2346_v23, %v2347_v6 }
 0x9e9   : > { %v2353_v25 = vsub.f32 %v2319_v8, %v2345_v35  ;;  %v2349_v49 = vrot.slane %v2348_v54, 2 }
 0x9eb   : > { %v2355_v22 = vmul.f32 1.442695, %v2353_v25  ;;  %v2350_v53 = vmax.f32 %v2348_v54, %v2349_v49  ;;  %v2337_v61 = vpop.f32.mrf.mxu1 }
 0x9ed   : > { %3780 = vpow2.f32 %v2355_v22  ;;  %v2351_v62 = vrot.slane %v2350_v53, 1 }
 0x9ef   : > { %v2352_v3 = vmax.f32 %v2350_v53, %v2351_v62 }
 0x9f1   : > { %v2354_v5 = vsub.f32 %v2335_v2, %v2352_v3 }
 0x9f3   : > { %v3781_v12 = vpop.eup %3780  ;;  %v2357_v40 = vmul.f32 1.442695, %v2354_v5 }
 0x9f4   : > { %v2359_v33 = vsel %vm1776_vm11, %v3781_v12, 0.0 }
 0x9f5   : > { %v2360_v63 = vrot.slane %v2359_v33, 4  ;;  %3782 = vpow2.f32 %v2357_v40 }
 0x9f7   : > { %v2361_v1 = vadd.f32 %v2360_v63, %v2359_v33 }
 0x9f9   : > { %v2362_v26 = vrot.slane %v2361_v1, 2 }
 0x9fb   : > { %v3783_v14 = vpop.eup %3782  ;;  %v2363_v51 = vadd.f32 %v2362_v26, %v2361_v1 }
 0x9fc   : > { %v2366_v11 = vsel %vm1776_vm11, %v3783_v14, 0.0 }
 0x9fd   : > { %v2367_v8 = vrot.slane %v2366_v11, 4  ;;  %v2364_v21 = vrot.slane %v2363_v51, 1 }
 0x9ff   : > { %v2368_v30 = vadd.f32 %v2367_v8, %v2366_v11  ;;  %v2365_v44 = vadd.f32 %v2364_v21, %v2363_v51 }
 0xa01   : > { %v2369_v7 = vrot.slane %v2368_v30, 2  ;;  %3784 = vrcp.f32 %v2365_v44 }
 0xa03   : > { %v2370_v43 = vadd.f32 %v2369_v7, %v2368_v30 }
 0xa05   : > { %v2371_v59 = vrot.slane %v2370_v43, 1 }
 0xa07   : > { %v3785_v2 = vpop.eup %3784  ;;  %v2372_v23 = vadd.f32 %v2371_v59, %v2370_v43 }
 0xa08   : > { %v2375_v50 = vmul.f32 %v3785_v2, %v3781_v12 }
 0xa09   : > { %3786 = vrcp.f32 %v2372_v23 }
 0xa0a   : > { %v2377_v6 = vadd.f32 1e-08, %v2375_v50 }
 0xa0c   : > { %v2379_v35 = vsel %vm1776_vm11, %v2377_v6, 0.0 }
 0xa0d   : > { %2380 = vadd.xlane.f32.xlu1 %v2379_v35 }
 0xa0f   : > { %v3787_v54 = vpop.eup %3786 }
 0xa10   : > { %v2376_v25 = vmul.f32 %v3787_v54, %v3783_v14 }
 0xa12   : > { %v2378_v49 = vadd.f32 1e-08, %v2376_v25 }
 0xa14   : > { %v2382_v22 = vsel %vm1776_vm11, %v2378_v49, 0.0 }
 0xa15   : > { %2383 = vadd.xlane.f32.xlu2 %v2382_v22 }
 0xa80   : > { %v2381_v53 = vpop.xlane.xlu1 %2380 }
 0xa81   : > { %3788 = vrcp.f32 %v2381_v53 }
 0xa87   : > { %v3789_v61 = vpop.eup %3788 }
 0xa88   : > { %v2387_v62 = vmul.f32 %v3789_v61, %v2377_v6  ;;  %v2384_v3 = vpop.xlane.xlu2 %2383 }
 0xa89   : > { %3790 = vrcp.f32 %v2384_v3 }
 0xa8a   : > { %v2389_v5 = vpack.c.bf16 %v2387_v62, %v2387_v62 }
 0xa8c   : > { %3537 = vmatmul.msk.bf16.vlgmr.msrb.gmra.mxu2 %vm1776_vm11, %v2389_v5 }
 0xa8d   : > { %2707 = vmatpush.bf16.msrb.mxu2 %v4896_v29 }
 0xa8f   : > { %v3791_v12 = vpop.eup %3790 }
 0xa90   : > { %v2388_v40 = vmul.f32 %v3791_v12, %v2378_v49 }
 0xa91   : > { %2708 = vmatpush.bf16.msrb.mxu2 %v4902_v0 }
 0xa92   : > { %v2390_v33 = vpack.c.bf16 %v2388_v40, %v2388_v40  ;;  %v3680_v40 = vld [vmem:[%s5322_s9] ss:$0 sm:$0xff] }
 0xa94   : > { %3538 = vmatmul.msk.bf16.vlgmr.msrb.gmra.mxu3 %vm1776_vm11, %v2390_v33 }
 0xa95   : > { %2725 = vmatpush.bf16.msrb.mxu3 %v4813_v19 }
 0xa99   : > { %2726 = vmatpush.bf16.msrb.mxu3 %v4819_v56 }
 0xa9d   : > { %2727 = vmatpush.bf16.msrb.mxu3 %v4824_v52 }
 0xaa1   : > { %2728 = vmatpush.bf16.msrb.mxu3 %v4829_v55 }
 0xaa4   : > { %3544 = vmatmul.msk.bf16.vlgmr.msra.gmra.mxu3 %vm1040_vm0, %v4951_v60 }
 0xaa5   : > { %2912 = vmatpush.bf16.msra.mxu3 %v4694_v28 }
 0xaa9   : > { %2913 = vmatpush.bf16.msra.mxu3 %v4706_v31  ;;  %v2458_v31 = vpop.f32.mrf.mxu1 }
 0xaad   : > { %2914 = vmatpush.bf16.msra.mxu3 %v4711_v48 }
 0xab1   : > { %2915 = vmatpush.bf16.msra.mxu3 %v4714_v37  ;;  %v3682_v37 = vld [vmem:[%s5319_s16] ss:$0 sm:$0xff] }
 0xb0f   : > { %v2403_v63 = vpop.f32.mrf.mxu2 }
 0xb17   : > { %v2405_v1 = vpop.f32.mrf.mxu2  ;;  %v2419_v26 = vpop.f32.mrf.mxu3 }
 0xb18   : > { %v2423_v14 = vpack.c.bf16 %v2419_v26, %v2403_v63 }
 0xb1a   : > { %3539 = vmatmul.msk.bf16.vlgmr.msra.gmra.mxu0 %vm1040_vm0, %v2423_v14  ;;  %3543 = vmatmul.msk.bf16.vlgmr.msra.gmra.mxu2 %vm1040_vm0, %v2423_v14 }
 0xb1b   : > { %2844 = vmatpush.bf16.xpose.msra.mxu2 %v4722_v36  ;;  %2809 = vmatpush.bf16.msra.mxu0 %v4624_v18  ;;  %v3681_v18 = vld [vmem:[%s5318_s2] ss:$0 sm:$0xff] }
 0xb1f   : > { %v2421_v28 = vpop.f32.mrf.mxu3  ;;  %2810 = vmatpush.bf16.msra.mxu0 %v4630_v34 }
 0xb23   : > { %2845 = vmatpush.bf16.xpose.msra.mxu2 %v4727_v57  ;;  %v3683_v57 = vld [vmem:[%s5320_s4] ss:$0 sm:$0xff] }
 0xb2a   : > { %3547 = vmatmul.msk.bf16.vlgmr.msrb.gmra.mxu0 %vm1040_vm0, %v2423_v14 }
 0xb2b   : > { %2846 = vmatpush.bf16.xpose.msra.mxu2 %v4733_v13  ;;  %2928 = vmatpush.bf16.msrb.mxu0 %v4737_v32  ;;  %v2536_v13 = vpop.f32.mrf.mxu3 }
 0xb2f   : > { %2929 = vmatpush.bf16.msrb.mxu0 %v4750_v27  ;;  %v3684_v27 = vld [vmem:[%s5321_s5] ss:$0 sm:$0xff] }
 0xb33   : > { %2847 = vmatpush.bf16.xpose.msra.mxu2 %v4743_v41  ;;  %2930 = vmatpush.bf16.msrb.mxu0 %v4755_v45  ;;  %v2460_v45 = vpop.f32.mrf.mxu1  ;;  %v2538_v50 = vpop.f32.mrf.mxu3 }
 0xb37   : > { %2931 = vmatpush.bf16.msrb.mxu0 %v4759_v46 }
 0xb3b   : > { %v2618_v5 = vpop.f32.mrf.mxu1 }
 0xb97   : > { %v2440_v34 = vpop.f32.mrf.mxu0 }
 0xb98   : > { %v2441_v48 = vadd.f32 %v3681_v18, %v2440_v34 }
 0xb9a   : > { %v2463_v36 = vadd.f32 %v2458_v31, %v2441_v48  ;;  %v3685_v31 = vld [vmem:[%s5323_s12] ss:$0 sm:$0xff] }
 0xb9c   : > { %v2469_v60 = vadd.f32 %v3682_v37, %v2463_v36  ;;  %v2619_v36 = vadd.f32 %v3680_v40, %v2618_v5 }
 0xb9d   : > { %v2522_v51 = vpop.f32.mrf.mxu2 }
 0xb9e   : > { %v3541_v32 = vmul.f32 -1.442695, %v2469_v60  ;;  %v2523_v11 = vadd.f32 %v3683_v57, %v2522_v51 }
 0xb9f   : > { %v2442_v8 = vpop.f32.mrf.mxu0 }
 0xba0   : > { %3792 = vpow2.f32 %v3541_v32  ;;  %v2541_v41 = vadd.f32 %v2536_v13, %v2523_v11  ;;  %v2443_v21 = vadd.f32 %v3681_v18, %v2442_v8 }
 0xba2   : > { %v2547_v30 = vadd.f32 %v3684_v27, %v2541_v41  ;;  %v2464_v46 = vadd.f32 %v2460_v45, %v2443_v21 }
 0xba4   : > { %v3545_v44 = vmul.f32 -1.442695, %v2547_v30  ;;  %v2470_v7 = vadd.f32 %v3682_v37, %v2464_v46 }
 0xba5   : > { %v2524_v43 = vpop.f32.mrf.mxu2 }
 0xba6   : > { %v3793_v59 = vpop.eup %3792  ;;  %3794 = vpow2.f32 %v3545_v44  ;;  %v3542_v2 = vmul.f32 -1.442695, %v2470_v7  ;;  %v2525_v23 = vadd.f32 %v3683_v57, %v2524_v43  ;;  %v2620_v44 = vpop.f32.mrf.mxu1 }
 0xba7   : > { %v2477_v6 = vadd.f32 1.0, %v3793_v59  ;;  %v2600_v14 = vpop.f32.mrf.mxu0 }
 0xba8   : > { %3796 = vpow2.f32 %v3542_v2  ;;  %v2542_v35 = vadd.f32 %v2538_v50, %v2525_v23  ;;  %v2601_v11 = vadd.f32 %v3685_v31, %v2600_v14 }
 0xba9   : > { %3798 = vrcp.f32 %v2477_v6  ;;  %v2490_v33 = vand.u32 2147483648, %v2477_v6  ;;  %v2488_v26 = vand.u32 2147483647, %v2477_v6  ;;  %vm2484_vm13 = vweird.f32 %v2477_v6 }
 0xbaa   : > { %v2548_v54 = vadd.f32 %v3684_v27, %v2542_v35 }
 0xbab   : > { %v2491_v57 = vor.u32 1.1754944e-38, %v2490_v33  ;;  %vm2489_vm15 = vcmp.eq.f32.partialorder %v2488_v26, 8.507059e+37 }
 0xbac   : > { %v3795_v25 = vpop.eup %3794  ;;  %v3546_v49 = vmul.f32 -1.442695, %v2548_v54 }
 0xbad   : > { %v2555_v22 = vadd.f32 1.0, %v3795_v25  ;;  %v2621_v25 = vadd.f32 %v3680_v40, %v2620_v44 }
 0xbae   : > { %v3797_v53 = vpop.eup %3796  ;;  %3800 = vpow2.f32 %v3546_v49 }
 0xbaf   : > { %v3799_v61 = vpop.eup %3798  ;;  %3802 = vrcp.f32 %v2555_v22  ;;  %v2478_v62 = vadd.f32 1.0, %v3797_v53  ;;  %v2568_v27 = vand.u32 2147483648, %v2555_v22  ;;  %vm2562_vm2 = vweird.f32 %v2555_v22 }
 0xbb0   : > { %v2480_v3 = vmul.f32 %v3799_v61, %v2477_v6  ;;  %vm2485_vm12 = vweird.f32 %v3799_v61  ;;  %v2566_v46 = vand.u32 2147483647, %v2555_v22  ;;  %v2602_v6 = vpop.f32.mrf.mxu0 }
 0xbb1   : > { %3804 = vrcp.f32 %v2478_v62  ;;  %vm2486_vm14 = vmor %vm2484_vm13, %vm2485_vm12  ;;  %v2503_v45 = vand.u32 2147483647, %v2478_v62  ;;  %v2505_v30 = vand.u32 2147483648, %v2478_v62  ;;  %vm2499_vm4 = vweird.f32 %v2478_v62 }
 0xbb2   : > { %v2481_v12 = vsub.f32 1.0, %v2480_v3  ;;  %v2569_v23 = vor.u32 1.1754944e-38, %v2568_v27  ;;  %vm2567_vm7 = vcmp.eq.f32.partialorder %v2566_v46, 8.507059e+37  ;;  %v2603_v5 = vadd.f32 %v3685_v31, %v2602_v6 }
 0xbb3   : > { %v2506_v49 = vor.u32 1.1754944e-38, %v2505_v30  ;;  %vm2504_vm8 = vcmp.eq.f32.partialorder %v2503_v45, 8.507059e+37 }
 0xbb4   : > { %v3801_v63 = vpop.eup %3800  ;;  %v2482_v1 = vmul.f32 %v3799_v61, %v2481_v12 }
 0xbb5   : > { %v3803_v28 = vpop.eup %3802  ;;  %v5001_v18 = vadd.f32 1.0, %v3801_v63 }
 0xbb6   : > { %v2483_v34 = vadd.f32 %v3799_v61, %v2482_v1  ;;  %v2558_v48 = vmul.f32 %v3803_v28, %v2555_v22  ;;  %vm2563_vm1 = vweird.f32 %v3803_v28 }
 0xbb7   : > { %v3805_v37 = vpop.eup %3804  ;;  %3806 = vrcp.f32 %v5001_v18  ;;  %vm2564_vm5 = vmor %vm2562_vm2, %vm2563_vm1  ;;  %v2583_v33 = vand.u32 2147483648, %v5001_v18  ;;  %v2581_v1 = vand.u32 2147483647, %v5001_v18  ;;  %vm2577_vm10 = vweird.f32 %v5001_v18 }
 0xbb8   : > { %v2487_v60 = vsel %vm2486_vm14, %v3799_v61, %v2483_v34  ;;  %v2495_v13 = vmul.f32 %v3805_v37, %v2478_v62  ;;  %v2559_v51 = vsub.f32 1.0, %v2558_v48  ;;  %vm2500_vm3 = vweird.f32 %v3805_v37 }
 0xbb9   : > { %v2492_v32 = vsel %vm2489_vm15, %v2491_v57, %v2487_v60  ;;  %vm2501_vm6 = vmor %vm2499_vm4, %vm2500_vm3  ;;  %v2584_v31 = vor.u32 1.1754944e-38, %v2583_v33  ;;  %vm2582_vm13 = vcmp.eq.f32.partialorder %v2581_v1, 8.507059e+37  ;;  %v3686_v33 = vld [vmem:[%s5325_s17] ss:$0 sm:$0xff] }
 0xbba   : > { %v2623_v8 = vmul.f32 %v2619_v36, %v2492_v32  ;;  %v2496_v41 = vsub.f32 1.0, %v2495_v13  ;;  %v2560_v21 = vmul.f32 %v3803_v28, %v2559_v51 }
 0xbbc   : > { %v2625_v7 = vadd.f32 %v2623_v8, %v2601_v11  ;;  %v2497_v43 = vmul.f32 %v3805_v37, %v2496_v41  ;;  %v2561_v59 = vadd.f32 %v3803_v28, %v2560_v21 }
 0xbbd   : > { %v3807_v2 = vpop.eup %3806 }
 0xbbe   : > { %3808 = vtanh.f32 %v2625_v7  ;;  %v2498_v50 = vadd.f32 %v3805_v37, %v2497_v43  ;;  %v2565_v35 = vsel %vm2564_vm5, %v3803_v28, %v2561_v59  ;;  %v2573_v54 = vmul.f32 %v3807_v2, %v5001_v18 }
 0xbbf   : > { %v2570_v53 = vsel %vm2567_vm7, %v2569_v23, %v2565_v35  ;;  %vm2578_vm9 = vweird.f32 %v3807_v2 }
 0xbc0   : > { %v2502_v22 = vsel %vm2501_vm6, %v3805_v37, %v2498_v50  ;;  %v2574_v61 = vsub.f32 1.0, %v2573_v54  ;;  %v2629_v63 = vsub.f32 1.0, %v2570_v53  ;;  %v2633_v34 = vmul.f32 %v2570_v53, %v4921_v39  ;;  %vm2579_vm12 = vmor %vm2577_vm10, %vm2578_vm9 }
 0xbc1   : > { %v2507_v3 = vsel %vm2504_vm8, %v2506_v49, %v2502_v22 }
 0xbc2   : > { %v2624_v12 = vmul.f32 %v2621_v25, %v2507_v3  ;;  %v2575_v62 = vmul.f32 %v3807_v2, %v2574_v61 }
 0xbc4   : > { %v3809_v26 = vpop.eup %3808  ;;  %v2626_v14 = vadd.f32 %v2624_v12, %v2603_v5  ;;  %v2576_v40 = vadd.f32 %v3807_v2, %v2575_v62 }
 0xbc5   : > { %v2631_v28 = vmul.f32 %v3809_v26, %v2629_v63 }
 0xbc6   : > { %3810 = vtanh.f32 %v2626_v14  ;;  %v2580_v48 = vsel %vm2579_vm12, %v3807_v2, %v2576_v40  ;;  %v3687_v14 = vld [vmem:[%s5326_s13] ss:$0 sm:$0xff] }
 0xbc7   : > { %v5010_v37 = vadd.f32 %v2633_v34, %v2631_v28  ;;  %v2585_v36 = vsel %vm2582_vm13, %v2584_v31, %v2580_v48 }
 0xbc8   : > { %v2630_v60 = vsub.f32 1.0, %v2585_v36  ;;  %v2634_v18 = vmul.f32 %v2585_v36, %v4926_v4 }
 0xbc9   : > { %v2639_v57 = vsel %vm1040_vm0, %v5010_v37, 0.0 }
 0xbca   : > { %2640 = vadd.xlane.f32.xlu0 %v2639_v57 }
 0xbcc   : > { %v3811_v13 = vpop.eup %3810 }
 0xbcd   : > { %v2632_v51 = vmul.f32 %v3811_v13, %v2630_v60  ;;  %v3688_v60 = vld [vmem:[%s5327_s20] ss:$0 sm:$0xff] }
 0xbcf   : > { %v5015_v32 = vadd.f32 %v2634_v18, %v2632_v51 }
 0xbd1   : > { %v2642_v39 = vsel %vm1040_vm0, %v5015_v32, 0.0 }
 0xbd2   : > { %2643 = vadd.xlane.f32.xlu1 %v2642_v39 }
 0xc3d   : > { %v2641_v11 = vpop.xlane.xlu0 %2640 }
 0xc3e   : > { %v2645_v27 = vmul.f32 %v2641_v11, %v4240_v20 }
 0xc40   : > { %v2647_v8 = vsub.f32 %v5010_v37, %v2645_v27 }
 0xc42   : > { %v2649_v41 = vmul.f32 %v2647_v8, %v2647_v8 }
 0xc44   : > { %v2651_v21 = vsel %vm1040_vm0, %v2649_v41, 0.0 }
 0xc45   : > { %2652 = vadd.xlane.f32.xlu2 %v2651_v21  ;;  %v2644_v45 = vpop.xlane.xlu1 %2643 }
 0xc46   : > { %v2646_v30 = vmul.f32 %v2644_v45, %v4240_v20 }
 0xc48   : > { %v2648_v4 = vsub.f32 %v5015_v32, %v2646_v30 }
 0xc4a   : > { %v2650_v46 = vmul.f32 %v2648_v4, %v2648_v4 }
 0xc4c   : > { %v2654_v44 = vsel %vm1040_vm0, %v2650_v46, 0.0 }
 0xc4d   : > { %2655 = vadd.xlane.f32.xlu0 %v2654_v44 }
 0xcb8   : > { %v2653_v7 = vpop.xlane.xlu2 %2652 }
 0xcb9   : > { %v2657_v43 = vmul.f32 %v2653_v7, %v4240_v20 }
 0xcbb   : > { %v2659_v59 = vadd.f32 1e-05, %v2657_v43 }
 0xcbd   : > { %3812 = vrsqrt.f32 %v2659_v59  ;;  %vm2667_vm15 = vweird.f32 %v2659_v59 }
 0xcc0   : > { %v2656_v2 = vpop.xlane.xlu0 %2655 }
 0xcc1   : > { %v2658_v23 = vmul.f32 %v2656_v2, %v4240_v20 }
 0xcc3   : > { %v3813_v50 = vpop.eup %3812  ;;  %v2660_v6 = vadd.f32 1e-05, %v2658_v23 }
 0xcc4   : > { %v2662_v35 = vmul.f32 %v3813_v50, %v2659_v59  ;;  %vm2668_vm14 = vweird.f32 %v3813_v50 }
 0xcc5   : > { %3814 = vrsqrt.f32 %v2660_v6  ;;  %vm2669_vm1 = vmor %vm2667_vm15, %vm2668_vm14  ;;  %vm2677_vm3 = vweird.f32 %v2660_v6 }
 0xcc6   : > { %v2663_v54 = vmul.f32 %v3813_v50, %v2662_v35 }
 0xcc8   : > { %v2664_v25 = vmul.f32 0.5, %v2663_v54 }
 0xcca   : > { %v2665_v49 = vsub.f32 1.5, %v2664_v25 }
 0xccb   : > { %v3815_v22 = vpop.eup %3814 }
 0xccc   : > { %v2666_v53 = vmul.f32 %v3813_v50, %v2665_v49  ;;  %v2672_v61 = vmul.f32 %v3815_v22, %v2660_v6  ;;  %vm2678_vm2 = vweird.f32 %v3815_v22 }
 0xccd   : > { %vm2679_vm4 = vmor %vm2677_vm3, %vm2678_vm2 }
 0xcce   : > { %v2673_v3 = vmul.f32 %v3815_v22, %v2672_v61  ;;  %v2670_v5 = vsel %vm2669_vm1, %v3813_v50, %v2666_v53 }
 0xccf   : > { %v2681_v63 = vmul.f32 %v2670_v5, %v2647_v8  ;;  %v3689_v8 = vld [vmem:[%s4152_s19] ss:$0 sm:$0xff] }
 0xcd0   : > { %v2674_v12 = vmul.f32 0.5, %v2673_v3 }
 0xcd1   : > { %v2686_v40 = vmul.f32 %v3686_v33, %v2681_v63 }
 0xcd2   : > { %v2675_v62 = vsub.f32 1.5, %v2674_v12 }
 0xcd3   : > { %v2691_v48 = vadd.f32 %v3687_v14, %v2686_v40  ;;  %v3690_v40 = vld [vmem:[%s5296_s3] ss:$0 sm:$0xff]  ;;  %s5261_s3 = sand.u32 1, %s3972_s10  }
 0xcd4   : > { %v2676_v1 = vmul.f32 %v3815_v22, %v2675_v62 }
 0xcd6   : > { %v2680_v26 = vsel %vm2679_vm4, %v3815_v22, %v2676_v1 }
 0xcd7   : > { %v2682_v28 = vmul.f32 %v2680_v26, %v2648_v4 }
 0xcd9   : > { %v2687_v34 = vmul.f32 %v3686_v33, %v2682_v28 }
 0xcdb   : > { %v2692_v31 = vadd.f32 %v3687_v14, %v2687_v34 }
 0xcdd   : > { %v2693_v36 = vpack.c.bf16 %v2692_v31, %v2691_v48  ;;  %v3691_v31 = vld [vmem:[%s5295_s8] ss:$0 sm:$0xff]  ;;  %s5077_s8 = sshll.u32 %s5261_s3, 4 }
 0xcde   : > { %s5081_s21 = scalar_lea.vmem [#allocation4], %s5077_s8  ;;  %s5093_s3 = scalar_lea.vmem [#allocation6], %s5077_s8 }
 0xcdf   : > { %3549 = vmatmul.msk.bf16.vlgmr.msrb.gmra.mxu2 %vm1040_vm0, %v2693_v36 }
 0xce0   : > { %3047 = vmatpush.bf16.msrb.mxu2 %v4783_v16 }
 0xce4   : > { %3048 = vmatpush.bf16.msrb.mxu2 %v4789_v17 }
 0xd62   : > { %v2710_v57 = vpop.f32.mrf.mxu2 }
 0xd63   : > { %v2711_v13 = vadd.f32 %v3688_v60, %v2710_v57 }
 0xd65   : > { %v2715_v39 = vmax.f32 %v2711_v13, 0.0 }
 0xd6a   : > { %v2712_v51 = vpop.f32.mrf.mxu2 }
 0xd6b   : > { %v2713_v18 = vadd.f32 %v3688_v60, %v2712_v51 }
 0xd6d   : > { %v2716_v11 = vmax.f32 %v2713_v18, 0.0 }
 0xd6f   : > { %v2717_v27 = vpack.c.bf16 %v2716_v11, %v2715_v39 }
 0xd71   : > { %3550 = vmatmul.msk.bf16.vlgmr.msrb.gmra.mxu3 %vm1776_vm11, %v2717_v27 }
 0xd72   : > { %2951 = vmatpush.bf16.msrb.mxu3 %v4839_v15 }
 0xd76   : > { %2952 = vmatpush.bf16.msrb.mxu3 %v4845_v58 }
 0xdf4   : > { %v2730_v41 = vpop.f32.mrf.mxu3 }
 0xdf5   : > { %v2735_v16 = vadd.f32 %v2730_v41, %v5010_v37 }
 0xdf7   : > { %v5038_v21 = vadd.f32 %v3689_v8, %v2735_v16 }
 0xdf9   : > { %v2745_v17 = vsel %vm1040_vm0, %v5038_v21, 0.0 }
 0xdfa   : > { %2746 = vadd.xlane.f32.xlu1 %v2745_v17 }
 0xdfc   : > { %v2732_v45 = vpop.f32.mrf.mxu3 }
 0xdfd   : > { %v2736_v30 = vadd.f32 %v2732_v45, %v5015_v32 }
 0xdff   : > { %v5043_v4 = vadd.f32 %v3689_v8, %v2736_v30 }
 0xe01   : > { %v2748_v15 = vsel %vm1040_vm0, %v5043_v4, 0.0 }
 0xe02   : > { %2749 = vadd.xlane.f32.xlu2 %v2748_v15 }
 0xe6d   : > { %v2747_v58 = vpop.xlane.xlu1 %2746 }
 0xe6e   : > { %v2751_v46 = vmul.f32 %v2747_v58, %v4240_v20 }
 0xe70   : > { %v2753_v37 = vsub.f32 %v5038_v21, %v2751_v46 }
 0xe72   : > { %v2755_v44 = vmul.f32 %v2753_v37, %v2753_v37 }
 0xe74   : > { %v2757_v7 = vsel %vm1040_vm0, %v2755_v44, 0.0 }
 0xe75   : > { %2758 = vadd.xlane.f32.xlu0 %v2757_v7  ;;  %v2750_v43 = vpop.xlane.xlu2 %2749 }
 0xe76   : > { %v2752_v59 = vmul.f32 %v2750_v43, %v4240_v20 }
 0xe78   : > { %v2754_v32 = vsub.f32 %v5043_v4, %v2752_v59 }
 0xe7a   : > { %v2756_v2 = vmul.f32 %v2754_v32, %v2754_v32 }
 0xe7c   : > { %v2760_v23 = vsel %vm1040_vm0, %v2756_v2, 0.0 }
 0xe7d   : > { %2761 = vadd.xlane.f32.xlu1 %v2760_v23 }
 0xee8   : > { %v2759_v50 = vpop.xlane.xlu0 %2758 }
 0xee9   : > { %v2763_v6 = vmul.f32 %v2759_v50, %v4240_v20 }
 0xeeb   : > { %v2765_v35 = vadd.f32 1e-05, %v2763_v6 }
 0xeed   : > { %3816 = vrsqrt.f32 %v2765_v35  ;;  %vm2773_vm6 = vweird.f32 %v2765_v35 }
 0xef0   : > { %v2762_v54 = vpop.xlane.xlu1 %2761 }
 0xef1   : > { %v2764_v25 = vmul.f32 %v2762_v54, %v4240_v20 }
 0xef3   : > { %v3817_v49 = vpop.eup %3816  ;;  %v2766_v22 = vadd.f32 1e-05, %v2764_v25 }
 0xef4   : > { %v2768_v53 = vmul.f32 %v3817_v49, %v2765_v35  ;;  %vm2774_vm5 = vweird.f32 %v3817_v49 }
 0xef5   : > { %3818 = vrsqrt.f32 %v2766_v22  ;;  %vm2775_vm7 = vmor %vm2773_vm6, %vm2774_vm5  ;;  %vm2783_vm9 = vweird.f32 %v2766_v22 }
 0xef6   : > { %v2769_v61 = vmul.f32 %v3817_v49, %v2768_v53 }
 0xef8   : > { %v2770_v3 = vmul.f32 0.5, %v2769_v61 }
 0xefa   : > { %v2771_v5 = vsub.f32 1.5, %v2770_v3 }
 0xefb   : > { %v3819_v12 = vpop.eup %3818 }
 0xefc   : > { %v2772_v62 = vmul.f32 %v3817_v49, %v2771_v5  ;;  %v2778_v33 = vmul.f32 %v3819_v12, %v2766_v22  ;;  %vm2784_vm8 = vweird.f32 %v3819_v12 }
 0xefd   : > { %vm2785_vm10 = vmor %vm2783_vm9, %vm2784_vm8 }
 0xefe   : > { %v2779_v63 = vmul.f32 %v3819_v12, %v2778_v33  ;;  %v2776_v1 = vsel %vm2775_vm7, %v3817_v49, %v2772_v62 }
 0xeff   : > { %v2787_v28 = vmul.f32 %v2776_v1, %v2753_v37 }
 0xf00   : > { %v2780_v26 = vmul.f32 0.5, %v2779_v63 }
 0xf01   : > { %v2792_v36 = vmul.f32 %v3690_v40, %v2787_v28 }
 0xf02   : > { %v2781_v14 = vsub.f32 1.5, %v2780_v26 }
 0xf03   : > { %v2797_v13 = vadd.f32 %v3691_v31, %v2792_v36 }
 0xf04   : > { %v2782_v34 = vmul.f32 %v3819_v12, %v2781_v14 }
 0xf06   : > { %v2786_v48 = vsel %vm2785_vm10, %v3819_v12, %v2782_v34 }
 0xf07   : > { %v2788_v57 = vmul.f32 %v2786_v48, %v2754_v32 }
 0xf09   : > { %v2793_v60 = vmul.f32 %v3690_v40, %v2788_v57 }
 0xf0b   : > { %v2798_v51 = vadd.f32 %v3691_v31, %v2793_v60 }
 0xf0d   : > { %v2799_v18 = vpack.c.bf16 %v2798_v51, %v2797_v13 }
 0xf0f   : > { %3551 = vmatmul.msk.bf16.vlgmr.msra.gmra.mxu0 %vm1040_vm0, %v2799_v18 }
 0xf10   : > { %2969 = vmatpush.bf16.msra.mxu0 %v4771_v42  ;;  %v5070_v42 = vpack.c.bf16 %v5043_v4, %v5038_v21 }
 0xf14   : > { %2970 = vmatpush.bf16.msra.mxu0 %v4775_v47 }
 0xf8c   : > { %v2812_v39 = vpop.f32.mrf.mxu0 }
 0xf8d   : > { %v2817_v11 = vmul.f32 0.17677669, %v2812_v39 }
 0xf8f   : > { %v2819_v27 = vpack.c.bf16 %v2817_v11, %v2817_v11 }
 0xf91   : > { %3552 = vmatmul.msk.bf16.vlgmr.msra.gmra.mxu1 %vm1040_vm0, %v2819_v27 }
 0xf92   : > { %3221 = vmatpush.bf16.msra.mxu1 %v4896_v29 }
 0xf94   : > { %v2814_v8 = vpop.f32.mrf.mxu0 }
 0xf95   : > { %v2818_v41 = vmul.f32 0.17677669, %v2814_v8 }
 0xf96   : > { %3222 = vmatpush.bf16.msra.mxu1 %v4902_v0 }
 0xf97   : > { %v2820_v16 = vpack.c.bf16 %v2818_v41, %v2818_v41 }
 0xf99   : > { %3553 = vmatmul.msk.bf16.vlgmr.msra.gmra.mxu2 %vm1040_vm0, %v2820_v16 }
 0xf9a   : > { %3239 = vmatpush.bf16.msra.mxu2 %v4813_v19 }
 0xf9e   : > { %3240 = vmatpush.bf16.msra.mxu2 %v4819_v56 }
 0xfa2   : > { %3241 = vmatpush.bf16.msra.mxu2 %v4824_v52 }
 0xfa6   : > { %3242 = vmatpush.bf16.msra.mxu2 %v4829_v55 }
 0xfa9   : > { %3561 = vmatmul.msk.bf16.vlgmr.msrb.gmra.mxu2 %vm1040_vm0, %v5070_v42 }
0x100e   : > { %v2833_v47 = vpop.f32.mrf.mxu1 }
0x100f   : > { %v2853_v19 = vsel %vm1776_vm11, %v2833_v47, -inf  ;;  %3259 = vst.msk [vmem:[%s5081_s21] sm:$0xff] %vm1776_vm11, %v2833_v47 }
0x1010   : > { %v2854_v56 = vrot.slane %v2853_v19, 4 }
0x1012   : > { %v2855_v52 = vmax.f32 %v2853_v19, %v2854_v56 }
0x1014   : > { %v2856_v55 = vrot.slane %v2855_v52, 2 }
0x1016   : > { %v2857_v29 = vmax.f32 %v2855_v52, %v2856_v55  ;;  %v2835_v0 = vpop.f32.mrf.mxu1  ;;  %v3694_v52 = vld [vmem:[%s5321_s5] ss:$0 sm:$0xff] }
0x1018   : > { %v2858_v17 = vrot.slane %v2857_v29, 1 }
0x101a   : > { %v2859_v45 = vmax.f32 %v2857_v29, %v2858_v17  ;;  %v3695_v29 = vld [vmem:[%s5318_s2] ss:$0 sm:$0xff]  ;;  %s3303_s2 = sshll.u32 %s5081_s21, 4  ;;  %s3304_s2 = int_to_ptr.vmem [resolvable:$true] %s3303_s2 }
0x101c   : > { %v2867_v30 = vsub.f32 %v2833_v47, %v2859_v45  ;;  %v2849_v15 = vpop.f32.mrf.mxu2 }
0x101d   : > { %v2860_v58 = vsel %vm1776_vm11, %v2849_v15, -inf  ;;  %3260 = vst.msk [vmem:[%s5081_s21 + $0x8] sm:$0xff] %vm1776_vm11, %v2849_v15  ;;  %s3878_s21 = scalar_lea.hbm %s4162_s6, 32 }
0x101e   : > { %v2869_v46 = vmul.f32 1.442695, %v2867_v30  ;;  %v2861_v37 = vrot.slane %v2860_v58, 4 }
0x1020   : > { %3820 = vpow2.f32 %v2869_v46  ;;  %v2862_v44 = vmax.f32 %v2860_v58, %v2861_v37 }
0x1022   : > { %v2863_v7 = vrot.slane %v2862_v44, 2 }
0x1024   : > { %v2864_v43 = vmax.f32 %v2862_v44, %v2863_v7  ;;  %v2851_v59 = vpop.f32.mrf.mxu2 }
0x1026   : > { %v3821_v32 = vpop.eup %3820  ;;  %v2865_v2 = vrot.slane %v2864_v43, 1 }
0x1027   : > { %v2873_v23 = vsel %vm1776_vm11, %v3821_v32, 0.0 }
0x1028   : > { %v2874_v50 = vrot.slane %v2873_v23, 4  ;;  %v2866_v6 = vmax.f32 %v2864_v43, %v2865_v2 }
0x102a   : > { %v2875_v35 = vadd.f32 %v2874_v50, %v2873_v23  ;;  %v2868_v54 = vsub.f32 %v2849_v15, %v2866_v6  ;;  %v3696_v15 = vld [vmem:[%s5319_s16] ss:$0 sm:$0xff] }
0x102c   : > { %v2871_v25 = vmul.f32 1.442695, %v2868_v54  ;;  %v2876_v49 = vrot.slane %v2875_v35, 2  ;;  %v3050_v47 = vpop.f32.mrf.mxu2 }
0x102e   : > { %3822 = vpow2.f32 %v2871_v25  ;;  %v2877_v22 = vadd.f32 %v2876_v49, %v2875_v35 }
0x1030   : > { %v2878_v53 = vrot.slane %v2877_v22, 1 }
0x1032   : > { %v2879_v61 = vadd.f32 %v2878_v53, %v2877_v22 }
0x1034   : > { %v3823_v3 = vpop.eup %3822  ;;  %3824 = vrcp.f32 %v2879_v61  ;;  %v3052_v44 = vpop.f32.mrf.mxu2 }
0x1035   : > { %v2880_v5 = vsel %vm1776_vm11, %v3823_v3, 0.0 }
0x1036   : > { %v2881_v12 = vrot.slane %v2880_v5, 4 }
0x1038   : > { %v2882_v62 = vadd.f32 %v2881_v12, %v2880_v5 }
0x103a   : > { %v3825_v33 = vpop.eup %3824  ;;  %v2883_v63 = vrot.slane %v2882_v62, 2 }
0x103b   : > { %v2889_v1 = vmul.f32 %v3825_v33, %v3821_v32 }
0x103c   : > { %v2884_v26 = vadd.f32 %v2883_v63, %v2882_v62 }
0x103d   : > { %v2891_v14 = vadd.f32 1e-08, %v2889_v1 }
0x103e   : > { %v2885_v40 = vrot.slane %v2884_v26, 1 }
0x103f   : > { %v2893_v28 = vsel %vm1776_vm11, %v2891_v14, 0.0 }
0x1040   : > { %2894 = vadd.xlane.f32.xlu2 %v2893_v28  ;;  %v2886_v34 = vadd.f32 %v2885_v40, %v2884_v26 }
0x1042   : > { %3826 = vrcp.f32 %v2886_v34 }
0x1048   : > { %v3827_v48 = vpop.eup %3826 }
0x1049   : > { %v2890_v31 = vmul.f32 %v3827_v48, %v3823_v3 }
0x104b   : > { %v2892_v36 = vadd.f32 1e-08, %v2890_v31  ;;  %v3692_v31 = vld [vmem:[%s5322_s9] ss:$0 sm:$0xff]  ;;  %s3268_s9 = sand.u32 1, %s4190_s0  }
0x104c   : > { %s5176_s16 = scalar_lea.sflag [#allocation5], %s3268_s9 }
0x104d   : > { %v2896_v57 = vsel %vm1776_vm11, %v2892_v36, 0.0 }
0x104e   : > { %2897 = vadd.xlane.f32.xlu0 %v2896_v57 }
0x10b3   : > { %v2895_v60 = vpop.xlane.xlu2 %2894 }
0x10b4   : > { %3828 = vrcp.f32 %v2895_v60 }
0x10ba   : > { %v3829_v13 = vpop.eup %3828 }
0x10bb   : > { %v2901_v51 = vmul.f32 %v3829_v13, %v2891_v14 }
0x10bd   : > { %v2903_v18 = vpack.c.bf16 %v2901_v51, %v2901_v51  ;;  %3261 = vst.msk [vmem:[%s5093_s3] sm:$0xff] %vm1776_vm11, %v2901_v51 }
0x10bf   : > { %3554 = vmatmul.msk.bf16.vlgmr.msra.gmra.mxu3 %vm1776_vm11, %v2903_v18 }
0x10c0   : > { %3111 = vmatpush.bf16.msra.mxu3 %v4861_v38 }
0x10c1   : > { %v2898_v39 = vpop.xlane.xlu0 %2897 }
0x10c2   : > { %3830 = vrcp.f32 %v2898_v39  ;;  %v3697_v39 = vld [vmem:[%s5323_s12] ss:$0 sm:$0xff]  ;;  %s3320_s12 = sshll.u32 %s5093_s3, 4  ;;  %s3321_s12 = int_to_ptr.vmem [resolvable:$true] %s3320_s12 }
0x10c4   : > { %3112 = vmatpush.bf16.msra.mxu3 %v4867_v9 }
0x10c8   : > { %v3831_v11 = vpop.eup %3830 }
0x10c9   : > { %v2902_v27 = vmul.f32 %v3831_v11, %v2892_v36 }
0x10cb   : > { %v2904_v8 = vpack.c.bf16 %v2902_v27, %v2902_v27  ;;  %3262 = vst.msk [vmem:[%s5093_s3 + $0x8] sm:$0xff] %vm1776_vm11, %v2902_v27 }
0x10cd   : > { %3555 = vmatmul.msk.bf16.vlgmr.msrb.gmra.mxu0 %vm1776_vm11, %v2904_v8 }
0x10ce   : > { %3129 = vmatpush.bf16.msrb.mxu0 %v4802_v10 }
0x10d2   : > { %3130 = vmatpush.bf16.msrb.mxu0 %v4808_v24  ;;  %v3693_v24 = vld [vmem:[%s5320_s4] ss:$0 sm:$0xff]  ;;  %s5170_s4 = sshll.u32 %s4190_s0, 4 }
0x10d3   : > { %s3302_s5 = scalar_lea.hbm %s4162_s6, %s5170_s4 }
0x10dd   : > { %3557 = vmatmul.msk.bf16.vlgmr.msra.gmra.mxu0 %vm1040_vm0, %v5070_v42 }
0x10ed   : > { %3565 = vmatmul.msk.bf16.vlgmr.msrb.gmra.mxu0 %vm1040_vm0, %v5070_v42 }
0x1142   : > { %v2917_v38 = vpop.f32.mrf.mxu3 }
0x114a   : > { %v2919_v9 = vpop.f32.mrf.mxu3  ;;  %v2933_v41 = vpop.f32.mrf.mxu0 }
0x114b   : > { %v2937_v16 = vpack.c.bf16 %v2933_v41, %v2917_v38 }
0x114d   : > { %3556 = vmatmul.msk.bf16.vlgmr.msrb.gmra.mxu3 %vm1040_vm0, %v2937_v16  ;;  %3560 = vmatmul.msk.bf16.vlgmr.msrb.gmra.mxu1 %vm1040_vm0, %v2937_v16 }
0x1152   : > { %v2935_v10 = vpop.f32.mrf.mxu0 }
0x115a   : > { %v2972_v0 = vpop.f32.mrf.mxu0 }
0x115d   : > { %3564 = vmatmul.msk.bf16.vlgmr.msra.gmra.mxu3 %vm1040_vm0, %v2937_v16 }
0x1162   : > { %v2974_v35 = vpop.f32.mrf.mxu0 }
0x116a   : > { %v3132_v34 = vpop.f32.mrf.mxu0 }
0x116b   : > { %v3133_v8 = vadd.f32 %v3692_v31, %v3132_v34 }
0x11ca   : > { %v3036_v19 = vpop.f32.mrf.mxu1 }
0x11cb   : > { %v3037_v56 = vadd.f32 %v3693_v24, %v3036_v19 }
0x11cd   : > { %v3055_v55 = vadd.f32 %v3050_v47, %v3037_v56 }
0x11cf   : > { %v3061_v42 = vadd.f32 %v3694_v52, %v3055_v55 }
0x11d0   : > { %v2954_v17 = vpop.f32.mrf.mxu3 }
0x11d1   : > { %v3562_v45 = vmul.f32 -1.442695, %v3061_v42  ;;  %v2955_v30 = vadd.f32 %v3695_v29, %v2954_v17 }
0x11d2   : > { %v3038_v58 = vpop.f32.mrf.mxu1 }
0x11d3   : > { %3832 = vpow2.f32 %v3562_v45  ;;  %v2977_v46 = vadd.f32 %v2972_v0, %v2955_v30  ;;  %v3039_v37 = vadd.f32 %v3693_v24, %v3038_v58  ;;  %v3134_v45 = vpop.f32.mrf.mxu0 }
0x11d5   : > { %v2983_v7 = vadd.f32 %v3696_v15, %v2977_v46  ;;  %v3056_v43 = vadd.f32 %v3052_v44, %v3039_v37 }
0x11d7   : > { %v3558_v59 = vmul.f32 -1.442695, %v2983_v7  ;;  %v3062_v32 = vadd.f32 %v3694_v52, %v3056_v43  ;;  %v3135_v7 = vadd.f32 %v3692_v31, %v3134_v45  ;;  %v3699_v45 = vld [vmem:[%s5326_s13] ss:$0 sm:$0xff]  ;;  %s3305_s13 = sshll.u32 %s3302_s5, 4  ;;  %s3306_s13 = int_to_ptr.hbm [resolvable:$true] %s3305_s13 }
0x11d8   : > { %v2956_v2 = vpop.f32.mrf.mxu3 }
0x11d9   : > { %v3833_v23 = vpop.eup %3832  ;;  %3834 = vpow2.f32 %v3558_v59  ;;  %v3563_v50 = vmul.f32 -1.442695, %v3062_v32  ;;  %v2957_v6 = vadd.f32 %v3695_v29, %v2956_v2 }
0x11da   : > { %v5116_v54 = vadd.f32 1.0, %v3833_v23 }
0x11db   : > { %3836 = vpow2.f32 %v3563_v50  ;;  %v2978_v25 = vadd.f32 %v2974_v35, %v2957_v6 }
0x11dc   : > { %3838 = vrcp.f32 %v5116_v54  ;;  %v3082_v56 = vand.u32 2147483648, %v5116_v54  ;;  %vm3076_vm2 = vweird.f32 %v5116_v54  ;;  %v3080_v55 = vand.u32 2147483647, %v5116_v54 }
0x11dd   : > { %v2984_v49 = vadd.f32 %v3696_v15, %v2978_v25 }
0x11de   : > { %v3083_v46 = vor.u32 1.1754944e-38, %v3082_v56  ;;  %vm3081_vm7 = vcmp.eq.f32.partialorder %v3080_v55, 8.507059e+37 }
0x11df   : > { %v3835_v22 = vpop.eup %3834  ;;  %v3559_v53 = vmul.f32 -1.442695, %v2984_v49 }
0x11e0   : > { %v2991_v61 = vadd.f32 1.0, %v3835_v22  ;;  %v3114_v60 = vpop.f32.mrf.mxu3 }
0x11e1   : > { %v3837_v3 = vpop.eup %3836  ;;  %3840 = vpow2.f32 %v3559_v53  ;;  %v3115_v24 = vadd.f32 %v3697_v39, %v3114_v60 }
0x11e2   : > { %3842 = vrcp.f32 %v2991_v61  ;;  %v5119_v5 = vadd.f32 1.0, %v3837_v3  ;;  %v3839_v12 = vpop.eup %3838  ;;  %v3004_v48 = vand.u32 2147483648, %v2991_v61  ;;  %v3002_v57 = vand.u32 2147483647, %v2991_v61 }
0x11e3   : > { %v3072_v62 = vmul.f32 %v3839_v12, %v5116_v54  ;;  %vm2998_vm13 = vweird.f32 %v2991_v61  ;;  %vm3077_vm1 = vweird.f32 %v3839_v12 }
0x11e4   : > { %3844 = vrcp.f32 %v5119_v5  ;;  %v3005_v27 = vor.u32 1.1754944e-38, %v3004_v48  ;;  %vm3003_vm15 = vcmp.eq.f32.partialorder %v3002_v57, 8.507059e+37  ;;  %vm5132_vm4 = vmor %vm3076_vm2, %vm3077_vm1  ;;  %v3097_v6 = vand.u32 2147483648, %v5119_v5 }
0x11e5   : > { %v3073_v14 = vsub.f32 1.0, %v3072_v62  ;;  %vm3091_vm10 = vweird.f32 %v5119_v5  ;;  %v3095_v54 = vand.u32 2147483647, %v5119_v5 }
0x11e6   : > { %v3098_v3 = vor.u32 1.1754944e-38, %v3097_v6 }
0x11e7   : > { %v3841_v33 = vpop.eup %3840  ;;  %v3074_v13 = vmul.f32 %v3839_v12, %v3073_v14 }
0x11e8   : > { %v3843_v63 = vpop.eup %3842  ;;  %v2992_v1 = vadd.f32 1.0, %v3841_v33  ;;  %v3116_v44 = vpop.f32.mrf.mxu3 }
0x11e9   : > { %v2994_v26 = vmul.f32 %v3843_v63, %v2991_v61  ;;  %vm2999_vm12 = vweird.f32 %v3843_v63  ;;  %v3075_v16 = vadd.f32 %v3839_v12, %v3074_v13  ;;  %v3117_v23 = vadd.f32 %v3697_v39, %v3116_v44 }
0x11ea   : > { %3846 = vrcp.f32 %v2992_v1  ;;  %v5123_v40 = vpop.eup %3844  ;;  %vm3000_vm14 = vmor %vm2998_vm13, %vm2999_vm12  ;;  %v3019_v52 = vand.u32 2147483648, %v2992_v1  ;;  %v3017_v0 = vand.u32 2147483647, %v2992_v1  ;;  %vm3013_vm5 = vweird.f32 %v2992_v1 }
0x11eb   : > { %v2995_v28 = vsub.f32 1.0, %v2994_v26  ;;  %v3087_v51 = vmul.f32 %v5123_v40, %v5119_v5  ;;  %v3079_v30 = vsel %vm5132_vm4, %v3839_v12, %v3075_v16  ;;  %vm3092_vm9 = vweird.f32 %v5123_v40 }
0x11ec   : > { %v3020_v37 = vor.u32 1.1754944e-38, %v3019_v52  ;;  %vm3018_vm8 = vcmp.eq.f32.partialorder %v3017_v0, 8.507059e+37  ;;  %v3084_v59 = vsel %vm3081_vm7, %v3083_v46, %v3079_v30  ;;  %vm3093_vm12 = vmor %vm3091_vm10, %vm3092_vm9  ;;  %vm3096_vm13 = vcmp.eq.f32.partialorder %v3095_v54, 8.507059e+37 }
0x11ed   : > { %v2996_v36 = vmul.f32 %v3843_v63, %v2995_v28  ;;  %v3088_v10 = vsub.f32 1.0, %v3087_v51  ;;  %v3143_v35 = vsub.f32 1.0, %v3084_v59  ;;  %v3147_v53 = vmul.f32 %v3084_v59, %v5038_v21 }
0x11ef   : > { %v2997_v18 = vadd.f32 %v3843_v63, %v2996_v36  ;;  %v3089_v15 = vmul.f32 %v5123_v40, %v3088_v10 }
0x11f0   : > { %v3847_v11 = vpop.eup %3846 }
0x11f1   : > { %v3001_v38 = vsel %vm3000_vm14, %v3843_v63, %v2997_v18  ;;  %v3009_v9 = vmul.f32 %v3847_v11, %v2992_v1  ;;  %vm3014_vm3 = vweird.f32 %v3847_v11  ;;  %v3090_v2 = vadd.f32 %v5123_v40, %v3089_v15 }
0x11f2   : > { %v3006_v41 = vsel %vm3003_vm15, %v3005_v27, %v3001_v38  ;;  %vm3015_vm6 = vmor %vm3013_vm5, %vm3014_vm3 }
0x11f3   : > { %v3137_v47 = vmul.f32 %v3133_v8, %v3006_v41  ;;  %v3010_v19 = vsub.f32 1.0, %v3009_v9  ;;  %v3094_v61 = vsel %vm3093_vm12, %v5123_v40, %v3090_v2 }
0x11f4   : > { %v3099_v62 = vsel %vm3096_vm13, %v3098_v3, %v3094_v61 }
0x11f5   : > { %v3139_v29 = vadd.f32 %v3137_v47, %v3115_v24  ;;  %v3011_v42 = vmul.f32 %v3847_v11, %v3010_v19  ;;  %v3144_v63 = vsub.f32 1.0, %v3099_v62  ;;  %v3148_v26 = vmul.f32 %v3099_v62, %v5043_v4 }
0x11f7   : > { %3848 = vtanh.f32 %v3139_v29  ;;  %v3012_v58 = vadd.f32 %v3847_v11, %v3011_v42 }
0x11f9   : > { %v3016_v43 = vsel %vm3015_vm6, %v3847_v11, %v3012_v58 }
0x11fa   : > { %v3021_v32 = vsel %vm3018_vm8, %v3020_v37, %v3016_v43  ;;  %v3700_v43 = vld [vmem:[%s5327_s20] ss:$0 sm:$0xff] }
0x11fb   : > { %v3138_v50 = vmul.f32 %v3135_v7, %v3021_v32 }
0x11fd   : > { %v3849_v25 = vpop.eup %3848  ;;  %v3140_v49 = vadd.f32 %v3138_v50, %v3117_v23 }
0x11fe   : > { %v3145_v22 = vmul.f32 %v3849_v25, %v3143_v35 }
0x11ff   : > { %3850 = vtanh.f32 %v3140_v49 }
0x1200   : > { %v5146_v12 = vadd.f32 %v3147_v53, %v3145_v22 }
0x1202   : > { %v3153_v33 = vsel %vm1040_vm0, %v5146_v12, 0.0 }
0x1203   : > { %3154 = vadd.xlane.f32.xlu1 %v3153_v33 }
0x1205   : > { %v3851_v5 = vpop.eup %3850 }
0x1206   : > { %v3146_v1 = vmul.f32 %v3851_v5, %v3144_v63 }
0x1208   : > { %v5151_v14 = vadd.f32 %v3148_v26, %v3146_v1 }
0x120a   : > { %v3156_v21 = vsel %vm1040_vm0, %v5151_v14, 0.0 }
0x120b   : > { %3157 = vadd.xlane.f32.xlu2 %v3156_v21 }
0x1276   : > { %v3155_v40 = vpop.xlane.xlu1 %3154 }
0x1277   : > { %v3159_v28 = vmul.f32 %v3155_v40, %v4240_v20 }
0x1279   : > { %v3161_v34 = vsub.f32 %v5146_v12, %v3159_v28 }
0x127b   : > { %v3163_v48 = vmul.f32 %v3161_v34, %v3161_v34 }
0x127d   : > { %v3165_v31 = vsel %vm1040_vm0, %v3163_v48, 0.0 }
0x127e   : > { %3166 = vadd.xlane.f32.xlu0 %v3165_v31  ;;  %v3158_v36 = vpop.xlane.xlu2 %3157 }
0x127f   : > { %v3160_v57 = vmul.f32 %v3158_v36, %v4240_v20 }
0x1281   : > { %v3162_v4 = vsub.f32 %v5151_v14, %v3160_v57 }
0x1283   : > { %v3164_v60 = vmul.f32 %v3162_v4, %v3162_v4 }
0x1285   : > { %v3168_v13 = vsel %vm1040_vm0, %v3164_v60, 0.0 }
0x1286   : > { %3169 = vadd.xlane.f32.xlu1 %v3168_v13 }
0x12f1   : > { %v3167_v51 = vpop.xlane.xlu0 %3166 }
0x12f2   : > { %v3171_v18 = vmul.f32 %v3167_v51, %v4240_v20 }
0x12f4   : > { %v3173_v39 = vadd.f32 1e-05, %v3171_v18 }
0x12f6   : > { %3852 = vrsqrt.f32 %v3173_v39  ;;  %vm3181_vm15 = vweird.f32 %v3173_v39 }
0x12f9   : > { %v3170_v11 = vpop.xlane.xlu1 %3169 }
0x12fa   : > { %v3172_v27 = vmul.f32 %v3170_v11, %v4240_v20  ;;  %v3698_v20 = vld [vmem:[%s5325_s17] ss:$0 sm:$0xff]  ;;  %s3872_s17 = sshra.s32 %s3306_s13, 4  ;;  %s3873_s17 = int_to_ptr.hbm [resolvable:$true] %s3872_s17 }
0x12fb   : > { %s3874_s20 = scalar_lea.hbm %s3873_s17, 16  ;;  %p3879_p0 = scmp.lt.s32.totalorder %s3873_s17, %s4162_s6 }
0x12fc   : > { %v3853_v8 = vpop.eup %3852  ;;  %v3174_v38 = vadd.f32 1e-05, %v3172_v27  ;;  %p3875_p11 = scmp.ne.s32.totalorder %s3873_s17, %s3874_s20  ;;  %p3880_p1 = scmp.lt.s32.totalorder %s3878_s21, %s3874_s20 }
0x12fd   : > { %v3176_v9 = vmul.f32 %v3853_v8, %v3173_v39  ;;  %vm3182_vm14 = vweird.f32 %v3853_v8 }
0x12fe   : > { %3854 = vrsqrt.f32 %v3174_v38  ;;  %vm3183_vm1 = vmor %vm3181_vm15, %vm3182_vm14  ;;  %vm3191_vm3 = vweird.f32 %v3174_v38  ;;  %p3876_p12 = pnand %p3875_p11, %p4209_p5  ;;  %p3881_p2 = por %p3880_p1, %p3879_p0 }
0x12ff   : > { %v3177_v41 = vmul.f32 %v3853_v8, %v3176_v9 }
0x1300   : > { %p3877_p13 = pneg %p3876_p12 }
0x1301   : > { %v3178_v16 = vmul.f32 0.5, %v3177_v41 }
0x1302   : > { %p3882_p3 = pnand %p3881_p2, %p3877_p13 }
0x1303   : > { %v3179_v10 = vsub.f32 1.5, %v3178_v16 }
0x1304   : > { %v3855_v24 = vpop.eup %3854 }
0x1305   : > { %v3180_v47 = vmul.f32 %v3853_v8, %v3179_v10  ;;  %v3186_v19 = vmul.f32 %v3855_v24, %v3174_v38  ;;  %vm3192_vm2 = vweird.f32 %v3855_v24 }
0x1306   : > { %vm3193_vm4 = vmor %vm3191_vm3, %vm3192_vm2 }
0x1307   : > { %v3187_v56 = vmul.f32 %v3855_v24, %v3186_v19  ;;  %v3184_v52 = vsel %vm3183_vm1, %v3853_v8, %v3180_v47 }
0x1308   : > { %v3195_v42 = vmul.f32 %v3184_v52, %v3161_v34 }
0x1309   : > { %v3188_v55 = vmul.f32 0.5, %v3187_v56 }
0x130a   : > { %v3200_v30 = vmul.f32 %v3698_v20, %v3195_v42 }
0x130b   : > { %v3189_v29 = vsub.f32 1.5, %v3188_v55 }
0x130c   : > { %v3205_v46 = vadd.f32 %v3699_v45, %v3200_v30 }
0x130d   : > { %v3190_v0 = vmul.f32 %v3855_v24, %v3189_v29 }
0x130f   : > { %v3194_v17 = vsel %vm3193_vm4, %v3855_v24, %v3190_v0 }
0x1310   : > { %v3196_v15 = vmul.f32 %v3194_v17, %v3162_v4 }
0x1312   : > { %v3201_v58 = vmul.f32 %v3698_v20, %v3196_v15 }
0x1314   : > { %v3206_v37 = vadd.f32 %v3699_v45, %v3201_v58 }
0x1316   : > { %v3207_v44 = vpack.c.bf16 %v3206_v37, %v3205_v46 }
0x1318   : > { %3566 = vmatmul.msk.bf16.vlgmr.msra.gmra.mxu1 %vm1040_vm0, %v3207_v44 }
0x1395   : > { %v3224_v7 = vpop.f32.mrf.mxu1 }
0x1396   : > { %v3225_v59 = vadd.f32 %v3700_v43, %v3224_v7 }
0x1398   : > { %v3229_v23 = vmax.f32 %v3225_v59, 0.0 }
0x139d   : > { %v3226_v32 = vpop.f32.mrf.mxu1 }
0x139e   : > { %v3227_v2 = vadd.f32 %v3700_v43, %v3226_v32 }
0x13a0   : > { %v3230_v50 = vmax.f32 %v3227_v2, 0.0 }
0x13a2   : > { %v3231_v6 = vpack.c.bf16 %v3230_v50, %v3229_v23 }
0x13a4   : > { %3567 = vmatmul.msk.bf16.vlgmr.msra.gmra.mxu2 %vm1776_vm11, %v3231_v6 }
0x13a5   : > { %3885 = shalt.err (!%p3882_p3)
}
0x13a6   : > { %s4012_s22 = smov 128   ;;  %s4013_s5 = smov 8  }
0x13a7   : > { %3584 = dma.vmem_to_hbm [thread:$0]  (%p4209_p5), %s3304_s2, 256, %s3306_s13, %s5176_s16, %s4012_s22, %s4012_s22, %s4013_s5  }
0x13a8   : > { %s3319_s9 = scalar_lea.hbm %s4167_s30, %s5170_s4  ;;  %s3906_s0 = scalar_lea.hbm %s4167_s30, 32 }
0x13a9   : > { %s3322_s17 = sshll.u32 %s3319_s9, 4  ;;  %s3323_s17 = int_to_ptr.hbm [resolvable:$true] %s3322_s17 }
0x13aa   : > { %s3900_s3 = sshra.s32 %s3323_s17, 4  ;;  %s3901_s3 = int_to_ptr.hbm [resolvable:$true] %s3900_s3 }
0x13ab   : > { %s3902_s20 = scalar_lea.hbm %s3901_s3, 16  ;;  %p3907_p9 = scmp.lt.s32.totalorder %s3901_s3, %s4167_s30 }
0x13ac   : > { %p3903_p4 = scmp.ne.s32.totalorder %s3901_s3, %s3902_s20  ;;  %p3908_p10 = scmp.lt.s32.totalorder %s3906_s0, %s3902_s20 }
0x13ae   : > { %p3904_p7 = pnand %p3903_p4, %p4209_p5  ;;  %p3909_p11 = por %p3908_p10, %p3907_p9 }
0x13b0   : > { %p3905_p8 = pneg %p3904_p7 }
0x13b2   : > { %p3910_p12 = pnand %p3909_p11, %p3905_p8 }
0x13b4   : > { %3913 = shalt.err (!%p3910_p12)
}
0x13b5   : > { %3585 = dma.vmem_to_hbm [thread:$0]  (%p4209_p5), %s3321_s12, 256, %s3323_s17, %s5176_s16, %s4012_s22, %s4012_s22, %s4013_s5  }
0x13b6   : > { %v3701_v35 = vld [vmem:[%s4152_s19] ss:$0 sm:$0xff]  ;;  %s918_s13 = scalar_lea.vmem [#allocation2], %s5077_s8  ;;  %s3285_s2 = scalar_lea.hbm %s4157_s14, %s5170_s4 }
0x13b7   : > { %s3286_s21 = sshll.u32 %s918_s13, 4  ;;  %s3288_s9 = sshll.u32 %s3285_s2, 4  ;;  %s3287_s21 = int_to_ptr.vmem [resolvable:$true] %s3286_s21  ;;  %s3289_s9 = int_to_ptr.hbm [resolvable:$true] %s3288_s9 }
0x13b8   : > { %s5330_s12 = sand.u32 1, %s3972_s10   ;;  %s3928_s17 = sshra.s32 %s3289_s9, 4  ;;  %s3929_s17 = int_to_ptr.hbm [resolvable:$true] %s3928_s17 }
0x13b9   : > { %s3264_s16 = scalar_lea.sflag [#allocation3], %s5330_s12  ;;  %s3930_s8 = scalar_lea.hbm %s3929_s17, 16 }
0x13ba   : > { %p3931_p13 = scmp.ne.s32.totalorder %s3929_s17, %s3930_s8  ;;  %s3934_s4 = scalar_lea.hbm %s4157_s14, 32 }
0x13bb   : > { %p3935_p2 = scmp.lt.s32.totalorder %s3929_s17, %s4157_s14  ;;  %p3936_p3 = scmp.lt.s32.totalorder %s3934_s4, %s3930_s8 }
0x13bc   : > { %p3932_p0 = pnand %p3931_p13, %p4209_p5 }
0x13bd   : > { %p3937_p4 = por %p3936_p3, %p3935_p2 }
0x13be   : > { %p3933_p1 = pneg %p3932_p0 }
0x13c0   : > { %p3938_p7 = pnand %p3937_p4, %p3933_p1 }
0x1427   : > { %v3244_v54 = vpop.f32.mrf.mxu2 }
0x1428   : > { %v3249_v25 = vadd.f32 %v3244_v54, %v5146_v12 }
0x142a   : > { %v3255_v49 = vadd.f32 %v3701_v35, %v3249_v25 }
0x142c   : > { %3257 = vst.msk [vmem:[%s918_s13] sm:$0xff] %vm1040_vm0, %v3255_v49 }
0x142f   : > { %v3246_v22 = vpop.f32.mrf.mxu2 }
0x1430   : > { %v3250_v53 = vadd.f32 %v3246_v22, %v5151_v14 }
0x1432   : > { %v3256_v61 = vadd.f32 %v3701_v35, %v3250_v53 }
0x1434   : > { %3258 = vst.msk [vmem:[%s918_s13 + $0x8] sm:$0xff] %vm1040_vm0, %v3256_v61 }
0x1435   : > { %3941 = shalt.err (!%p3938_p7)
}
0x1436   : > { %3583 = dma.vmem_to_hbm [thread:$0]  (%p4209_p5), %s3287_s21, 256, %s3289_s9, %s3264_s16, %s4012_s22, %s4012_s22, %s4013_s5  }
0x1437 PF: > { %p3599_p8 = scmp.ge.s32.totalorder %s3980_s15, 2  ;;  %s3337_s3 = sand.u32 1, %s3968_s7  }
0x1438   : > { %s3338_s20 = scalar_lea.sflag [#allocation3], %s3337_s3 }
0x1439   : > { %p3590_p9 = pnand %p3599_p8, %p4213_p6 }
0x143b   : > { %p3591_p10 = pneg %p3590_p9 }
0x143d   : > { %3959 = dma.done.wait (%p3591_p10), %s3338_s20, 256  }
0x143e   : > { %3961 = vsyncadd (%p3591_p10), %s3338_s20, 4294967040  ;;  %s5331_s0 = sadd.s32 4294967294, %s3980_s15  }
0x143f   : > { %s3347_s13 = sand.u32 1, %s5331_s0  }
0x1440   : > { %s3348_s28 = scalar_lea.sflag [#allocation5], %s3347_s13 }
0x1441   : > { %3963 = dma.done.wait (%p3591_p10), %s3348_s28, 512  }
0x1442   : > { %3965 = vsyncadd (%p3591_p10), %s3348_s28, 4294966784  ;;  %p73_p5 = scmp.ge.s32.totalorder %s4194_s18, 4   ;;  %s5332_s7 = smov %s3972_s10 }
0x1443   : > { %s5333_s10 = smov %s3976_s11  ;;  %s5334_s11 = smov %s4207_s26 }
0x1444   : > { %s5335_s15 = smov %s4194_s18  ;;  %75 = sbr.rel (!%p73_p5) target bundleno = 58 (0x3a), region = 227 }
0x1449   :  { %3364 = vsyncpa [#allocation3], 1 }
0x144a   :  { %3366 = vsyncpa [#allocation3 + $0x1], 1 }
0x144b   :  { %3367 = vsyncpa [#allocation5], 1 }
0x144c   :  { %3369 = vsyncpa [#allocation5 + $0x1], 1 }

</bundles_post_ra>
